<compile_context>
chip_gen: v7x
topology: tpu7x:2x2x1
jax: 0.10.0
libtpu: 0.0.40
codegen_flags: <defaults>
</compile_context>

<pallas_src>
import math
from functools import partial, reduce

import jax
import jax.numpy as jnp
from jax.experimental import pallas as pl
from jax.experimental.pallas import tpu as pltpu


# ----------------------------------------------------------------------------
# Python-side butterfly structure helpers (verbatim ports of the torch module)
# ----------------------------------------------------------------------------
def _all_factorisations(value, minimum_factor):
    factorisations = []
    factors = [x for x in range(2, value + 1) if value % x == 0]
    for factor in factors:
        remainder = value // factor
        if remainder == 1:
            factorisations.append([factor])
        else:
            for factorisation in _all_factorisations(remainder, minimum_factor):
                factorisation.append(factor)
                factorisations.append(factorisation)
    factorisations = [sorted(f) for f in factorisations]
    no_duplicates = []
    for f in factorisations:
        if f not in no_duplicates:
            no_duplicates.append(f)
    filtered = []
    for f in no_duplicates:
        too_small = sum(1 for factor in f if factor < minimum_factor)
        if too_small <= 1:
            filtered.append(f)
    return filtered


def _compound_factors(prime_factors):
    compound = set()
    for position, factor in enumerate(prime_factors):
        compound.add(factor)
        remaining = _compound_factors(prime_factors[position + 1:])
        for value in remaining:
            compound.add(factor * value)
            compound.add(value)
    return compound


def _list_intersection(list1, list2):
    intersection = []
    pos1 = pos2 = 0
    while pos1 < len(list1) and pos2 < len(list2):
        v1, v2 = list1[pos1], list2[pos2]
        if v1 == v2:
            intersection.append(v1)
            pos1 += 1
            pos2 += 1
        elif v1 < v2:
            pos1 += 1
        else:
            pos2 += 1
    return intersection


def _list_product(l):
    return reduce(lambda x, y: x * y, l, 1)


def _list_sum(l):
    return reduce(lambda x, y: x + y, l, 0)


def _prime_factorisation(value):
    factors = []
    factor = 2
    remaining = value
    while factor <= remaining:
        if remaining % factor == 0:
            factors.append(factor)
            remaining //= factor
        else:
            factor += 1
    assert _list_product(factors) == value
    return factors


def _best_initial_group_count(in_channels, out_channels, min_group_size):
    if in_channels == out_channels:
        return 0
    in_factors = _prime_factorisation(in_channels)
    out_factors = _prime_factorisation(out_channels)
    intersection = _list_intersection(in_factors, out_factors)
    compound_factors = list(reversed(sorted(_compound_factors(intersection))))
    if len(compound_factors) == 0:
        return 1
    for group_count in compound_factors:
        if in_channels // group_count >= min_group_size:
            return group_count
    return compound_factors[-1]


def _best_group_sizes(channels, min_group_size):
    candidates = _all_factorisations(channels, min_group_size)
    best_sequence = []
    best_cost = math.inf
    for c in candidates:
        c_cost = _list_sum(c)
        if c_cost < best_cost:
            best_cost = c_cost
            best_sequence = c
    return best_sequence


def get_group_counts(in_channels, out_channels, min_group_size):
    if in_channels < min_group_size or out_channels < min_group_size:
        return []
    group_sizes = []
    group_counts = []
    initial = _best_initial_group_count(in_channels, out_channels, min_group_size)
    if initial > 0:
        group_counts.append(initial)
        group_sizes.append(out_channels // initial)
    num_silos = out_channels // group_sizes[0] if group_sizes else out_channels
    remaining = _best_group_sizes(num_silos, min_group_size)
    group_sizes += remaining
    for gs in remaining:
        group_counts.append(out_channels // gs)
    assert _list_product(group_sizes) == out_channels
    return group_counts


# ----------------------------------------------------------------------------
# Pallas kernels
# ----------------------------------------------------------------------------
def _butterfly_conv_kernel(x_ref, w_ref, b_ref, o_ref, *, KH, KW, stride, Ho, Wo,
                           mxu_dtype):
    """One (group-pack, batch-sample) grid step of a grouped conv.

    x_ref: (Hp, Wp, Cin_pack) padded image slice (channels of this group pack)
    w_ref: (KH*KW, Cin_pack, Cout_pack) block-diagonal tap weights
           (shuffle permutation pre-folded into columns when fused)
    b_ref: (1, Cout_pack) bias (zeros for the butterfly path)
    o_ref: (Ho, Wo, Cout_pack) NHWC output slab (lane-dense, written once)
    """
    cin = x_ref.shape[-1]
    cout = o_ref.shape[-1]
    acc = jnp.zeros((Ho * Wo, cout), jnp.float32)
    for kh in range(KH):
        for kw in range(KW):
            if stride == 1:
                win = x_ref[kh:kh + Ho, kw:kw + Wo, :]
            else:
                # TODO(synk): strided-window load path is only needed for the first
                # (downsampling) sublayer; exercised less than the stride-1 path.
                win = x_ref[pl.ds(kh, Ho, stride), pl.ds(kw, Wo, stride), :]
            lhs = win.reshape(Ho * Wo, cin).astype(mxu_dtype)
            rhs = w_ref[kh * KW + kw].astype(mxu_dtype)
            acc = acc + jnp.dot(lhs, rhs, preferred_element_type=jnp.float32)
    acc = acc + b_ref[...].astype(jnp.float32)
    o_ref[...] = acc.reshape(Ho, Wo, cout).astype(o_ref.dtype)


def _bn_stats_kernel(x_ref, sum_ref, ssq_ref):
    """Row-tiled per-channel sum / sum-of-squares, accumulated across the grid."""
    @pl.when(pl.program_id(0) == 0)
    def _():
        sum_ref[...] = jnp.zeros_like(sum_ref)
        ssq_ref[...] = jnp.zeros_like(ssq_ref)

    x = x_ref[...].astype(jnp.float32)
    sum_ref[...] += jnp.sum(x, axis=0, keepdims=True)
    ssq_ref[...] += jnp.sum(x * x, axis=0, keepdims=True)


def _bn_apply_kernel(x_ref, scale_ref, shift_ref, o_ref):
    x = x_ref[...].astype(jnp.float32)
    o_ref[...] = (x * scale_ref[...] + shift_ref[...]).astype(o_ref.dtype)


# ----------------------------------------------------------------------------
# Host-side helpers
# ----------------------------------------------------------------------------
def _choose_group_pack(G, Cin_g, Cout_g, lane_target=128):
    """Smallest divisor of G giving >=128 output lanes per step, with a fallback
    to a single pack when the packed channel counts would violate BlockSpec
    lane-divisibility constraints."""
    target = max(1, -(-lane_target // Cout_g))
    gb = G
    for d in range(1, G + 1):
        if G % d == 0 and d >= target:
            gb = d
            break

    def _lane_ok(pack_c, full_c):
        return pack_c == full_c or pack_c % 128 == 0

    if not (_lane_ok(gb * Cin_g, G * Cin_g) and _lane_ok(gb * Cout_g, G * Cout_g)):
        gb = G
    return gb


def _pack_sublayer_weights(w, bias, gb, fused_shuffle_groups, compute_dtype):
    """Pack grouped-conv weights into per-pack block-diagonal tap matrices, with the
    channel shuffle folded into the output-column permutation when fused."""
    G, KH, KW, Cin_g, Cout_g = w.shape
    Gp = G // gb
    T = KH * KW
    Cin_pack, Cout_pack = gb * Cin_g, gb * Cout_g

    wt = w.reshape(Gp, gb, T, Cin_g, Cout_g).transpose(0, 2, 1, 3, 4)
    packed = jnp.zeros((Gp, T, Cin_pack, Cout_pack), jnp.float32)
    for gl in range(gb):
        packed = packed.at[:, :, gl * Cin_g:(gl + 1) * Cin_g,
                           gl * Cout_g:(gl + 1) * Cout_g].set(wt[:, :, gl])

    if bias is None:
        b = jnp.zeros((Gp, 1, Cout_pack), jnp.float32)
    else:
        b = bias.astype(jnp.float32).reshape(Gp, 1, Cout_pack)

    S = fused_shuffle_groups
    if S > 1:
        assert Gp == 1
        C = Cout_pack
        # shuffled[:, t*S + s] = conv[:, s*(C//S) + t]  -> permute weight columns.
        perm = jnp.arange(C).reshape(S, C // S).T.reshape(-1)
        packed = packed[..., perm]
        b = b[..., perm]
    return packed.astype(compute_dtype), b


def _pick_row_tile(rows):
    for t in (1024, 512, 256, 128, 64, 32, 16, 8):
        if rows % t == 0 and rows // t >= 2:
            return t
    return rows


def _vmem_limit(nbytes):
    return int(min(max(nbytes, 32 << 20), 64 << 20))


def channel_shuffle(x_nhwc, groups):
    """Conv2dSublayer.shuffle (glue path, only used when groups are not packed
    into a single kernel step)."""
    if groups == 1:
        return x_nhwc
    B, H, W, C = x_nhwc.shape
    x = x_nhwc.reshape(B, H, W, groups, C // groups)
    x = x.transpose(0, 1, 2, 4, 3)
    return x.reshape(B, H, W, C)


# ----------------------------------------------------------------------------
# Sublayer / BatchNorm wrappers
# ----------------------------------------------------------------------------
def conv2d_sublayer(x_nhwc, w, stride, padding, shuffle_groups, bias,
                    compute_dtype=jnp.bfloat16):
    """Conv2dSublayer.forward: grouped conv (no bias on the butterfly path) then
    channel shuffle, with the shuffle fused into the kernel when possible."""
    B, H, W, Cin = x_nhwc.shape
    G, KH, KW, Cin_g, Cout_g = w.shape
    Cout = G * Cout_g
    assert Cin == G * Cin_g
    Ho = (H + 2 * padding - KH) // stride + 1
    Wo = (W + 2 * padding - KW) // stride + 1
    Hp, Wp = H + 2 * padding, W + 2 * padding

    gb = _choose_group_pack(G, Cin_g, Cout_g)
    Gp = G // gb
    Cin_pack, Cout_pack = gb * Cin_g, gb * Cout_g
    fuse_shuffle = (Gp == 1)

    w_packed, b_packed = _pack_sublayer_weights(
        w, bias, gb, shuffle_groups if fuse_shuffle else 1, compute_dtype)

    # TODO(synk): padding is a small host-side copy (1-pixel border); it could be
    # folded into the kernel with border masking.
    xp = jnp.pad(x_nhwc.astype(compute_dtype),
                 ((0, 0), (padding, padding), (padding, padding), (0, 0)))

    kernel = partial(_butterfly_conv_kernel, KH=KH, KW=KW, stride=stride,
                     Ho=Ho, Wo=Wo, mxu_dtype=compute_dtype)

    esize = jnp.dtype(compute_dtype).itemsize
    bytes_x = Hp * Wp * Cin_pack * esize
    bytes_w = KH * KW * Cin_pack * Cout_pack * esize
    bytes_o = Ho * Wo * Cout_pack * esize
    acc_b = Ho * Wo * Cout_pack * 4
    limit = _vmem_limit(2 * (bytes_x + bytes_w + bytes_o) + acc_b + (4 << 20))

    # TODO(synk): for very large H*W a per-sample image may not fit VMEM; an extra
    # output-row tile axis (with an overlapping input window) would be needed then.
    y = pl.pallas_call(
        kernel,
        out_shape=jax.ShapeDtypeStruct((B, Ho, Wo, Cout), compute_dtype),
        grid_spec=pltpu.PrefetchScalarGridSpec(
            num_scalar_prefetch=0,
            grid=(Gp, B),  # weights resident across the fast batch axis
            in_specs=[
                pl.BlockSpec((None, Hp, Wp, Cin_pack),
                             lambda gp, b: (b, 0, 0, gp)),
                pl.BlockSpec((None, KH * KW, Cin_pack, Cout_pack),
                             lambda gp, b: (gp, 0, 0, 0)),
                pl.BlockSpec((None, 1, Cout_pack),
                             lambda gp, b: (gp, 0, 0)),
            ],
            out_specs=pl.BlockSpec((None, Ho, Wo, Cout_pack),
                                   lambda gp, b: (b, 0, 0, gp)),
        ),
        compiler_params=pltpu.CompilerParams(
            dimension_semantics=("parallel", "parallel"),
            vmem_limit_bytes=limit),
    )(xp, w_packed, b_packed)

    if not fuse_shuffle:
        y = channel_shuffle(y, shuffle_groups)
    return y


def batchnorm2d(x_nhwc, gamma, beta, eps=1e-5):
    """Training-mode BatchNorm2d: row-tiled sum/sumsq reduction + tiled normalize."""
    B, H, W, C = x_nhwc.shape
    rows = B * H * W
    x2 = x_nhwc.reshape(rows, C)
    tr = _pick_row_tile(rows)
    n_tiles = rows // tr
    blk_bytes = tr * C * x2.dtype.itemsize
    limit = _vmem_limit(4 * blk_bytes + 4 * tr * C + (4 << 20))

    sums, ssqs = pl.pallas_call(
        _bn_stats_kernel,
        out_shape=(jax.ShapeDtypeStruct((1, C), jnp.float32),
                   jax.ShapeDtypeStruct((1, C), jnp.float32)),
        grid_spec=pltpu.PrefetchScalarGridSpec(
            num_scalar_prefetch=0,
            grid=(n_tiles,),
            in_specs=[pl.BlockSpec((tr, C), lambda r: (r, 0))],
            out_specs=[pl.BlockSpec((1, C), lambda r: (0, 0)),
                       pl.BlockSpec((1, C), lambda r: (0, 0))],
        ),
        compiler_params=pltpu.CompilerParams(
            dimension_semantics=("arbitrary",), vmem_limit_bytes=limit),
    )(x2)

    mean = sums[0] / rows
    var = jnp.maximum(ssqs[0] / rows - mean * mean, 0.0)
    inv = jax.lax.rsqrt(var + eps)
    scale = (gamma * inv).astype(jnp.float32).reshape(1, C)
    shift = (beta - mean * gamma * inv).astype(jnp.float32).reshape(1, C)

    y = pl.pallas_call(
        _bn_apply_kernel,
        out_shape=jax.ShapeDtypeStruct((rows, C), jnp.float32),
        grid_spec=pltpu.PrefetchScalarGridSpec(
            num_scalar_prefetch=0,
            grid=(n_tiles,),
            in_specs=[pl.BlockSpec((tr, C), lambda r: (r, 0)),
                      pl.BlockSpec((1, C), lambda r: (0, 0)),
                      pl.BlockSpec((1, C), lambda r: (0, 0))],
            out_specs=pl.BlockSpec((tr, C), lambda r: (r, 0)),
        ),
        compiler_params=pltpu.CompilerParams(
            dimension_semantics=("parallel",), vmem_limit_bytes=limit),
    )(x2, scale, shift)
    return y.reshape(B, H, W, C)


def butterfly_conv2d_forward(x_nchw, params, compute_dtype=jnp.bfloat16):
    """Full butterfly Conv2d forward: sequence of Conv2dSublayer (grouped conv +
    shuffle), then BatchNorm2d. NCHW in / NCHW out (PyTorch convention)."""
    x = jnp.transpose(x_nchw, (0, 2, 3, 1)).astype(compute_dtype)  # NCHW -> NHWC
    for (w, stride, padding, shuffle_groups, bias) in params["layers"]:
        x = conv2d_sublayer(x, w, stride, padding, shuffle_groups, bias,
                            compute_dtype=compute_dtype)
    x = batchnorm2d(x, params["gamma"], params["beta"])
    return jnp.transpose(x, (0, 3, 1, 2))  # NHWC -> NCHW


# ----------------------------------------------------------------------------
# Parameter construction (deterministic, mirrors Conv2d.__init__)
# ----------------------------------------------------------------------------
def make_butterfly_params(key, in_channels, out_channels, kernel_size,
                          stride=1, padding=0, min_bfly_size=4, bias=True):
    group_counts = get_group_counts(in_channels, out_channels, min_bfly_size)
    layers = []
    if len(group_counts) == 0:
        # Fallback: ordinary (groups=1) convolution with bias.
        key, k1, k2 = jax.random.split(key, 3)
        fan_in = in_channels * kernel_size * kernel_size
        w = jax.random.normal(
            k1, (1, kernel_size, kernel_size, in_channels, out_channels),
            dtype=jnp.float32) * (1.0 / math.sqrt(fan_in))
        b = (jax.random.normal(k2, (out_channels,), dtype=jnp.float32)
             * (1.0 / math.sqrt(fan_in))) if bias else None
        layers.append((w, stride, padding, 1, b))
    else:
        silo_size = 1
        current_channels = in_channels
        pad_cur, stride_cur = padding, stride
        for gc in group_counts:
            assert current_channels % gc == 0 and out_channels % gc == 0
            out_group_size = out_channels // gc
            silo_size *= out_group_size
            cin_g = current_channels // gc
            key, k1 = jax.random.split(key)
            fan_in = cin_g * kernel_size * kernel_size
            w = jax.random.normal(
                k1, (gc, kernel_size, kernel_size, cin_g, out_group_size),
                dtype=jnp.float32) * (1.0 / math.sqrt(fan_in))
            assert out_channels % silo_size == 0
            shuffle_groups = out_channels // silo_size
            layers.append((w, stride_cur, pad_cur, shuffle_groups, None))
            current_channels = out_channels
            pad_cur = kernel_size // 2
            stride_cur = 1
    gamma = jnp.ones((out_channels,), dtype=jnp.float32)   # BatchNorm2d weight init
    beta = jnp.zeros((out_channels,), dtype=jnp.float32)   # BatchNorm2d bias init
    return {"layers": layers, "gamma": gamma, "beta": beta}


# ----------------------------------------------------------------------------
# Pure-JAX reference (for self-consistency check, same bf16 operand precision)
# ----------------------------------------------------------------------------
def reference_forward(x_nchw, params, compute_dtype=jnp.bfloat16):
    x = jnp.transpose(x_nchw, (0, 2, 3, 1)).astype(compute_dtype)
    for (w, stride, padding, shuffle_groups, bias) in params["layers"]:
        G, KH, KW, Cin_g, Cout_g = w.shape
        w_hwio = (w.transpose(1, 2, 3, 0, 4)
                   .reshape(KH, KW, Cin_g, G * Cout_g).astype(compute_dtype))
        y = jax.lax.conv_general_dilated(
            x, w_hwio, (stride, stride),
            [(padding, padding), (padding, padding)],
            dimension_numbers=("NHWC", "HWIO", "NHWC"),
            feature_group_count=G,
            preferred_element_type=jnp.float32)
        if bias is not None:
            y = y + bias.reshape(1, 1, 1, -1)
        y = channel_shuffle(y, shuffle_groups)
        x = y.astype(compute_dtype)
    xf = x.astype(jnp.float32)
    mean = jnp.mean(xf, axis=(0, 1, 2), keepdims=True)
    var = jnp.mean((xf - mean) ** 2, axis=(0, 1, 2), keepdims=True)
    out = ((xf - mean) * jax.lax.rsqrt(var + 1e-5)
           * params["gamma"].reshape(1, 1, 1, -1)
           + params["beta"].reshape(1, 1, 1, -1))
    return jnp.transpose(out, (0, 3, 1, 2))


# ----------------------------------------------------------------------------
if __name__ == "__main__":
    key = jax.random.PRNGKey(0)
    key, kx, kp = jax.random.split(key, 3)

    # Small config: butterfly path -> get_group_counts(16, 16, min=4) == [4, 4]
    B, Cin, H, W = 2, 16, 16, 16
    Cout, ksize, stride, padding = 16, 3, 1, 1

    x = jax.random.normal(kx, (B, Cin, H, W), dtype=jnp.float32)  # NCHW, like PyTorch
    params = make_butterfly_params(kp, Cin, Cout, ksize,
                                   stride=stride, padding=padding,
                                   min_bfly_size=4, bias=True)

    fwd = jax.jit(lambda x: butterfly_conv2d_forward(x, params))
    out = fwd(x)
    jax.block_until_ready(out)

    ref = reference_forward(x, params)
    if not jnp.allclose(out, ref, rtol=2e-2, atol=2e-2):
        raise RuntimeError("Pallas butterfly conv does not match JAX reference")

    # TODO(synk): BatchNorm running_mean/running_var buffer updates are training-side
    # state and do not affect the forward output; not emitted here.
    print("KERNEL_OK")
</pallas_src>

<mosaic_0001>
module attributes {stable_mosaic.version = 11 : i64} {
  func.func @_butterfly_conv_kernel(%arg0: i32, %arg1: i32, %arg2: memref<1x18x18x16xbf16, #tpu.memory_space<vmem>>, %arg3: memref<1x9x16x16xbf16, #tpu.memory_space<vmem>>, %arg4: memref<1x1x16xf32, #tpu.memory_space<vmem>>, %arg5: memref<1x16x16x16xbf16, #tpu.memory_space<vmem>>) attributes {dimension_semantics = [#tpu.dimension_semantics<parallel>, #tpu.dimension_semantics<parallel>], iteration_bounds = array<i64: 1, 2>, scalar_prefetch = 0 : i64, scratch_operands = 0 : i64, tpu.core_type = #tpu.core_type<tc>, window_params = [{transform_indices = @transform_0, window_bounds = array<i64: 1, 18, 18, 16>}, {transform_indices = @transform_1, window_bounds = array<i64: 1, 9, 16, 16>}, {transform_indices = @transform_2, window_bounds = array<i64: 1, 1, 16>}, {transform_indices = @transform_3, window_bounds = array<i64: 1, 16, 16, 16>}]} {
    %cst = arith.constant 0.000000e+00 : f32
    %0 = vector.broadcast %cst : f32 to vector<256x16xf32>
    %c0 = arith.constant 0 : index
    %c0_0 = arith.constant 0 : index
    %c0_1 = arith.constant 0 : index
    %c0_2 = arith.constant 0 : index
    %1 = vector.load %arg2[%c0, %c0_0, %c0_1, %c0_2] : memref<1x18x18x16xbf16, #tpu.memory_space<vmem>>, vector<1x16x16x16xbf16>
    %2 = vector.shape_cast %1 : vector<1x16x16x16xbf16> to vector<16x16x16xbf16>
    %3 = vector.shape_cast %2 : vector<16x16x16xbf16> to vector<256x16xbf16>
    %c0_3 = arith.constant 0 : index
    %c0_4 = arith.constant 0 : index
    %c0_5 = arith.constant 0 : index
    %c0_6 = arith.constant 0 : index
    %4 = vector.load %arg3[%c0_3, %c0_4, %c0_5, %c0_6] : memref<1x9x16x16xbf16, #tpu.memory_space<vmem>>, vector<1x1x16x16xbf16>
    %5 = vector.shape_cast %4 : vector<1x1x16x16xbf16> to vector<16x16xbf16>
    %cst_7 = arith.constant dense<0.000000e+00> : vector<256x16xf32>
    %6 = tpu.matmul %3, %5, %cst_7 {dimension_numbers = #tpu.dot_dimension_numbers<[1], [0], [0], [1], [0, 0, 1, 1], [], []>} : vector<256x16xbf16>, vector<16x16xbf16>, vector<256x16xf32> -> vector<256x16xf32>
    %7 = arith.addf %0, %6 : vector<256x16xf32>
    %c0_8 = arith.constant 0 : index
    %c0_9 = arith.constant 0 : index
    %c1 = arith.constant 1 : index
    %c0_10 = arith.constant 0 : index
    %8 = vector.load %arg2[%c0_8, %c0_9, %c1, %c0_10] : memref<1x18x18x16xbf16, #tpu.memory_space<vmem>>, vector<1x16x16x16xbf16>
    %9 = vector.shape_cast %8 : vector<1x16x16x16xbf16> to vector<16x16x16xbf16>
    %10 = vector.shape_cast %9 : vector<16x16x16xbf16> to vector<256x16xbf16>
    %c0_11 = arith.constant 0 : index
    %c1_12 = arith.constant 1 : index
    %c0_13 = arith.constant 0 : index
    %c0_14 = arith.constant 0 : index
    %11 = vector.load %arg3[%c0_11, %c1_12, %c0_13, %c0_14] : memref<1x9x16x16xbf16, #tpu.memory_space<vmem>>, vector<1x1x16x16xbf16>
    %12 = vector.shape_cast %11 : vector<1x1x16x16xbf16> to vector<16x16xbf16>
    %cst_15 = arith.constant dense<0.000000e+00> : vector<256x16xf32>
    %13 = tpu.matmul %10, %12, %cst_15 {dimension_numbers = #tpu.dot_dimension_numbers<[1], [0], [0], [1], [0, 0, 1, 1], [], []>} : vector<256x16xbf16>, vector<16x16xbf16>, vector<256x16xf32> -> vector<256x16xf32>
    %14 = arith.addf %7, %13 : vector<256x16xf32>
    %c0_16 = arith.constant 0 : index
    %c0_17 = arith.constant 0 : index
    %c2 = arith.constant 2 : index
    %c0_18 = arith.constant 0 : index
    %15 = vector.load %arg2[%c0_16, %c0_17, %c2, %c0_18] : memref<1x18x18x16xbf16, #tpu.memory_space<vmem>>, vector<1x16x16x16xbf16>
    %16 = vector.shape_cast %15 : vector<1x16x16x16xbf16> to vector<16x16x16xbf16>
    %17 = vector.shape_cast %16 : vector<16x16x16xbf16> to vector<256x16xbf16>
    %c0_19 = arith.constant 0 : index
    %c2_20 = arith.constant 2 : index
    %c0_21 = arith.constant 0 : index
    %c0_22 = arith.constant 0 : index
    %18 = vector.load %arg3[%c0_19, %c2_20, %c0_21, %c0_22] : memref<1x9x16x16xbf16, #tpu.memory_space<vmem>>, vector<1x1x16x16xbf16>
    %19 = vector.shape_cast %18 : vector<1x1x16x16xbf16> to vector<16x16xbf16>
    %cst_23 = arith.constant dense<0.000000e+00> : vector<256x16xf32>
    %20 = tpu.matmul %17, %19, %cst_23 {dimension_numbers = #tpu.dot_dimension_numbers<[1], [0], [0], [1], [0, 0, 1, 1], [], []>} : vector<256x16xbf16>, vector<16x16xbf16>, vector<256x16xf32> -> vector<256x16xf32>
    %21 = arith.addf %14, %20 : vector<256x16xf32>
    %c0_24 = arith.constant 0 : index
    %c1_25 = arith.constant 1 : index
    %c0_26 = arith.constant 0 : index
    %c0_27 = arith.constant 0 : index
    %22 = vector.load %arg2[%c0_24, %c1_25, %c0_26, %c0_27] : memref<1x18x18x16xbf16, #tpu.memory_space<vmem>>, vector<1x16x16x16xbf16>
    %23 = vector.shape_cast %22 : vector<1x16x16x16xbf16> to vector<16x16x16xbf16>
    %24 = vector.shape_cast %23 : vector<16x16x16xbf16> to vector<256x16xbf16>
    %c0_28 = arith.constant 0 : index
    %c3 = arith.constant 3 : index
    %c0_29 = arith.constant 0 : index
    %c0_30 = arith.constant 0 : index
    %25 = vector.load %arg3[%c0_28, %c3, %c0_29, %c0_30] : memref<1x9x16x16xbf16, #tpu.memory_space<vmem>>, vector<1x1x16x16xbf16>
    %26 = vector.shape_cast %25 : vector<1x1x16x16xbf16> to vector<16x16xbf16>
    %cst_31 = arith.constant dense<0.000000e+00> : vector<256x16xf32>
    %27 = tpu.matmul %24, %26, %cst_31 {dimension_numbers = #tpu.dot_dimension_numbers<[1], [0], [0], [1], [0, 0, 1, 1], [], []>} : vector<256x16xbf16>, vector<16x16xbf16>, vector<256x16xf32> -> vector<256x16xf32>
    %28 = arith.addf %21, %27 : vector<256x16xf32>
    %c0_32 = arith.constant 0 : index
    %c1_33 = arith.constant 1 : index
    %c1_34 = arith.constant 1 : index
    %c0_35 = arith.constant 0 : index
    %29 = vector.load %arg2[%c0_32, %c1_33, %c1_34, %c0_35] : memref<1x18x18x16xbf16, #tpu.memory_space<vmem>>, vector<1x16x16x16xbf16>
    %30 = vector.shape_cast %29 : vector<1x16x16x16xbf16> to vector<16x16x16xbf16>
    %31 = vector.shape_cast %30 : vector<16x16x16xbf16> to vector<256x16xbf16>
    %c0_36 = arith.constant 0 : index
    %c4 = arith.constant 4 : index
    %c0_37 = arith.constant 0 : index
    %c0_38 = arith.constant 0 : index
    %32 = vector.load %arg3[%c0_36, %c4, %c0_37, %c0_38] : memref<1x9x16x16xbf16, #tpu.memory_space<vmem>>, vector<1x1x16x16xbf16>
    %33 = vector.shape_cast %32 : vector<1x1x16x16xbf16> to vector<16x16xbf16>
    %cst_39 = arith.constant dense<0.000000e+00> : vector<256x16xf32>
    %34 = tpu.matmul %31, %33, %cst_39 {dimension_numbers = #tpu.dot_dimension_numbers<[1], [0], [0], [1], [0, 0, 1, 1], [], []>} : vector<256x16xbf16>, vector<16x16xbf16>, vector<256x16xf32> -> vector<256x16xf32>
    %35 = arith.addf %28, %34 : vector<256x16xf32>
    %c0_40 = arith.constant 0 : index
    %c1_41 = arith.constant 1 : index
    %c2_42 = arith.constant 2 : index
    %c0_43 = arith.constant 0 : index
    %36 = vector.load %arg2[%c0_40, %c1_41, %c2_42, %c0_43] : memref<1x18x18x16xbf16, #tpu.memory_space<vmem>>, vector<1x16x16x16xbf16>
    %37 = vector.shape_cast %36 : vector<1x16x16x16xbf16> to vector<16x16x16xbf16>
    %38 = vector.shape_cast %37 : vector<16x16x16xbf16> to vector<256x16xbf16>
    %c0_44 = arith.constant 0 : index
    %c5 = arith.constant 5 : index
    %c0_45 = arith.constant 0 : index
    %c0_46 = arith.constant 0 : index
    %39 = vector.load %arg3[%c0_44, %c5, %c0_45, %c0_46] : memref<1x9x16x16xbf16, #tpu.memory_space<vmem>>, vector<1x1x16x16xbf16>
    %40 = vector.shape_cast %39 : vector<1x1x16x16xbf16> to vector<16x16xbf16>
    %cst_47 = arith.constant dense<0.000000e+00> : vector<256x16xf32>
    %41 = tpu.matmul %38, %40, %cst_47 {dimension_numbers = #tpu.dot_dimension_numbers<[1], [0], [0], [1], [0, 0, 1, 1], [], []>} : vector<256x16xbf16>, vector<16x16xbf16>, vector<256x16xf32> -> vector<256x16xf32>
    %42 = arith.addf %35, %41 : vector<256x16xf32>
    %c0_48 = arith.constant 0 : index
    %c2_49 = arith.constant 2 : index
    %c0_50 = arith.constant 0 : index
    %c0_51 = arith.constant 0 : index
    %43 = vector.load %arg2[%c0_48, %c2_49, %c0_50, %c0_51] : memref<1x18x18x16xbf16, #tpu.memory_space<vmem>>, vector<1x16x16x16xbf16>
    %44 = vector.shape_cast %43 : vector<1x16x16x16xbf16> to vector<16x16x16xbf16>
    %45 = vector.shape_cast %44 : vector<16x16x16xbf16> to vector<256x16xbf16>
    %c0_52 = arith.constant 0 : index
    %c6 = arith.constant 6 : index
    %c0_53 = arith.constant 0 : index
    %c0_54 = arith.constant 0 : index
    %46 = vector.load %arg3[%c0_52, %c6, %c0_53, %c0_54] : memref<1x9x16x16xbf16, #tpu.memory_space<vmem>>, vector<1x1x16x16xbf16>
    %47 = vector.shape_cast %46 : vector<1x1x16x16xbf16> to vector<16x16xbf16>
    %cst_55 = arith.constant dense<0.000000e+00> : vector<256x16xf32>
    %48 = tpu.matmul %45, %47, %cst_55 {dimension_numbers = #tpu.dot_dimension_numbers<[1], [0], [0], [1], [0, 0, 1, 1], [], []>} : vector<256x16xbf16>, vector<16x16xbf16>, vector<256x16xf32> -> vector<256x16xf32>
    %49 = arith.addf %42, %48 : vector<256x16xf32>
    %c0_56 = arith.constant 0 : index
    %c2_57 = arith.constant 2 : index
    %c1_58 = arith.constant 1 : index
    %c0_59 = arith.constant 0 : index
    %50 = vector.load %arg2[%c0_56, %c2_57, %c1_58, %c0_59] : memref<1x18x18x16xbf16, #tpu.memory_space<vmem>>, vector<1x16x16x16xbf16>
    %51 = vector.shape_cast %50 : vector<1x16x16x16xbf16> to vector<16x16x16xbf16>
    %52 = vector.shape_cast %51 : vector<16x16x16xbf16> to vector<256x16xbf16>
    %c0_60 = arith.constant 0 : index
    %c7 = arith.constant 7 : index
    %c0_61 = arith.constant 0 : index
    %c0_62 = arith.constant 0 : index
    %53 = vector.load %arg3[%c0_60, %c7, %c0_61, %c0_62] : memref<1x9x16x16xbf16, #tpu.memory_space<vmem>>, vector<1x1x16x16xbf16>
    %54 = vector.shape_cast %53 : vector<1x1x16x16xbf16> to vector<16x16xbf16>
    %cst_63 = arith.constant dense<0.000000e+00> : vector<256x16xf32>
    %55 = tpu.matmul %52, %54, %cst_63 {dimension_numbers = #tpu.dot_dimension_numbers<[1], [0], [0], [1], [0, 0, 1, 1], [], []>} : vector<256x16xbf16>, vector<16x16xbf16>, vector<256x16xf32> -> vector<256x16xf32>
    %56 = arith.addf %49, %55 : vector<256x16xf32>
    %c0_64 = arith.constant 0 : index
    %c2_65 = arith.constant 2 : index
    %c2_66 = arith.constant 2 : index
    %c0_67 = arith.constant 0 : index
    %57 = vector.load %arg2[%c0_64, %c2_65, %c2_66, %c0_67] : memref<1x18x18x16xbf16, #tpu.memory_space<vmem>>, vector<1x16x16x16xbf16>
    %58 = vector.shape_cast %57 : vector<1x16x16x16xbf16> to vector<16x16x16xbf16>
    %59 = vector.shape_cast %58 : vector<16x16x16xbf16> to vector<256x16xbf16>
    %c0_68 = arith.constant 0 : index
    %c8 = arith.constant 8 : index
    %c0_69 = arith.constant 0 : index
    %c0_70 = arith.constant 0 : index
    %60 = vector.load %arg3[%c0_68, %c8, %c0_69, %c0_70] : memref<1x9x16x16xbf16, #tpu.memory_space<vmem>>, vector<1x1x16x16xbf16>
    %61 = vector.shape_cast %60 : vector<1x1x16x16xbf16> to vector<16x16xbf16>
    %cst_71 = arith.constant dense<0.000000e+00> : vector<256x16xf32>
    %62 = tpu.matmul %59, %61, %cst_71 {dimension_numbers = #tpu.dot_dimension_numbers<[1], [0], [0], [1], [0, 0, 1, 1], [], []>} : vector<256x16xbf16>, vector<16x16xbf16>, vector<256x16xf32> -> vector<256x16xf32>
    %63 = arith.addf %56, %62 : vector<256x16xf32>
    %c0_72 = arith.constant 0 : index
    %c0_73 = arith.constant 0 : index
    %c0_74 = arith.constant 0 : index
    %64 = vector.load %arg4[%c0_72, %c0_73, %c0_74] : memref<1x1x16xf32, #tpu.memory_space<vmem>>, vector<1x1x16xf32>
    %65 = vector.shape_cast %64 : vector<1x1x16xf32> to vector<1x16xf32>
    %66 = vector.broadcast %65 : vector<1x16xf32> to vector<256x16xf32>
    %67 = arith.addf %63, %66 : vector<256x16xf32>
    %68 = vector.shape_cast %67 : vector<256x16xf32> to vector<16x16x16xf32>
    %69 = arith.truncf %68 : vector<16x16x16xf32> to vector<16x16x16xbf16>
    %c0_75 = arith.constant 0 : index
    %c0_76 = arith.constant 0 : index
    %c0_77 = arith.constant 0 : index
    %c0_78 = arith.constant 0 : index
    %70 = vector.load %arg5[%c0_75, %c0_76, %c0_77, %c0_78] : memref<1x16x16x16xbf16, #tpu.memory_space<vmem>>, vector<1x16x16x16xbf16>
    %71 = vector.shape_cast %70 : vector<1x16x16x16xbf16> to vector<16x16x16xbf16>
    %72 = vector.shape_cast %69 : vector<16x16x16xbf16> to vector<1x16x16x16xbf16>
    tpu.vector_store %arg5[%c0_75, %c0_76, %c0_77, %c0_78], %72 {strides = array<i32>} : memref<1x16x16x16xbf16, #tpu.memory_space<vmem>>, vector<1x16x16x16xbf16>,
    return
  }
  func.func @transform_0(%arg0: i32, %arg1: i32) -> (i32, i32, i32, i32) {
    %c0_i32 = arith.constant 0 : i32
    %c0_i32_0 = arith.constant 0 : i32
    %c0_i32_1 = arith.constant 0 : i32
    return %arg1, %c0_i32, %c0_i32_0, %arg0 : i32, i32, i32, i32
  }
  func.func @transform_1(%arg0: i32, %arg1: i32) -> (i32, i32, i32, i32) {
    %c0_i32 = arith.constant 0 : i32
    %c0_i32_0 = arith.constant 0 : i32
    %c0_i32_1 = arith.constant 0 : i32
    %c0_i32_2 = arith.constant 0 : i32
    return %arg0, %c0_i32, %c0_i32_0, %c0_i32_1 : i32, i32, i32, i32
  }
  func.func @transform_2(%arg0: i32, %arg1: i32) -> (i32, i32, i32) {
    %c0_i32 = arith.constant 0 : i32
    %c0_i32_0 = arith.constant 0 : i32
    %c0_i32_1 = arith.constant 0 : i32
    return %arg0, %c0_i32, %c0_i32_0 : i32, i32, i32
  }
  func.func @transform_3(%arg0: i32, %arg1: i32) -> (i32, i32, i32, i32) {
    %c0_i32 = arith.constant 0 : i32
    %c0_i32_0 = arith.constant 0 : i32
    %c0_i32_1 = arith.constant 0 : i32
    return %arg1, %c0_i32, %c0_i32_0, %arg0 : i32, i32, i32, i32
  }
}

module attributes {stable_mosaic.version = 11 : i64} {
  func.func @_bn_stats_kernel(%arg0: i32, %arg1: memref<256x16xbf16, #tpu.memory_space<vmem>>, %arg2: memref<1x16xf32, #tpu.memory_space<vmem>>, %arg3: memref<1x16xf32, #tpu.memory_space<vmem>>) attributes {dimension_semantics = [#tpu.dimension_semantics<arbitrary>], iteration_bounds = array<i64: 2>, scalar_prefetch = 0 : i64, scratch_operands = 0 : i64, tpu.core_type = #tpu.core_type<tc>, window_params = [{transform_indices = @transform_0, window_bounds = array<i64: 256, 16>}, {pipeline_mode = #tpu.pipeline_mode<synchronous>, transform_indices = @transform_1, window_bounds = array<i64: 1, 16>}, {pipeline_mode = #tpu.pipeline_mode<synchronous>, transform_indices = @transform_2, window_bounds = array<i64: 1, 16>}]} {
    %c0_i32 = arith.constant 0 : i32
    %0 = arith.cmpi eq, %arg0, %c0_i32 : i32
    %1 = arith.extui %0 : i1 to i32
    %c0_i32_0 = arith.constant 0 : i32
    %2 = arith.cmpi ne, %1, %c0_i32_0 : i32
    scf.if %2 {
      %cst_11 = arith.constant 0.000000e+00 : f32
      %16 = vector.broadcast %cst_11 : f32 to vector<1x16xf32>
      %c0_12 = arith.constant 0 : index
      %c0_13 = arith.constant 0 : index
      %17 = vector.load %arg2[%c0_12, %c0_13] : memref<1x16xf32, #tpu.memory_space<vmem>>, vector<1x16xf32>
      tpu.vector_store %arg2[%c0_12, %c0_13], %16 {strides = array<i32>} : memref<1x16xf32, #tpu.memory_space<vmem>>, vector<1x16xf32>,
      %cst_14 = arith.constant 0.000000e+00 : f32
      %18 = vector.broadcast %cst_14 : f32 to vector<1x16xf32>
      %c0_15 = arith.constant 0 : index
      %c0_16 = arith.constant 0 : index
      %19 = vector.load %arg3[%c0_15, %c0_16] : memref<1x16xf32, #tpu.memory_space<vmem>>, vector<1x16xf32>
      tpu.vector_store %arg3[%c0_15, %c0_16], %18 {strides = array<i32>} : memref<1x16xf32, #tpu.memory_space<vmem>>, vector<1x16xf32>,
    } else {
    }
    %c0 = arith.constant 0 : index
    %c0_1 = arith.constant 0 : index
    %3 = vector.load %arg1[%c0, %c0_1] : memref<256x16xbf16, #tpu.memory_space<vmem>>, vector<256x16xbf16>
    %4 = arith.extf %3 : vector<256x16xbf16> to vector<256x16xf32>
    %c0_2 = arith.constant 0 : index
    %c0_3 = arith.constant 0 : index
    %5 = vector.load %arg2[%c0_2, %c0_3] : memref<1x16xf32, #tpu.memory_space<vmem>>, vector<1x16xf32>
    %cst = arith.constant dense<0.000000e+00> : vector<16xf32>
    %6 = vector.multi_reduction <add>, %4, %cst [0] : vector<256x16xf32> to vector<16xf32>
    %7 = vector.shape_cast %6 : vector<16xf32> to vector<1x16xf32>
    %8 = arith.addf %5, %7 : vector<1x16xf32>
    %c0_4 = arith.constant 0 : index
    %c0_5 = arith.constant 0 : index
    %9 = vector.load %arg2[%c0_4, %c0_5] : memref<1x16xf32, #tpu.memory_space<vmem>>, vector<1x16xf32>
    tpu.vector_store %arg2[%c0_4, %c0_5], %8 {strides = array<i32>} : memref<1x16xf32, #tpu.memory_space<vmem>>, vector<1x16xf32>,
    %c0_6 = arith.constant 0 : index
    %c0_7 = arith.constant 0 : index
    %10 = vector.load %arg3[%c0_6, %c0_7] : memref<1x16xf32, #tpu.memory_space<vmem>>, vector<1x16xf32>
    %11 = arith.mulf %4, %4 : vector<256x16xf32>
    %cst_8 = arith.constant dense<0.000000e+00> : vector<16xf32>
    %12 = vector.multi_reduction <add>, %11, %cst_8 [0] : vector<256x16xf32> to vector<16xf32>
    %13 = vector.shape_cast %12 : vector<16xf32> to vector<1x16xf32>
    %14 = arith.addf %10, %13 : vector<1x16xf32>
    %c0_9 = arith.constant 0 : index
    %c0_10 = arith.constant 0 : index
    %15 = vector.load %arg3[%c0_9, %c0_10] : memref<1x16xf32, #tpu.memory_space<vmem>>, vector<1x16xf32>
    tpu.vector_store %arg3[%c0_9, %c0_10], %14 {strides = array<i32>} : memref<1x16xf32, #tpu.memory_space<vmem>>, vector<1x16xf32>,
    return
  }
  func.func @transform_0(%arg0: i32) -> (i32, i32) {
    %c0_i32 = arith.constant 0 : i32
    %c0_i32_0 = arith.constant 0 : i32
    return %arg0, %c0_i32 : i32, i32
  }
  func.func @transform_1(%arg0: i32) -> (i32, i32) {
    %c0_i32 = arith.constant 0 : i32
    %c0_i32_0 = arith.constant 0 : i32
    %c0_i32_1 = arith.constant 0 : i32
    return %c0_i32, %c0_i32_0 : i32, i32
  }
  func.func @transform_2(%arg0: i32) -> (i32, i32) {
    %c0_i32 = arith.constant 0 : i32
    %c0_i32_0 = arith.constant 0 : i32
    %c0_i32_1 = arith.constant 0 : i32
    return %c0_i32, %c0_i32_0 : i32, i32
  }
}

module attributes {stable_mosaic.version = 11 : i64} {
  func.func @_bn_apply_kernel(%arg0: i32, %arg1: memref<256x16xbf16, #tpu.memory_space<vmem>>, %arg2: memref<1x16xf32, #tpu.memory_space<vmem>>, %arg3: memref<1x16xf32, #tpu.memory_space<vmem>>, %arg4: memref<256x16xf32, #tpu.memory_space<vmem>>) attributes {dimension_semantics = [#tpu.dimension_semantics<parallel>], iteration_bounds = array<i64: 2>, scalar_prefetch = 0 : i64, scratch_operands = 0 : i64, tpu.core_type = #tpu.core_type<tc>, window_params = [{transform_indices = @transform_0, window_bounds = array<i64: 256, 16>}, {pipeline_mode = #tpu.pipeline_mode<synchronous>, transform_indices = @transform_1, window_bounds = array<i64: 1, 16>}, {pipeline_mode = #tpu.pipeline_mode<synchronous>, transform_indices = @transform_2, window_bounds = array<i64: 1, 16>}, {transform_indices = @transform_3, window_bounds = array<i64: 256, 16>}]} {
    %c0 = arith.constant 0 : index
    %c0_0 = arith.constant 0 : index
    %0 = vector.load %arg1[%c0, %c0_0] : memref<256x16xbf16, #tpu.memory_space<vmem>>, vector<256x16xbf16>
    %1 = arith.extf %0 : vector<256x16xbf16> to vector<256x16xf32>
    %c0_1 = arith.constant 0 : index
    %c0_2 = arith.constant 0 : index
    %2 = vector.load %arg2[%c0_1, %c0_2] : memref<1x16xf32, #tpu.memory_space<vmem>>, vector<1x16xf32>
    %3 = vector.broadcast %2 : vector<1x16xf32> to vector<256x16xf32>
    %4 = arith.mulf %1, %3 : vector<256x16xf32>
    %c0_3 = arith.constant 0 : index
    %c0_4 = arith.constant 0 : index
    %5 = vector.load %arg3[%c0_3, %c0_4] : memref<1x16xf32, #tpu.memory_space<vmem>>, vector<1x16xf32>
    %6 = vector.broadcast %5 : vector<1x16xf32> to vector<256x16xf32>
    %7 = arith.addf %4, %6 : vector<256x16xf32>
    %c0_5 = arith.constant 0 : index
    %c0_6 = arith.constant 0 : index
    %8 = vector.load %arg4[%c0_5, %c0_6] : memref<256x16xf32, #tpu.memory_space<vmem>>, vector<256x16xf32>
    tpu.vector_store %arg4[%c0_5, %c0_6], %7 {strides = array<i32>} : memref<256x16xf32, #tpu.memory_space<vmem>>, vector<256x16xf32>,
    return
  }
  func.func @transform_0(%arg0: i32) -> (i32, i32) {
    %c0_i32 = arith.constant 0 : i32
    %c0_i32_0 = arith.constant 0 : i32
    return %arg0, %c0_i32 : i32, i32
  }
  func.func @transform_1(%arg0: i32) -> (i32, i32) {
    %c0_i32 = arith.constant 0 : i32
    %c0_i32_0 = arith.constant 0 : i32
    %c0_i32_1 = arith.constant 0 : i32
    return %c0_i32, %c0_i32_0 : i32, i32
  }
  func.func @transform_2(%arg0: i32) -> (i32, i32) {
    %c0_i32 = arith.constant 0 : i32
    %c0_i32_0 = arith.constant 0 : i32
    %c0_i32_1 = arith.constant 0 : i32
    return %c0_i32, %c0_i32_0 : i32, i32
  }
  func.func @transform_3(%arg0: i32) -> (i32, i32) {
    %c0_i32 = arith.constant 0 : i32
    %c0_i32_0 = arith.constant 0 : i32
    return %arg0, %c0_i32 : i32, i32
  }
}

</mosaic_0001>

<bundles_post_ra>
// kernel: _lambda_.6
= control target key start
LH: loop header
LB: loop body
LE: loop exit
PB: predicated region body
PF: predicated region fallthrough
CT: control target
= control target key end

     0   :  { %s533_s9 = smov 0   ;;  %s649_s0 = inlined_call_operand.vmem [shape: bf16[512,16], index: 0, kind: input, shape index: {}]   ;;  %s650_s1 = inlined_call_operand.vmem [shape: f32[1,16], index: 1, kind: output, shape index: {0}]   ;;  %s651_s2 = inlined_call_operand.vmem [shape: f32[1,16], index: 2, kind: output, shape index: {1}]  }
   0x1 LB: > { %s412_s10 = sadd.s32 4294967295, %s515_s9   ;;  %p415_p0 = scmp.ge.s32.totalorder %s515_s9, 1  ;;  %s515_s9 = sphi %s533_s9, %s13_s9  }
   0x2   : > { %p106_p1 = scmp.lt.s32.totalorder %s515_s9, 3 }
   0x4   : > { %p107_p2 = pnand %p415_p0, %p106_p1 }
   0x5   : > { %s416_s11 = sshll.u32 (!%p107_p2), %s412_s10, 5  ;;  %p418_p4 = scmp.ne.s32.totalorder (!%p107_p2), %s412_s10, 0 }
   0x6   : > { %110 = sbr.rel (%p107_p2) target bundleno = 107 (0x6b), region = 24  ;;  %p124_p3 = scmp.lt.s32.totalorder (!%p107_p2), %s416_s11, 63 }
   0xd   : > { %s653_s11 = smov (!%p124_p3, %s416_s11), 63  ;;  %132 = sbr.rel (%p418_p4) target bundleno = 20 (0x14), region = 28 }
   0xe   : > { %s417_s12 = sshll.u32 %s653_s11, 2  ;;  %vm133_vm0 = vcmask (!%p418_p4), 122880   ;;  %v517_v0 = vmov (!%p418_p4), 0.0  }
   0xf   : > { %s544_s15 = scalar_lea.vmem %s649_s0, %s417_s12  ;;  %134 = vst.msk [vmem:[%s650_s1] sm:$0x1] (!%p418_p4), %vm133_vm0, %v517_v0  ;;  %135 = vst.msk [vmem:[%s651_s2] sm:$0x1] (!%p418_p4), %vm133_vm0, %v517_v0 }
  0x14 PF: > { %v422_v1 = vld [vmem:[%s544_s15] sm:$0xff]   ;;  %v485_v2 = vld [vmem:[%s544_s15 + $0x8] sm:$0xff]   ;;  %vm201_vm1 = vcmask 130048   ;;  %v486_v6 = vld [vmem:[%s544_s15 + $0x10] sm:$0xff]   ;;  %vm272_vm2 = vcmask 122880  }
  0x15   : > { %v423_v3 = vunpack.c.l.bf16 %v422_v1  ;;  %v424_v4 = vunpack.c.h.bf16 %v422_v1  ;;  %v427_v5 = vunpack.c.l.bf16 %v485_v2  ;;  %v428_v7 = vunpack.c.h.bf16 %v485_v2  ;;  %v487_v14 = vld [vmem:[%s544_s15 + $0x18] sm:$0xff]   ;;  %v488_v21 = vld [vmem:[%s544_s15 + $0x20] sm:$0xff]   ;;  %v489_v27 = vld [vmem:[%s544_s15 + $0x28] sm:$0xff]  }
  0x16   : > { %v431_v12 = vunpack.c.l.bf16 %v486_v6  ;;  %v432_v16 = vunpack.c.h.bf16 %v486_v6  ;;  %v435_v19 = vunpack.c.l.bf16 %v487_v14  ;;  %v436_v23 = vunpack.c.h.bf16 %v487_v14  ;;  %v490_v34 = vld [vmem:[%s544_s15 + $0x30] sm:$0xff]   ;;  %v491_v50 = vld [vmem:[%s544_s15 + $0x38] sm:$0xff]   ;;  %v492_v63 = vld [vmem:[%s544_s15 + $0x40] sm:$0xff]  }
  0x17   : > { %v202_v8 = vsel %vm201_vm1, %v423_v3, 0.0  ;;  %v203_v9 = vsel %vm201_vm1, %v424_v4, 0.0  ;;  %v205_v10 = vsel %vm201_vm1, %v427_v5, 0.0  ;;  %v207_v13 = vsel %vm201_vm1, %v428_v7, 0.0 }
  0x18   : > { %v204_v11 = vadd.f32 %v203_v9, %v202_v8  ;;  %v209_v17 = vsel %vm201_vm1, %v431_v12, 0.0  ;;  %v211_v20 = vsel %vm201_vm1, %v432_v16, 0.0  ;;  %v213_v24 = vsel %vm201_vm1, %v435_v19, 0.0 }
  0x19   : > { %v439_v26 = vunpack.c.l.bf16 %v488_v21  ;;  %v215_v28 = vsel %vm201_vm1, %v436_v23, 0.0  ;;  %v440_v30 = vunpack.c.h.bf16 %v488_v21  ;;  %v443_v32 = vunpack.c.l.bf16 %v489_v27 }
  0x1a   : > { %v206_v15 = vadd.f32 %v205_v10, %v204_v11  ;;  %v275_v36 = vmul.f32 %v423_v3, %v423_v3  ;;  %v276_v37 = vmul.f32 %v424_v4, %v424_v4  ;;  %v277_v38 = vmul.f32 %v427_v5, %v427_v5 }
  0x1b   : > { %v217_v31 = vsel %vm201_vm1, %v439_v26, 0.0  ;;  %v219_v35 = vsel %vm201_vm1, %v440_v30, 0.0  ;;  %v444_v39 = vunpack.c.h.bf16 %v489_v27  ;;  %v221_v41 = vsel %vm201_vm1, %v443_v32, 0.0 }
  0x1c   : > { %v208_v18 = vadd.f32 %v207_v13, %v206_v15  ;;  %v278_v42 = vmul.f32 %v428_v7, %v428_v7  ;;  %v447_v43 = vunpack.c.l.bf16 %v490_v34  ;;  %v279_v46 = vmul.f32 %v431_v12, %v431_v12  ;;  %v493_v12 = vld [vmem:[%s544_s15 + $0x48] sm:$0xff]  }
  0x1d   : > { %v223_v45 = vsel %vm201_vm1, %v444_v39, 0.0  ;;  %v307_v47 = vsel %vm201_vm1, %v275_v36, 0.0  ;;  %v308_v48 = vsel %vm201_vm1, %v276_v37, 0.0  ;;  %v310_v49 = vsel %vm201_vm1, %v277_v38, 0.0  ;;  %v495_v38 = vld [vmem:[%s544_s15 + $0x58] sm:$0xff]  }
  0x1e   : > { %v210_v22 = vadd.f32 %v209_v17, %v208_v18  ;;  %v309_v52 = vadd.f32 %v308_v48, %v307_v47  ;;  %v448_v53 = vunpack.c.h.bf16 %v490_v34  ;;  %v225_v54 = vsel %vm201_vm1, %v447_v43, 0.0 }
  0x1f   : > { %v280_v55 = vmul.f32 %v432_v16, %v432_v16  ;;  %v312_v56 = vsel %vm201_vm1, %v278_v42, 0.0  ;;  %v451_v59 = vunpack.c.l.bf16 %v491_v50  ;;  %v281_v61 = vmul.f32 %v435_v19, %v435_v19 }
  0x20   : > { %v212_v25 = vadd.f32 %v211_v20, %v210_v22  ;;  %v311_v58 = vadd.f32 %v310_v49, %v309_v52  ;;  %v227_v60 = vsel %vm201_vm1, %v448_v53, 0.0  ;;  %v314_v62 = vsel %vm201_vm1, %v279_v46, 0.0 }
  0x21   : > { %v452_v2 = vunpack.c.h.bf16 %v491_v50  ;;  %v229_v3 = vsel %vm201_vm1, %v451_v59, 0.0  ;;  %v282_v4 = vmul.f32 %v436_v23, %v436_v23  ;;  %v316_v5 = vsel %vm201_vm1, %v280_v55, 0.0 }
  0x22   : > { %v214_v29 = vadd.f32 %v213_v24, %v212_v25  ;;  %v313_v1 = vadd.f32 %v312_v56, %v311_v58  ;;  %v455_v8 = vunpack.c.l.bf16 %v492_v63  ;;  %v283_v10 = vmul.f32 %v439_v26, %v439_v26  ;;  %v494_v25 = vld [vmem:[%s544_s15 + $0x50] sm:$0xff]  }
  0x23   : > { %v231_v9 = vsel %vm201_vm1, %v452_v2, 0.0  ;;  %v318_v11 = vsel %vm201_vm1, %v281_v61, 0.0  ;;  %v456_v15 = vunpack.c.h.bf16 %v492_v63  ;;  %v284_v17 = vmul.f32 %v440_v30, %v440_v30 }
  0x24   : > { %v216_v33 = vadd.f32 %v215_v28, %v214_v29  ;;  %v315_v7 = vadd.f32 %v314_v62, %v313_v1  ;;  %v233_v16 = vsel %vm201_vm1, %v455_v8, 0.0  ;;  %v320_v18 = vsel %vm201_vm1, %v282_v4, 0.0 }
  0x25   : > { %v459_v21 = vunpack.c.l.bf16 %v493_v12  ;;  %v235_v22 = vsel %vm201_vm1, %v456_v15, 0.0  ;;  %v285_v23 = vmul.f32 %v443_v32, %v443_v32  ;;  %v322_v24 = vsel %vm201_vm1, %v283_v10, 0.0 }
  0x26   : > { %v218_v40 = vadd.f32 %v217_v31, %v216_v33  ;;  %v317_v14 = vadd.f32 %v316_v5, %v315_v7  ;;  %v460_v28 = vunpack.c.h.bf16 %v493_v12  ;;  %v286_v31 = vmul.f32 %v444_v39, %v444_v39 }
  0x27   : > { %v237_v29 = vsel %vm201_vm1, %v459_v21, 0.0  ;;  %v324_v30 = vsel %vm201_vm1, %v284_v17, 0.0  ;;  %v287_v37 = vmul.f32 %v447_v43, %v447_v43  ;;  %v326_v32 = vsel %vm201_vm1, %v285_v23, 0.0 }
  0x28   : > { %v220_v44 = vadd.f32 %v219_v35, %v218_v40  ;;  %v319_v20 = vadd.f32 %v318_v11, %v317_v14  ;;  %v463_v35 = vunpack.c.l.bf16 %v494_v25  ;;  %v239_v36 = vsel %vm201_vm1, %v460_v28, 0.0 }
  0x29   : > { %v464_v42 = vunpack.c.h.bf16 %v494_v25  ;;  %v328_v39 = vsel %vm201_vm1, %v286_v31, 0.0  ;;  %v467_v48 = vunpack.c.l.bf16 %v495_v38  ;;  %v289_v50 = vmul.f32 %v451_v59, %v451_v59 }
  0x2a   : > { %v222_v51 = vadd.f32 %v221_v41, %v220_v44  ;;  %v321_v27 = vadd.f32 %v320_v18, %v319_v20  ;;  %v241_v44 = vsel %vm201_vm1, %v463_v35, 0.0  ;;  %v330_v43 = vsel %vm201_vm1, %v287_v37, 0.0 }
  0x2b   : > { %v243_v49 = vsel %vm201_vm1, %v464_v42, 0.0  ;;  %v468_v55 = vunpack.c.h.bf16 %v495_v38  ;;  %v245_v56 = vsel %vm201_vm1, %v467_v48, 0.0  ;;  %v291_v63 = vmul.f32 %v455_v8, %v455_v8 }
  0x2c   : > { %v224_v57 = vadd.f32 %v223_v45, %v222_v51  ;;  %v323_v34 = vadd.f32 %v322_v24, %v321_v27  ;;  %v288_v45 = vmul.f32 %v448_v53, %v448_v53  ;;  %v496_v51 = vld [vmem:[%s544_s15 + $0x60] sm:$0xff]   ;;  %v334_v59 = vsel %vm201_vm1, %v289_v50, 0.0 }
  0x2d   : > { %v471_v61 = vunpack.c.l.bf16 %v496_v51  ;;  %v247_v62 = vsel %vm201_vm1, %v468_v55, 0.0  ;;  %v472_v4 = vunpack.c.h.bf16 %v496_v51  ;;  %v293_v12 = vmul.f32 %v459_v21, %v459_v21  ;;  %v499_v21 = vld [vmem:[%s544_s15 + $0x78] sm:$0xff]  }
  0x2e   : > { %v226_v0 = vadd.f32 %v225_v54, %v224_v57  ;;  %v325_v41 = vadd.f32 %v324_v30, %v323_v34  ;;  %v290_v57 = vmul.f32 %v452_v2, %v452_v2  ;;  %v332_v53 = vsel %vm201_vm1, %v288_v45, 0.0 }
  0x2f   : > { %v249_v5 = vsel %vm201_vm1, %v471_v61, 0.0  ;;  %v251_v11 = vsel %vm201_vm1, %v472_v4, 0.0  ;;  %v338_v8 = vsel %vm201_vm1, %v291_v63, 0.0  ;;  %v295_v25 = vmul.f32 %v463_v35, %v463_v35 }
  0x30   : > { %v228_v6 = vadd.f32 %v227_v60, %v226_v0  ;;  %v327_v47 = vadd.f32 %v326_v32, %v325_v41  ;;  %v497_v0 = vld [vmem:[%s544_s15 + $0x68] sm:$0xff]   ;;  %v336_v2 = vsel %vm201_vm1, %v290_v57, 0.0  ;;  %v483_v37 = vunpack.c.l.bf16 %v499_v21 }
  0x31   : > { %v475_v10 = vunpack.c.l.bf16 %v497_v0  ;;  %v476_v17 = vunpack.c.h.bf16 %v497_v0  ;;  %v297_v38 = vmul.f32 %v467_v48, %v467_v48  ;;  %v299_v50 = vmul.f32 %v471_v61, %v471_v61 }
  0x32   : > { %v230_v13 = vadd.f32 %v229_v3, %v228_v6  ;;  %v329_v54 = vadd.f32 %v328_v39, %v327_v47  ;;  %v292_v6 = vmul.f32 %v456_v15, %v456_v15  ;;  %v261_v45 = vsel %vm201_vm1, %v483_v37, 0.0 }
  0x33   : > { %v253_v18 = vsel %vm201_vm1, %v475_v10, 0.0  ;;  %v255_v24 = vsel %vm201_vm1, %v476_v17, 0.0  ;;  %v298_v39 = vmul.f32 %v468_v55, %v468_v55  ;;  %v300_v48 = vmul.f32 %v472_v4, %v472_v4 }
  0x34   : > { %v232_v19 = vadd.f32 %v231_v9, %v230_v13  ;;  %v331_v60 = vadd.f32 %v330_v43, %v329_v54  ;;  %v498_v13 = vld [vmem:[%s544_s15 + $0x70] sm:$0xff]   ;;  %v340_v15 = vsel %vm201_vm1, %v292_v6, 0.0  ;;  %v350_v43 = vsel %vm201_vm1, %v297_v38, 0.0 }
  0x35   : > { %v479_v23 = vunpack.c.l.bf16 %v498_v13  ;;  %v480_v31 = vunpack.c.h.bf16 %v498_v13  ;;  %v352_v54 = vsel %vm201_vm1, %v298_v39, 0.0  ;;  %v356_v63 = vsel %vm201_vm1, %v300_v48, 0.0 }
  0x36   : > { %v234_v26 = vadd.f32 %v233_v16, %v232_v19  ;;  %v333_v3 = vadd.f32 %v332_v53, %v331_v60  ;;  %v294_v19 = vmul.f32 %v460_v28, %v460_v28  ;;  %v301_v53 = vmul.f32 %v475_v10, %v475_v10 }
  0x37   : > { %v257_v30 = vsel %vm201_vm1, %v479_v23, 0.0  ;;  %v259_v32 = vsel %vm201_vm1, %v480_v31, 0.0  ;;  %v303_v61 = vmul.f32 %v479_v23, %v479_v23  ;;  %v304_v4 = vmul.f32 %v480_v31, %v480_v31 }
  0x38   : > { %v236_v33 = vadd.f32 %v235_v22, %v234_v26  ;;  %v335_v9 = vadd.f32 %v334_v59, %v333_v3  ;;  %v342_v26 = vsel %vm201_vm1, %v293_v12, 0.0  ;;  %v344_v34 = vsel %vm201_vm1, %v294_v19, 0.0 }
  0x39   : > { %v362_v10 = vsel %vm201_vm1, %v303_v61, 0.0 }
  0x3a   : > { %v238_v40 = vadd.f32 %v237_v29, %v236_v33  ;;  %v337_v16 = vadd.f32 %v336_v2, %v335_v9  ;;  %v296_v33 = vmul.f32 %v464_v42, %v464_v42  ;;  %v305_v9 = vmul.f32 %v483_v37, %v483_v37 }
  0x3c   : > { %v240_v46 = vadd.f32 %v239_v36, %v238_v40  ;;  %v339_v22 = vadd.f32 %v338_v8, %v337_v16  ;;  %v346_v40 = vsel %vm201_vm1, %v295_v25, 0.0  ;;  %v200_v8 = vld [vmem:[%s650_s1] sm:$0x1] }
  0x3e   : > { %v242_v52 = vadd.f32 %v241_v44, %v240_v46  ;;  %v341_v29 = vadd.f32 %v340_v15, %v339_v22  ;;  %v484_v44 = vunpack.c.h.bf16 %v499_v21  ;;  %v348_v46 = vsel %vm201_vm1, %v296_v33, 0.0 }
  0x40   : > { %v244_v58 = vadd.f32 %v243_v49, %v242_v52  ;;  %v343_v36 = vadd.f32 %v342_v26, %v341_v29  ;;  %v263_v49 = vsel %vm201_vm1, %v484_v44, 0.0  ;;  %v306_v13 = vmul.f32 %v484_v44, %v484_v44  ;;  %v274_v29 = vld [vmem:[%s651_s2] sm:$0x1] }
  0x42   : > { %v246_v1 = vadd.f32 %v245_v56, %v244_v58  ;;  %v345_v41 = vadd.f32 %v344_v34, %v343_v36  ;;  %v354_v58 = vsel %vm201_vm1, %v299_v50, 0.0 }
  0x44   : > { %v248_v7 = vadd.f32 %v247_v62, %v246_v1  ;;  %v347_v42 = vadd.f32 %v346_v40, %v345_v41  ;;  %v302_v62 = vmul.f32 %v476_v17, %v476_v17  ;;  %v358_v1 = vsel %vm201_vm1, %v301_v53, 0.0 }
  0x46   : > { %v250_v14 = vadd.f32 %v249_v5, %v248_v7  ;;  %v349_v52 = vadd.f32 %v348_v46, %v347_v42  ;;  %v360_v6 = vsel %vm201_vm1, %v302_v62, 0.0 }
  0x48   : > { %v252_v20 = vadd.f32 %v251_v11, %v250_v14  ;;  %v351_v57 = vadd.f32 %v350_v43, %v349_v52  ;;  %v364_v14 = vsel %vm201_vm1, %v304_v4, 0.0 }
  0x4a   : > { %v254_v27 = vadd.f32 %v253_v18, %v252_v20  ;;  %v353_v60 = vadd.f32 %v352_v54, %v351_v57  ;;  %v366_v18 = vsel %vm201_vm1, %v305_v9, 0.0  ;;  %v368_v20 = vsel %vm201_vm1, %v306_v13, 0.0 }
  0x4c   : > { %v256_v28 = vadd.f32 %v255_v24, %v254_v27  ;;  %v355_v0 = vadd.f32 %v354_v58, %v353_v60 }
  0x4e   : > { %v258_v35 = vadd.f32 %v257_v30, %v256_v28  ;;  %v357_v5 = vadd.f32 %v356_v63, %v355_v0 }
  0x50   : > { %v260_v47 = vadd.f32 %v259_v32, %v258_v35  ;;  %v359_v7 = vadd.f32 %v358_v1, %v357_v5 }
  0x52   : > { %v262_v51 = vadd.f32 %v261_v45, %v260_v47  ;;  %v361_v12 = vadd.f32 %v360_v6, %v359_v7 }
  0x54   : > { %v264_v56 = vadd.f32 %v263_v49, %v262_v51  ;;  %v363_v17 = vadd.f32 %v362_v10, %v361_v12 }
  0x56   : > { %v265_v55 = vrot.slane %v264_v56, 4  ;;  %v365_v15 = vadd.f32 %v364_v14, %v363_v17 }
  0x58   : > { %v266_v59 = vadd.f32 %v265_v55, %v264_v56  ;;  %v367_v22 = vadd.f32 %v366_v18, %v365_v15 }
  0x5a   : > { %v267_v3 = vrot.slane %v266_v59, 2  ;;  %v369_v23 = vadd.f32 %v368_v20, %v367_v22 }
  0x5c   : > { %v268_v2 = vadd.f32 %v267_v3, %v266_v59  ;;  %v370_v24 = vrot.slane %v369_v23, 4 }
  0x5e   : > { %v269_v11 = vrot.slane %v268_v2, 1  ;;  %v371_v25 = vadd.f32 %v370_v24, %v369_v23 }
  0x60   : > { %v270_v16 = vadd.f32 %v269_v11, %v268_v2  ;;  %v372_v26 = vrot.slane %v371_v25, 2 }
  0x62   : > { %v271_v19 = vadd.f32 %v270_v16, %v200_v8  ;;  %v373_v21 = vadd.f32 %v372_v26, %v371_v25 }
  0x64   : > { %273 = vst.msk [vmem:[%s650_s1] sm:$0x1] %vm272_vm2, %v271_v19  ;;  %v374_v27 = vrot.slane %v373_v21, 1 }
  0x66   : > { %v375_v31 = vadd.f32 %v374_v27, %v373_v21 }
  0x68   : > { %v376_v30 = vadd.f32 %v375_v31, %v274_v29 }
  0x6a   : > { %377 = vst.msk [vmem:[%s651_s2] sm:$0x1] %vm272_vm2, %v376_v30 }
  0x6b PF: > { %s13_s9 = sadd.s32 1, %s515_s9  }
  0x6c   : > { %p10_p5 = scmp.ge.s32.totalorder %s13_s9, 4  }
  0x6e   :  { %12 = sbr.rel (!%p10_p5) target bundleno = 1 (0x1), region = 62 }

// kernel: _lambda_.7
= control target key start
LH: loop header
LB: loop body
LE: loop exit
PB: predicated region body
PF: predicated region fallthrough
CT: control target
= control target key end

     0   :  { %s533_s12 = smov 0   ;;  %s708_s0 = inlined_call_operand.vmem [shape: bf16[512,16], index: 0, kind: input, shape index: {}]   ;;  %s709_s1 = inlined_call_operand.vmem [shape: f32[1,16], index: 1, kind: input, shape index: {}]   ;;  %s710_s2 = inlined_call_operand.vmem [shape: f32[1,16], index: 2, kind: input, shape index: {}]   ;;  %s711_s3 = inlined_call_operand.vmem [shape: f32[512,16], index: 3, kind: output, shape index: {}]  }
   0x1 LB: > { %s405_s13 = sadd.s32 4294967295, %s511_s12   ;;  %p409_p0 = scmp.ge.s32.totalorder %s511_s12, 1  ;;  %s511_s12 = sphi %s533_s12, %s13_s12  }
   0x2   : > { %p138_p1 = scmp.lt.s32.totalorder %s511_s12, 3 }
   0x4   : > { %p139_p2 = pnand %p409_p0, %p138_p1 }
   0x5   : > { %s410_s14 = sshll.u32 (!%p139_p2), %s405_s13, 5  ;;  %v549_v0 = vld [vmem:[%s709_s1] ss:$0 sm:$0xff] (!%p139_p2)  ;;  %vm316_vm0 = vcmask (!%p139_p2), 130048  }
   0x6   : > { %142 = sbr.rel (%p139_p2) target bundleno = 45 (0x2d), region = 32  ;;  %p163_p3 = scmp.lt.s32.totalorder (!%p139_p2), %s410_s14, 63  ;;  %v558_v9 = vld [vmem:[%s710_s2] ss:$0 sm:$0xff] (!%p139_p2) }
   0xd   : > { %s713_s14 = smov (!%p163_p3, %s410_s14), 63 }
   0xe   : > { %s411_s15 = sshll.u32 %s713_s14, 2  ;;  %s413_s21 = sshll.u32 %s713_s14, 3 }
   0xf   : > { %s544_s18 = scalar_lea.vmem %s708_s0, %s411_s15  ;;  %s567_s26 = scalar_lea.vmem %s711_s3, %s413_s21 }
  0x10   : > { %v419_v1 = vld [vmem:[%s544_s18] sm:$0xff]   ;;  %v482_v2 = vld [vmem:[%s544_s18 + $0x8] sm:$0xff]   ;;  %v483_v3 = vld [vmem:[%s544_s18 + $0x10] sm:$0xff]  }
  0x11   : > { %v420_v4 = vunpack.c.l.bf16 %v419_v1  ;;  %v421_v5 = vunpack.c.h.bf16 %v419_v1  ;;  %v424_v6 = vunpack.c.l.bf16 %v482_v2  ;;  %v425_v7 = vunpack.c.h.bf16 %v482_v2  ;;  %v484_v8 = vld [vmem:[%s544_s18 + $0x18] sm:$0xff]   ;;  %v485_v22 = vld [vmem:[%s544_s18 + $0x20] sm:$0xff]   ;;  %v486_v23 = vld [vmem:[%s544_s18 + $0x28] sm:$0xff]  }
  0x12   : > { %v428_v10 = vunpack.c.l.bf16 %v483_v3  ;;  %v429_v11 = vunpack.c.h.bf16 %v483_v3  ;;  %v432_v12 = vunpack.c.l.bf16 %v484_v8  ;;  %v433_v13 = vunpack.c.h.bf16 %v484_v8  ;;  %v487_v28 = vld [vmem:[%s544_s18 + $0x30] sm:$0xff]   ;;  %v488_v29 = vld [vmem:[%s544_s18 + $0x38] sm:$0xff]   ;;  %v489_v50 = vld [vmem:[%s544_s18 + $0x40] sm:$0xff]  }
  0x13   : > { %v245_v14 = vmul.f32 %v420_v4, %v549_v0  ;;  %v246_v15 = vmul.f32 %v421_v5, %v549_v0  ;;  %v247_v16 = vmul.f32 %v424_v6, %v549_v0  ;;  %v248_v17 = vmul.f32 %v425_v7, %v549_v0  ;;  %v490_v51 = vld [vmem:[%s544_s18 + $0x48] sm:$0xff]   ;;  %v491_v56 = vld [vmem:[%s544_s18 + $0x50] sm:$0xff]   ;;  %v492_v57 = vld [vmem:[%s544_s18 + $0x58] sm:$0xff]  }
  0x14   : > { %v249_v18 = vmul.f32 %v428_v10, %v549_v0  ;;  %v250_v19 = vmul.f32 %v429_v11, %v549_v0  ;;  %v251_v20 = vmul.f32 %v432_v12, %v549_v0  ;;  %v252_v21 = vmul.f32 %v433_v13, %v549_v0 }
  0x15   : > { %v284_v24 = vadd.f32 %v558_v9, %v245_v14  ;;  %v285_v25 = vadd.f32 %v558_v9, %v246_v15  ;;  %v286_v26 = vadd.f32 %v558_v9, %v247_v16  ;;  %v287_v27 = vadd.f32 %v558_v9, %v248_v17  ;;  %v493_v16 = vld [vmem:[%s544_s18 + $0x60] sm:$0xff]   ;;  %v494_v17 = vld [vmem:[%s544_s18 + $0x68] sm:$0xff]  }
  0x16   : > { %v288_v30 = vadd.f32 %v558_v9, %v249_v18  ;;  %v289_v31 = vadd.f32 %v558_v9, %v250_v19  ;;  %v290_v32 = vadd.f32 %v558_v9, %v251_v20  ;;  %v291_v33 = vadd.f32 %v558_v9, %v252_v21 }
  0x17   : > { %317 = vst.msk [vmem:[%s567_s26] sm:$0xff] %vm316_vm0, %v284_v24  ;;  %318 = vst.msk [vmem:[%s567_s26 + $0x8] sm:$0xff] %vm316_vm0, %v285_v25  ;;  %v436_v34 = vunpack.c.l.bf16 %v485_v22  ;;  %v437_v35 = vunpack.c.h.bf16 %v485_v22  ;;  %v440_v36 = vunpack.c.l.bf16 %v486_v23  ;;  %v441_v37 = vunpack.c.h.bf16 %v486_v23  ;;  %v495_v22 = vld [vmem:[%s544_s18 + $0x70] sm:$0xff]   ;;  %v496_v23 = vld [vmem:[%s544_s18 + $0x78] sm:$0xff]  }
  0x18   : > { %319 = vst.msk [vmem:[%s567_s26 + $0x10] sm:$0xff] %vm316_vm0, %v286_v26  ;;  %320 = vst.msk [vmem:[%s567_s26 + $0x18] sm:$0xff] %vm316_vm0, %v287_v27  ;;  %v444_v38 = vunpack.c.l.bf16 %v487_v28  ;;  %v445_v39 = vunpack.c.h.bf16 %v487_v28  ;;  %v448_v40 = vunpack.c.l.bf16 %v488_v29  ;;  %v449_v41 = vunpack.c.h.bf16 %v488_v29 }
  0x19   : > { %321 = vst.msk [vmem:[%s567_s26 + $0x20] sm:$0xff] %vm316_vm0, %v288_v30  ;;  %322 = vst.msk [vmem:[%s567_s26 + $0x28] sm:$0xff] %vm316_vm0, %v289_v31  ;;  %v253_v42 = vmul.f32 %v436_v34, %v549_v0  ;;  %v254_v43 = vmul.f32 %v437_v35, %v549_v0  ;;  %v255_v44 = vmul.f32 %v440_v36, %v549_v0  ;;  %v452_v62 = vunpack.c.l.bf16 %v489_v50 }
  0x1a   : > { %323 = vst.msk [vmem:[%s567_s26 + $0x30] sm:$0xff] %vm316_vm0, %v290_v32  ;;  %324 = vst.msk [vmem:[%s567_s26 + $0x38] sm:$0xff] %vm316_vm0, %v291_v33  ;;  %v256_v45 = vmul.f32 %v441_v37, %v549_v0  ;;  %v257_v46 = vmul.f32 %v444_v38, %v549_v0  ;;  %v258_v47 = vmul.f32 %v445_v39, %v549_v0  ;;  %v453_v63 = vunpack.c.h.bf16 %v489_v50 }
  0x1b   : > { %v259_v48 = vmul.f32 %v448_v40, %v549_v0  ;;  %v260_v49 = vmul.f32 %v449_v41, %v549_v0  ;;  %v292_v52 = vadd.f32 %v558_v9, %v253_v42  ;;  %v293_v53 = vadd.f32 %v558_v9, %v254_v43 }
  0x1c   : > { %v294_v54 = vadd.f32 %v558_v9, %v255_v44  ;;  %v295_v55 = vadd.f32 %v558_v9, %v256_v45  ;;  %v296_v58 = vadd.f32 %v558_v9, %v257_v46  ;;  %v297_v59 = vadd.f32 %v558_v9, %v258_v47 }
  0x1d   : > { %v298_v60 = vadd.f32 %v558_v9, %v259_v48  ;;  %v299_v61 = vadd.f32 %v558_v9, %v260_v49  ;;  %325 = vst.msk [vmem:[%s567_s26 + $0x40] sm:$0xff] %vm316_vm0, %v292_v52  ;;  %326 = vst.msk [vmem:[%s567_s26 + $0x48] sm:$0xff] %vm316_vm0, %v293_v53  ;;  %v456_v1 = vunpack.c.l.bf16 %v490_v51  ;;  %v457_v2 = vunpack.c.h.bf16 %v490_v51 }
  0x1e   : > { %327 = vst.msk [vmem:[%s567_s26 + $0x50] sm:$0xff] %vm316_vm0, %v294_v54  ;;  %328 = vst.msk [vmem:[%s567_s26 + $0x58] sm:$0xff] %vm316_vm0, %v295_v55  ;;  %v460_v3 = vunpack.c.l.bf16 %v491_v56  ;;  %v461_v4 = vunpack.c.h.bf16 %v491_v56  ;;  %v464_v5 = vunpack.c.l.bf16 %v492_v57  ;;  %v465_v6 = vunpack.c.h.bf16 %v492_v57 }
  0x1f   : > { %329 = vst.msk [vmem:[%s567_s26 + $0x60] sm:$0xff] %vm316_vm0, %v296_v58  ;;  %330 = vst.msk [vmem:[%s567_s26 + $0x68] sm:$0xff] %vm316_vm0, %v297_v59  ;;  %v261_v7 = vmul.f32 %v452_v62, %v549_v0  ;;  %v262_v8 = vmul.f32 %v453_v63, %v549_v0  ;;  %v263_v10 = vmul.f32 %v456_v1, %v549_v0  ;;  %v468_v28 = vunpack.c.l.bf16 %v493_v16 }
  0x20   : > { %331 = vst.msk [vmem:[%s567_s26 + $0x70] sm:$0xff] %vm316_vm0, %v298_v60  ;;  %332 = vst.msk [vmem:[%s567_s26 + $0x78] sm:$0xff] %vm316_vm0, %v299_v61  ;;  %v264_v11 = vmul.f32 %v457_v2, %v549_v0  ;;  %v265_v12 = vmul.f32 %v460_v3, %v549_v0  ;;  %v266_v13 = vmul.f32 %v461_v4, %v549_v0  ;;  %v469_v29 = vunpack.c.h.bf16 %v493_v16 }
  0x21   : > { %v267_v14 = vmul.f32 %v464_v5, %v549_v0  ;;  %v268_v15 = vmul.f32 %v465_v6, %v549_v0  ;;  %v300_v18 = vadd.f32 %v558_v9, %v261_v7  ;;  %v301_v19 = vadd.f32 %v558_v9, %v262_v8 }
  0x22   : > { %v302_v20 = vadd.f32 %v558_v9, %v263_v10  ;;  %v303_v21 = vadd.f32 %v558_v9, %v264_v11  ;;  %v304_v24 = vadd.f32 %v558_v9, %v265_v12  ;;  %v305_v25 = vadd.f32 %v558_v9, %v266_v13 }
  0x23   : > { %v306_v26 = vadd.f32 %v558_v9, %v267_v14  ;;  %v307_v27 = vadd.f32 %v558_v9, %v268_v15  ;;  %333 = vst.msk [vmem:[%s567_s26 + $0x80] sm:$0xff] %vm316_vm0, %v300_v18  ;;  %334 = vst.msk [vmem:[%s567_s26 + $0x88] sm:$0xff] %vm316_vm0, %v301_v19  ;;  %v472_v30 = vunpack.c.l.bf16 %v494_v17  ;;  %v473_v31 = vunpack.c.h.bf16 %v494_v17 }
  0x24   : > { %335 = vst.msk [vmem:[%s567_s26 + $0x90] sm:$0xff] %vm316_vm0, %v302_v20  ;;  %336 = vst.msk [vmem:[%s567_s26 + $0x98] sm:$0xff] %vm316_vm0, %v303_v21  ;;  %v476_v32 = vunpack.c.l.bf16 %v495_v22  ;;  %v477_v33 = vunpack.c.h.bf16 %v495_v22  ;;  %v480_v34 = vunpack.c.l.bf16 %v496_v23  ;;  %v481_v35 = vunpack.c.h.bf16 %v496_v23 }
  0x25   : > { %337 = vst.msk [vmem:[%s567_s26 + $0xa0] sm:$0xff] %vm316_vm0, %v304_v24  ;;  %338 = vst.msk [vmem:[%s567_s26 + $0xa8] sm:$0xff] %vm316_vm0, %v305_v25  ;;  %v269_v36 = vmul.f32 %v468_v28, %v549_v0  ;;  %v270_v37 = vmul.f32 %v469_v29, %v549_v0  ;;  %v271_v38 = vmul.f32 %v472_v30, %v549_v0 }
  0x26   : > { %339 = vst.msk [vmem:[%s567_s26 + $0xb0] sm:$0xff] %vm316_vm0, %v306_v26  ;;  %340 = vst.msk [vmem:[%s567_s26 + $0xb8] sm:$0xff] %vm316_vm0, %v307_v27  ;;  %v272_v39 = vmul.f32 %v473_v31, %v549_v0  ;;  %v273_v40 = vmul.f32 %v476_v32, %v549_v0  ;;  %v274_v41 = vmul.f32 %v477_v33, %v549_v0 }
  0x27   : > { %v275_v42 = vmul.f32 %v480_v34, %v549_v0  ;;  %v276_v43 = vmul.f32 %v481_v35, %v549_v0  ;;  %v308_v44 = vadd.f32 %v558_v9, %v269_v36  ;;  %v309_v45 = vadd.f32 %v558_v9, %v270_v37 }
  0x28   : > { %v310_v46 = vadd.f32 %v558_v9, %v271_v38  ;;  %v311_v47 = vadd.f32 %v558_v9, %v272_v39  ;;  %v312_v48 = vadd.f32 %v558_v9, %v273_v40  ;;  %v313_v49 = vadd.f32 %v558_v9, %v274_v41 }
  0x29   : > { %v314_v50 = vadd.f32 %v558_v9, %v275_v42  ;;  %v315_v51 = vadd.f32 %v558_v9, %v276_v43  ;;  %341 = vst.msk [vmem:[%s567_s26 + $0xc0] sm:$0xff] %vm316_vm0, %v308_v44  ;;  %342 = vst.msk [vmem:[%s567_s26 + $0xc8] sm:$0xff] %vm316_vm0, %v309_v45 }
  0x2a   : > { %343 = vst.msk [vmem:[%s567_s26 + $0xd0] sm:$0xff] %vm316_vm0, %v310_v46  ;;  %344 = vst.msk [vmem:[%s567_s26 + $0xd8] sm:$0xff] %vm316_vm0, %v311_v47 }
  0x2b   : > { %345 = vst.msk [vmem:[%s567_s26 + $0xe0] sm:$0xff] %vm316_vm0, %v312_v48  ;;  %346 = vst.msk [vmem:[%s567_s26 + $0xe8] sm:$0xff] %vm316_vm0, %v313_v49 }
  0x2c   : > { %347 = vst.msk [vmem:[%s567_s26 + $0xf0] sm:$0xff] %vm316_vm0, %v314_v50  ;;  %348 = vst.msk [vmem:[%s567_s26 + $0xf8] sm:$0xff] %vm316_vm0, %v315_v51 }
  0x2d PF: > { %s13_s12 = sadd.s32 1, %s511_s12  }
  0x2e   : > { %p10_p4 = scmp.ge.s32.totalorder %s13_s12, 4  }
  0x30   :  { %12 = sbr.rel (!%p10_p4) target bundleno = 1 (0x1), region = 62 }

// kernel: _lambda_.4
= control target key start
LH: loop header
LB: loop body
LE: loop exit
PB: predicated region body
PF: predicated region fallthrough
CT: control target
= control target key end

     0   :  { %s6675_s12 = smov 0   ;;  %s6677_s13 = smov 0   ;;  %s8503_s0 = inlined_call_operand.vmem [shape: bf16[2,18,18,16], index: 0, kind: input, shape index: {}]   ;;  %s8504_s1 = inlined_call_operand.vmem [shape: bf16[1,9,16,16], index: 1, kind: input, shape index: {}]   ;;  %s8505_s2 = inlined_call_operand.vmem [shape: f32[1,1,16], index: 2, kind: input, shape index: {}]   ;;  %s8506_s3 = inlined_call_operand.vmem [shape: bf16[2,16,16,16], index: 3, kind: output, shape index: {}]  }
   0x1   :  { %s6679_s14 = smov 0  }
   0x2 LB: > { %s22_s15 = sadd.s32 1, %s6649_s13  ;;  %p5148_p0 = scmp.ge.s32.totalorder %s6653_s14, 1  ;;  %s6653_s14 = sphi %s6679_s14, %s13_s14   ;;  %s6649_s13 = sphi %s6677_s13, %s8572_s13   ;;  %s6645_s12 = sphi %s6675_s12, %s8571_s12  }
   0x3   : > { %p23_p1 = scmp.ge.s32.totalorder %s22_s15, 2  ;;  %p174_p2 = scmp.lt.s32.totalorder %s6653_s14, 3 }
   0x5   : > { %s8574_s15 = smov (%p23_p1, %s22_s15), 0  ;;  %p175_p3 = pnand %p5148_p0, %p174_p2 }
   0x7   : > { %178 = sbr.rel (%p175_p3) target bundleno = 588 (0x24c), region = 32 }
   0xe   : > { %v6515_v0 = vld [vmem:[%s8504_s1 + $0x8] sm:$0xff]   ;;  %p212_p4 = scmp.lt.s32.totalorder %s6645_s12, 1  ;;  %v6516_v1 = vld [vmem:[%s8504_s1 + $0x20] sm:$0xff]   ;;  %vm287_vm0 = vsmask.f32 3328  ;;  %vm731_vm3 = vcmask 130048  }
   0xf   : > { %5926 = vmatprep.subr.bf16.mxu1 %v6515_v0  ;;  %v6704_v2 = vld [vmem:[%s8504_s1] sm:$0xff]   ;;  %6062 = vmatprep.subr.bf16.mxu0 %v6516_v1  ;;  %v6711_v3 = vld [vmem:[%s8504_s1 + $0x28] sm:$0xff]   ;;  %vm288_vm1 = vsmask.f32 7440  ;;  %vm1284_vm4 = vcmask 1042432   ;;  %vm1285_vm5 = vcmask 1046532  }
  0x10   : > { %s8576_s12 = smov (!%p212_p4, %s6645_s12), 1  ;;  %5927 = vmatpush3.bf16.msra.mxu1 %v6515_v0  ;;  %6063 = vmatpush3.bf16.msra.mxu0 %v6516_v1  ;;  %vm6735_vm2 = vmor %vm287_vm0, %vm288_vm1  ;;  %vm4998_vm7 = vcmask 125952  }
  0x11   : > { %s6490_s22 = smul.u32 216, %s8576_s12  ;;  %5960 = vmatprep.subr.bf16.mxu1 %v6704_v2  ;;  %6096 = vmatprep.subr.bf16.mxu0 %v6711_v3  ;;  %vm6957_vm6 = vmor %vm1284_vm4, %vm1285_vm5  ;;  %s5740_s21 = sshll.u32 %s8576_s12, 7 }
  0x12   : > { %s8393_s24 = scalar_lea.vmem %s8506_s3, %s5740_s21 }
  0x13   : > { %s6716_s27 = scalar_lea.vmem %s8503_s0, %s6490_s22 }
  0x14   : > { %v237_v4 = vld [vmem:[%s6716_s27] sm:$0xf]  ;;  %v238_v5 = vld [vmem:[%s6716_s27 + $0x4] sm:$0xf]  ;;  %v271_v6 = vld [vmem:[%s6716_s27 + $0x8] sm:$0x1] }
  0x15   : > { %v291_v7 = vshrl.u32 %v237_v4, 16  ;;  %v294_v8 = vshll.u32 %v237_v4, 16  ;;  %v300_v9 = vshll.u32 %v238_v5, 16  ;;  %v304_v10 = vshrl.u32 %v238_v5, 16  ;;  %v5338_v11 = vld [vmem:[%s6716_s27 + $0xc] sm:$0xf] }
  0x16   : > { %v310_v12 = vshll.u32 %v271_v6, 16  ;;  %v6724_v13 = vld [vmem:[%s6716_s27 + $0x10] sm:$0xf]  ;;  %v6727_v14 = vld [vmem:[%s6716_s27 + $0x14] sm:$0x1]  ;;  %v2109_v20 = vshrl.u32 %v5338_v11, 16 }
  0x17   : > { %v293_v15 = vrot.slane %v291_v7, 4  ;;  %v296_v16 = vrot.slane %v294_v8, 5  ;;  %v302_v17 = vrot.slane %v300_v9, 5  ;;  %v306_v18 = vrot.slane %v304_v10, 4  ;;  %v239_v27 = vld [vmem:[%s6716_s27 + $0xc] sm:$0xf] }
  0x18   : > { %v312_v19 = vrot.slane %v310_v12, 5  ;;  %v2112_v21 = vshll.u32 %v5338_v11, 16  ;;  %v2118_v22 = vshll.u32 %v6724_v13, 16  ;;  %v2122_v25 = vshrl.u32 %v6724_v13, 16  ;;  %v240_v32 = vld [vmem:[%s6716_s27 + $0x10] sm:$0xf] }
  0x19   : > { %v297_v23 = vor.u32 %v296_v16, %v293_v15  ;;  %v307_v24 = vor.u32 %v306_v18, %v302_v17  ;;  %v2128_v26 = vshll.u32 %v6727_v14, 16  ;;  %v2111_v29 = vrot.slane %v2109_v20, 4  ;;  %v272_v38 = vld [vmem:[%s6716_s27 + $0x14] sm:$0x1]  ;;  %v5341_v49 = vld [vmem:[%s6716_s27 + $0x18] sm:$0xf] }
  0x1a   : > { %v2114_v30 = vrot.slane %v2112_v21, 5  ;;  %v2120_v31 = vrot.slane %v2118_v22, 5  ;;  %v2124_v35 = vrot.slane %v2122_v25, 4  ;;  %v315_v39 = vshrl.u32 %v239_v27, 16  ;;  %v6747_v54 = vld [vmem:[%s6716_s27 + $0x1c] sm:$0xf] }
  0x1b   : > { %v298_v33 = vrot.slane %v297_v23, 4  ;;  %v308_v34 = vrot.slane %v307_v24, 4  ;;  %v2130_v37 = vrot.slane %v2128_v26, 5  ;;  %v318_v40 = vshll.u32 %v239_v27, 16  ;;  %v6755_v59 = vld [vmem:[%s6716_s27 + $0x20] sm:$0x1] }
  0x1c   : > { %v2115_v36 = vor.u32 %v2114_v30, %v2111_v29  ;;  %v2125_v43 = vor.u32 %v2124_v35, %v2120_v31  ;;  %v324_v44 = vshll.u32 %v240_v32, 16  ;;  %v317_v47 = vrot.slane %v315_v39, 4  ;;  %v241_v10 = vld [vmem:[%s6716_s27 + $0x18] sm:$0xf]  ;;  %v273_v24 = vld [vmem:[%s6716_s27 + $0x20] sm:$0x1] }
  0x1d   : > { %v303_v41 = vsel %vm6735_vm2, %v298_v33, %v302_v17  ;;  %v313_v42 = vsel %vm6735_vm2, %v308_v34, %v312_v19  ;;  %v320_v48 = vrot.slane %v318_v40, 5  ;;  %v328_v52 = vshrl.u32 %v240_v32, 16  ;;  %v242_v17 = vld [vmem:[%s6716_s27 + $0x1c] sm:$0xf]  ;;  %v5344_v32 = vld [vmem:[%s6716_s27 + $0x24] sm:$0xf] }
  0x1e   : > { %v5154_v45 = vcombine.low %v303_v41, %v313_v42  ;;  %v2116_v46 = vrot.slane %v2115_v36, 4  ;;  %v2126_v50 = vrot.slane %v2125_v43, 4  ;;  %v326_v51 = vrot.slane %v324_v44, 5 }
  0x1f   : > { %v334_v53 = vshll.u32 %v272_v38, 16  ;;  %v2856_v56 = vrot.slane %v6724_v13, 5  ;;  %v2859_v57 = vrot.slane %v6727_v14, 5  ;;  %v321_v58 = vor.u32 %v320_v48, %v317_v47  ;;  %v6521_v38 = vld [vmem:[%s8504_s1 + $0x10] sm:$0xff]   ;;  %v6990_v14 = vld [vmem:[%s6716_s27 + $0x7c] sm:$0xf] }
  0x20   : > { %5928 = vmatprep.mubr.msk.bf16.mxu1 %vm731_vm3, %v5154_v45  ;;  %v2121_v55 = vsel %vm6735_vm2, %v2116_v46, %v2120_v31  ;;  %v2131_v60 = vsel %vm6735_vm2, %v2126_v50, %v2130_v37  ;;  %v330_v61 = vrot.slane %v328_v52, 4  ;;  %v2133_v63 = vshrl.u32 %v5341_v49, 16  ;;  %v6778_v37 = vld [vmem:[%s6716_s27 + $0x28] sm:$0xf]  ;;  %v6787_v45 = vld [vmem:[%s6716_s27 + $0x2c] sm:$0x1] }
  0x21   : > { %v336_v62 = vrot.slane %v334_v53, 5  ;;  %v5388_v0 = vcombine.low %v2121_v55, %v2131_v60  ;;  %v322_v1 = vrot.slane %v321_v58, 4  ;;  %v2136_v4 = vshll.u32 %v5341_v49, 16  ;;  %v243_v52 = vld [vmem:[%s6716_s27 + $0x24] sm:$0xf] }
  0x22   : > { %v2142_v5 = vshll.u32 %v6747_v54, 16  ;;  %v331_v6 = vor.u32 %v330_v61, %v326_v51  ;;  %v2135_v7 = vrot.slane %v2133_v63, 4  ;;  %v2146_v8 = vshrl.u32 %v6747_v54, 16  ;;  %v244_v61 = vld [vmem:[%s6716_s27 + $0x28] sm:$0xf] }
  0x23   : > { %v2152_v9 = vshll.u32 %v6755_v59, 16  ;;  %6064 = vmatprep.mubr.msk.bf16.mxu0 %vm731_vm3, %v5388_v0  ;;  %v327_v11 = vsel %vm6735_vm2, %v322_v1, %v326_v51  ;;  %v2138_v12 = vrot.slane %v2136_v4, 5  ;;  %v2863_v16 = vrot.slane %v6747_v54, 5 }
  0x24   : > { %v2144_v15 = vrot.slane %v2142_v5, 5  ;;  %v332_v18 = vrot.slane %v331_v6, 4  ;;  %v2148_v19 = vrot.slane %v2146_v8, 4  ;;  %v2866_v21 = vrot.slane %v6755_v59, 5  ;;  %v274_v6 = vld [vmem:[%s6716_s27 + $0x2c] sm:$0x1] }
  0x25   : > { %v2154_v20 = vrot.slane %v2152_v9, 5  ;;  %v2139_v22 = vor.u32 %v2138_v12, %v2135_v7  ;;  %v6771_v23 = vrot.slane %v2863_v16, 4  ;;  %v339_v25 = vshrl.u32 %v241_v10, 16 }
  0x26   : > { %v342_v26 = vshll.u32 %v241_v10, 16  ;;  %v337_v27 = vsel %vm6735_vm2, %v332_v18, %v336_v62  ;;  %v2149_v29 = vor.u32 %v2148_v19, %v2144_v15  ;;  %v348_v30 = vshll.u32 %v242_v17, 16  ;;  %v6798_v62 = vld [vmem:[%s8504_s1 + $0x30] sm:$0xff]  }
  0x27   : > { %v352_v31 = vshrl.u32 %v242_v17, 16  ;;  %v5155_v33 = vcombine.low %v327_v11, %v337_v27  ;;  %v2140_v34 = vrot.slane %v2139_v22, 4  ;;  %v341_v35 = vrot.slane %v339_v25, 4  ;;  %v6811_v22 = vld [vmem:[%s6716_s27 + $0x34] sm:$0xf] }
  0x28   : > { %v344_v36 = vrot.slane %v342_v26, 5  ;;  %v2150_v39 = vrot.slane %v2149_v29, 4  ;;  %v350_v40 = vrot.slane %v348_v30, 5  ;;  %v358_v42 = vshll.u32 %v273_v24, 16  ;;  %v6818_v30 = vld [vmem:[%s6716_s27 + $0x38] sm:$0x1] }
  0x29   : > { %v354_v41 = vrot.slane %v352_v31, 4  ;;  %5929 = vmatmul.mubr.msk.bf16.vlgmr.msra.gmra.mrb[0].mxu1 %vm731_vm3, %v5155_v33  ;;  %v2145_v43 = vsel %vm6735_vm2, %v2140_v34, %v2144_v15  ;;  %v2157_v46 = vshrl.u32 %v5344_v32, 16  ;;  %v2160_v47 = vshll.u32 %v5344_v32, 16  ;;  %v5347_v15 = vld [vmem:[%s6716_s27 + $0x30] sm:$0xf] }
  0x2a   : > { %v345_v44 = vor.u32 %v344_v36, %v341_v35  ;;  %5961 = vmatpush3.bf16.msra.mxu1 %v6704_v2  ;;  %v2155_v48 = vsel %vm6735_vm2, %v2150_v39, %v2154_v20  ;;  %v360_v50 = vrot.slane %v358_v42, 5  ;;  %v2166_v51 = vshll.u32 %v6778_v37, 16  ;;  %v245_v42 = vld [vmem:[%s6716_s27 + $0x30] sm:$0xf] }
  0x2b   : > { %v355_v49 = vor.u32 %v354_v41, %v350_v40  ;;  %v5389_v53 = vcombine.low %v2145_v43, %v2155_v48  ;;  %v2159_v58 = vrot.slane %v2157_v46, 4  ;;  %v2162_v60 = vrot.slane %v2160_v47, 5  ;;  %5994 = vmatprep.subr.bf16.mxu1 %v6521_v38  ;;  %v246_v48 = vld [vmem:[%s6716_s27 + $0x34] sm:$0xf] }
  0x2c   : > { %v346_v55 = vrot.slane %v345_v44, 4  ;;  %v2168_v63 = vrot.slane %v2166_v51, 5  ;;  %v2170_v0 = vshrl.u32 %v6778_v37, 16  ;;  %v2176_v1 = vshll.u32 %v6787_v45, 16 }
  0x2d   : > { %v356_v2 = vrot.slane %v355_v49, 4  ;;  %6065 = vmatmul.mubr.msk.bf16.vlgmr.msra.gmra.mrb[0].mxu0 %vm731_vm3, %v5389_v53  ;;  %v2163_v5 = vor.u32 %v2162_v60, %v2159_v58  ;;  %v363_v7 = vshrl.u32 %v243_v52, 16  ;;  %v366_v8 = vshll.u32 %v243_v52, 16  ;;  %v275_v53 = vld [vmem:[%s6716_s27 + $0x38] sm:$0x1] }
  0x2e   : > { %v351_v4 = vsel %vm6735_vm2, %v346_v55, %v350_v40  ;;  %6097 = vmatpush3.bf16.msra.mxu0 %v6711_v3  ;;  %v2172_v10 = vrot.slane %v2170_v0, 4  ;;  %v2178_v11 = vrot.slane %v2176_v1, 5  ;;  %v372_v12 = vshll.u32 %v244_v61, 16 }
  0x2f   : > { %v361_v9 = vsel %vm6735_vm2, %v356_v2, %v360_v50  ;;  %v2164_v18 = vrot.slane %v2163_v5, 4  ;;  %v365_v19 = vrot.slane %v363_v7, 4  ;;  %v368_v20 = vrot.slane %v366_v8, 5  ;;  %6130 = vmatprep.subr.bf16.mxu0 %v6798_v62 }
  0x30   : > { %v5156_v17 = vcombine.low %v351_v4, %v361_v9  ;;  %v2173_v24 = vor.u32 %v2172_v10, %v2168_v63  ;;  %v374_v25 = vrot.slane %v372_v12, 5  ;;  %v376_v26 = vshrl.u32 %v244_v61, 16  ;;  %v5350_v4 = vld [vmem:[%s6716_s27 + $0x3c] sm:$0xf]  ;;  %v6835_v9 = vld [vmem:[%s6716_s27 + $0x40] sm:$0xf] }
  0x31   : > { %v382_v3 = vshll.u32 %v274_v6, 16  ;;  %v2169_v27 = vsel %vm6735_vm2, %v2164_v18, %v2168_v63  ;;  %v369_v29 = vor.u32 %v368_v20, %v365_v19  ;;  %v2181_v31 = vshrl.u32 %v5347_v15, 16  ;;  %v6840_v20 = vld [vmem:[%s6716_s27 + $0x44] sm:$0x1] }
  0x32   : > { %5932 = vmatprep.mubr.msk.bf16.mxu1 %vm731_vm3, %v5156_v17  ;;  %v2184_v32 = vshll.u32 %v5347_v15, 16  ;;  %v2174_v33 = vrot.slane %v2173_v24, 4  ;;  %v378_v34 = vrot.slane %v376_v26, 4  ;;  %v2190_v36 = vshll.u32 %v6811_v22, 16 }
  0x33   : > { %v384_v35 = vrot.slane %v382_v3, 5  ;;  %v370_v38 = vrot.slane %v369_v29, 4  ;;  %v2183_v39 = vrot.slane %v2181_v31, 4  ;;  %v2194_v41 = vshrl.u32 %v6811_v22, 16  ;;  %v247_v29 = vld [vmem:[%s6716_s27 + $0x3c] sm:$0xf] }
  0x34   : > { %v2186_v40 = vrot.slane %v2184_v32, 5  ;;  %v2179_v43 = vsel %vm6735_vm2, %v2174_v33, %v2178_v11  ;;  %v379_v44 = vor.u32 %v378_v34, %v374_v25  ;;  %v2192_v46 = vrot.slane %v2190_v36, 5 }
  0x35   : > { %v2200_v47 = vshll.u32 %v6818_v30, 16  ;;  %v5390_v49 = vcombine.low %v2169_v27, %v2179_v43  ;;  %v375_v50 = vsel %vm6735_vm2, %v370_v38, %v374_v25  ;;  %v2196_v52 = vrot.slane %v2194_v41, 4 }
  0x36   : > { %v2187_v51 = vor.u32 %v2186_v40, %v2183_v39  ;;  %v380_v55 = vrot.slane %v379_v44, 4  ;;  %v387_v60 = vshrl.u32 %v245_v42, 16  ;;  %v390_v61 = vshll.u32 %v245_v42, 16 }
  0x37   : > { %v2202_v58 = vrot.slane %v2200_v47, 5  ;;  %6068 = vmatprep.mubr.msk.bf16.mxu0 %vm731_vm3, %v5390_v49  ;;  %v2197_v63 = vor.u32 %v2196_v52, %v2192_v46  ;;  %v396_v0 = vshll.u32 %v246_v48, 16  ;;  %v400_v1 = vshrl.u32 %v246_v48, 16  ;;  %v276_v49 = vld [vmem:[%s6716_s27 + $0x44] sm:$0x1] }
  0x38   : > { %v2188_v2 = vrot.slane %v2187_v51, 4  ;;  %v385_v5 = vsel %vm6735_vm2, %v380_v55, %v384_v35  ;;  %v389_v6 = vrot.slane %v387_v60, 4  ;;  %v392_v7 = vrot.slane %v390_v61, 5  ;;  %v248_v35 = vld [vmem:[%s6716_s27 + $0x40] sm:$0xf] }
  0x39   : > { %v406_v8 = vshll.u32 %v275_v53, 16  ;;  %v5157_v10 = vcombine.low %v375_v50, %v385_v5  ;;  %v2198_v12 = vrot.slane %v2197_v63, 4  ;;  %v398_v15 = vrot.slane %v396_v0, 5  ;;  %v5353_v51 = vld [vmem:[%s6716_s27 + $0x48] sm:$0xf] }
  0x3a   : > { %v2193_v11 = vsel %vm6735_vm2, %v2188_v2, %v2192_v46  ;;  %v393_v17 = vor.u32 %v392_v7, %v389_v6  ;;  %v402_v18 = vrot.slane %v400_v1, 4  ;;  %v2205_v24 = vshrl.u32 %v5350_v4, 16  ;;  %v6858_v60 = vld [vmem:[%s6716_s27 + $0x4c] sm:$0xf] }
  0x3b   : > { %v408_v19 = vrot.slane %v406_v8, 5  ;;  %5933 = vmatmul.mubr.msk.bf16.gmra.mrb[4].mxu1 %vm731_vm3, %v5157_v10  ;;  %v2203_v25 = vsel %vm6735_vm2, %v2198_v12, %v2202_v58  ;;  %v2208_v26 = vshll.u32 %v5350_v4, 16  ;;  %v2214_v3 = vshll.u32 %v6835_v9, 16  ;;  %v6866_v10 = vld [vmem:[%s6716_s27 + $0x50] sm:$0x1] }
  0x3c   : > { %v2218_v27 = vshrl.u32 %v6835_v9, 16  ;;  %v5391_v31 = vcombine.low %v2193_v11, %v2203_v25  ;;  %v394_v32 = vrot.slane %v393_v17, 4  ;;  %v403_v33 = vor.u32 %v402_v18, %v398_v15  ;;  %v6873_v25 = vld [vmem:[%s6716_s27 + $0x4c] sm:$0xf] }
  0x3d   : > { %v2207_v34 = vrot.slane %v2205_v24, 4  ;;  %v2210_v36 = vrot.slane %v2208_v26, 5  ;;  %v2216_v38 = vrot.slane %v2214_v3, 5  ;;  %v2224_v40 = vshll.u32 %v6840_v20, 16 }
  0x3e   : > { %v2220_v39 = vrot.slane %v2218_v27, 4  ;;  %6069 = vmatmul.mubr.msk.bf16.gmra.mrb[4].mxu0 %vm731_vm3, %v5391_v31  ;;  %v399_v41 = vsel %vm6735_vm2, %v394_v32, %v398_v15  ;;  %v404_v42 = vrot.slane %v403_v33, 4  ;;  %v411_v43 = vshrl.u32 %v247_v29, 16  ;;  %v6870_v15 = vld [vmem:[%s6716_s27 + $0x48] sm:$0xf] }
  0x3f   : > { %v414_v44 = vshll.u32 %v247_v29, 16  ;;  %v2211_v46 = vor.u32 %v2210_v36, %v2207_v34  ;;  %v2226_v48 = vrot.slane %v2224_v40, 5  ;;  %v420_v50 = vshll.u32 %v248_v35, 16  ;;  %v277_v34 = vld [vmem:[%s6716_s27 + $0x50] sm:$0x1] }
  0x40   : > { %v2221_v47 = vor.u32 %v2220_v39, %v2216_v38  ;;  %v409_v52 = vsel %vm6735_vm2, %v404_v42, %v408_v19  ;;  %v413_v53 = vrot.slane %v411_v43, 4  ;;  %v424_v58 = vshrl.u32 %v248_v35, 16 }
  0x41   : > { %v416_v55 = vrot.slane %v414_v44, 5  ;;  %v5158_v61 = vcombine.low %v399_v41, %v409_v52  ;;  %v2212_v2 = vrot.slane %v2211_v46, 4  ;;  %v422_v0 = vrot.slane %v420_v50, 5  ;;  %v5356_v41 = vld [vmem:[%s6716_s27 + $0x54] sm:$0xf] }
  0x42   : > { %v2222_v63 = vrot.slane %v2221_v47, 4  ;;  %v426_v4 = vrot.slane %v424_v58, 4  ;;  %v430_v5 = vshll.u32 %v276_v49, 16  ;;  %v2229_v6 = vshrl.u32 %v5353_v51, 16 }
  0x43   : > { %v417_v1 = vor.u32 %v416_v55, %v413_v53  ;;  %5936 = vmatprep.mubr.msk.bf16.mxu1 %vm731_vm3, %v5158_v61  ;;  %v2217_v7 = vsel %vm6735_vm2, %v2212_v2, %v2216_v38  ;;  %v2232_v11 = vshll.u32 %v5353_v51, 16  ;;  %v2238_v12 = vshll.u32 %v6858_v60, 16  ;;  %v6889_v51 = vld [vmem:[%s6716_s27 + $0x58] sm:$0xf] }
  0x44   : > { %v2227_v8 = vsel %vm6735_vm2, %v2222_v63, %v2226_v48  ;;  %v427_v19 = vor.u32 %v426_v4, %v422_v0  ;;  %v432_v24 = vrot.slane %v430_v5, 5  ;;  %v2231_v26 = vrot.slane %v2229_v6, 4 }
  0x45   : > { %v5392_v17 = vcombine.low %v2217_v7, %v2227_v8  ;;  %v418_v18 = vrot.slane %v417_v1, 4  ;;  %v2234_v3 = vrot.slane %v2232_v11, 5  ;;  %v2240_v27 = vrot.slane %v2238_v12, 5  ;;  %v6899_v8 = vld [vmem:[%s6716_s27 + $0x54] sm:$0xf] }
  0x46   : > { %v2242_v29 = vshrl.u32 %v6858_v60, 16  ;;  %v428_v32 = vrot.slane %v427_v19, 4  ;;  %v2248_v33 = vshll.u32 %v6866_v10, 16  ;;  %v435_v35 = vshrl.u32 %v6870_v15, 16  ;;  %v6905_v19 = vld [vmem:[%s6716_s27 + $0x58] sm:$0xf] }
  0x47   : > { %6072 = vmatprep.mubr.msk.bf16.mxu0 %vm731_vm3, %v5392_v17  ;;  %v423_v31 = vsel %vm6735_vm2, %v418_v18, %v422_v0  ;;  %v2235_v36 = vor.u32 %v2234_v3, %v2231_v26  ;;  %v438_v39 = vshll.u32 %v6870_v15, 16  ;;  %v444_v40 = vshll.u32 %v6873_v25, 16  ;;  %v6895_v0 = vld [vmem:[%s6716_s27 + $0x5c] sm:$0x1] }
  0x48   : > { %v2244_v38 = vrot.slane %v2242_v29, 4  ;;  %v433_v42 = vsel %vm6735_vm2, %v428_v32, %v432_v24  ;;  %v2250_v43 = vrot.slane %v2248_v33, 5  ;;  %v437_v44 = vrot.slane %v435_v35, 4  ;;  %v278_v33 = vld [vmem:[%s6716_s27 + $0x5c] sm:$0x1] }
  0x49   : > { %v448_v46 = vshrl.u32 %v6873_v25, 16  ;;  %v5159_v47 = vcombine.low %v423_v31, %v433_v42  ;;  %v2236_v48 = vrot.slane %v2235_v36, 4  ;;  %v440_v50 = vrot.slane %v438_v39, 5 }
  0x4a   : > { %v2245_v49 = vor.u32 %v2244_v38, %v2240_v27  ;;  %v446_v52 = vrot.slane %v444_v40, 5  ;;  %v454_v55 = vshll.u32 %v277_v34, 16  ;;  %v2253_v58 = vshrl.u32 %v5356_v41, 16  ;;  %v5359_v40 = vld [vmem:[%s6716_s27 + $0x60] sm:$0xf] }
  0x4b   : > { %v450_v53 = vrot.slane %v448_v46, 4  ;;  %5937 = vmatmul.mubr.msk.bf16.gmra.mrb[8].mxu1 %vm731_vm3, %v5159_v47  ;;  %v2241_v61 = vsel %vm6735_vm2, %v2236_v48, %v2240_v27  ;;  %v441_v63 = vor.u32 %v440_v50, %v437_v44  ;;  %v2256_v1 = vshll.u32 %v5356_v41, 16  ;;  %v6919_v46 = vld [vmem:[%s6716_s27 + $0x64] sm:$0xf] }
  0x4c   : > { %v2246_v2 = vrot.slane %v2245_v49, 4  ;;  %v456_v5 = vrot.slane %v454_v55, 5  ;;  %v2255_v6 = vrot.slane %v2253_v58, 4  ;;  %v2262_v7 = vshll.u32 %v6889_v51, 16  ;;  %v6926_v55 = vld [vmem:[%s6716_s27 + $0x68] sm:$0x1] }
  0x4d   : > { %v451_v4 = vor.u32 %v450_v53, %v446_v52  ;;  %v442_v12 = vrot.slane %v441_v63, 4  ;;  %v2258_v17 = vrot.slane %v2256_v1, 5  ;;  %v2266_v18 = vshrl.u32 %v6889_v51, 16 }
  0x4e   : > { %v2251_v11 = vsel %vm6735_vm2, %v2246_v2, %v2250_v43  ;;  %v2264_v3 = vrot.slane %v2262_v7, 5  ;;  %v2272_v27 = vshll.u32 %v6895_v0, 16  ;;  %v459_v34 = vshrl.u32 %v6899_v8, 16 }
  0x4f   : > { %v5393_v24 = vcombine.low %v2241_v61, %v2251_v11  ;;  %v452_v26 = vrot.slane %v451_v4, 4  ;;  %v447_v29 = vsel %vm6735_vm2, %v442_v12, %v446_v52  ;;  %v2259_v31 = vor.u32 %v2258_v17, %v2255_v6  ;;  %v6936_v17 = vld [vmem:[%s6716_s27 + $0x64] sm:$0xf] }
  0x50   : > { %v2268_v32 = vrot.slane %v2266_v18, 4  ;;  %v2274_v36 = vrot.slane %v2272_v27, 5  ;;  %v462_v38 = vshll.u32 %v6899_v8, 16  ;;  %v468_v39 = vshll.u32 %v6905_v19, 16 }
  0x51   : > { %6073 = vmatmul.mubr.msk.bf16.gmra.mrb[8].mxu0 %vm731_vm3, %v5393_v24  ;;  %v457_v35 = vsel %vm6735_vm2, %v452_v26, %v456_v5  ;;  %v2260_v42 = vrot.slane %v2259_v31, 4  ;;  %v461_v44 = vrot.slane %v459_v34, 4  ;;  %v472_v49 = vshrl.u32 %v6905_v19, 16  ;;  %v6930_v5 = vld [vmem:[%s6716_s27 + $0x60] sm:$0xf] }
  0x52   : > { %v5160_v41 = vcombine.low %v447_v29, %v457_v35  ;;  %v2269_v43 = vor.u32 %v2268_v32, %v2264_v3  ;;  %v464_v47 = vrot.slane %v462_v38, 5  ;;  %v470_v48 = vrot.slane %v468_v39, 5  ;;  %v279_v35 = vld [vmem:[%s6716_s27 + $0x68] sm:$0x1] }
  0x53   : > { %v478_v50 = vshll.u32 %v278_v33, 16  ;;  %v2265_v52 = vsel %vm6735_vm2, %v2260_v42, %v2264_v3  ;;  %v2277_v58 = vshrl.u32 %v5359_v40, 16  ;;  %v2280_v61 = vshll.u32 %v5359_v40, 16 }
  0x54   : > { %5940 = vmatprep.mubr.msk.bf16.mxu1 %vm731_vm3, %v5160_v41  ;;  %v2270_v53 = vrot.slane %v2269_v43, 4  ;;  %v465_v2 = vor.u32 %v464_v47, %v461_v44  ;;  %v474_v63 = vrot.slane %v472_v49, 4  ;;  %v2286_v4 = vshll.u32 %v6919_v46, 16  ;;  %v5421_v43 = vld [vmem:[%s6716_s27 + $0xc] sm:$0xe] }
  0x55   : > { %v480_v1 = vrot.slane %v478_v50, 5  ;;  %v2279_v7 = vrot.slane %v2277_v58, 4  ;;  %v2282_v11 = vrot.slane %v2280_v61, 5  ;;  %v2290_v12 = vshrl.u32 %v6919_v46, 16 }
  0x56   : > { %v2275_v6 = vsel %vm6735_vm2, %v2270_v53, %v2274_v36  ;;  %v466_v24 = vrot.slane %v465_v2, 4  ;;  %v475_v26 = vor.u32 %v474_v63, %v470_v48  ;;  %v2288_v3 = vrot.slane %v2286_v4, 5 }
  0x57   : > { %v5394_v18 = vcombine.low %v2265_v52, %v2275_v6  ;;  %v2283_v27 = vor.u32 %v2282_v11, %v2279_v7  ;;  %v2292_v29 = vrot.slane %v2290_v12, 4  ;;  %v2296_v31 = vshll.u32 %v6926_v55, 16  ;;  %v6964_v7 = vld [vmem:[%s6716_s27 + $0x70] sm:$0xf] }
  0x58   : > { %v483_v32 = vshrl.u32 %v6930_v5, 16  ;;  %v471_v33 = vsel %vm6735_vm2, %v466_v24, %v470_v48  ;;  %v476_v34 = vrot.slane %v475_v26, 4  ;;  %v486_v36 = vshll.u32 %v6930_v5, 16  ;;  %v6951_v48 = vld [vmem:[%s6716_s27 + $0x6c] sm:$0xf] }
  0x59   : > { %6076 = vmatprep.mubr.msk.bf16.mxu0 %vm731_vm3, %v5394_v18  ;;  %v492_v38 = vshll.u32 %v6936_v17, 16  ;;  %v2284_v39 = vrot.slane %v2283_v27, 4  ;;  %v2293_v40 = vor.u32 %v2292_v29, %v2288_v3  ;;  %v2298_v41 = vrot.slane %v2296_v31, 5  ;;  %v280_v31 = vld [vmem:[%s6716_s27 + $0x74] sm:$0x1] }
  0x5a   : > { %v485_v42 = vrot.slane %v483_v32, 4  ;;  %v481_v44 = vsel %vm6735_vm2, %v476_v34, %v480_v1  ;;  %v488_v47 = vrot.slane %v486_v36, 5  ;;  %v496_v50 = vshrl.u32 %v6936_v17, 16  ;;  %v5422_v32 = vld [vmem:[%s6716_s27 + $0x18] sm:$0xe] }
  0x5b   : > { %v494_v49 = vrot.slane %v492_v38, 5  ;;  %v5161_v52 = vcombine.low %v471_v33, %v481_v44  ;;  %v2289_v53 = vsel %vm6735_vm2, %v2284_v39, %v2288_v3  ;;  %v2294_v58 = vrot.slane %v2293_v40, 4  ;;  %v6983_v38 = vld [vmem:[%s6716_s27 + $0x78] sm:$0xf] }
  0x5c   : > { %v502_v61 = vshll.u32 %v279_v35, 16  ;;  %v489_v63 = vor.u32 %v488_v47, %v485_v42  ;;  %v498_v1 = vrot.slane %v496_v50, 4  ;;  %v5437_v4 = vrot.slane %v5421_v43, 9  ;;  %v5423_v47 = vld [vmem:[%s6716_s27 + $0x24] sm:$0xe] }
  0x5d   : > { %v2858_v6 = vrot.slane %v2856_v56, 4  ;;  %5941 = vmatmul.mubr.msk.bf16.gmra.mrb[12].mxu1 %vm731_vm3, %v5161_v52  ;;  %v2299_v11 = vsel %vm6735_vm2, %v2294_v58, %v2298_v41  ;;  %v507_v18 = vshrl.u32 %v6951_v48, 16  ;;  %v510_v24 = vshll.u32 %v6951_v48, 16  ;;  %v281_v41 = vld [vmem:[%s6716_s27 + $0x80] sm:$0x1] }
  0x5e   : > { %v504_v12 = vrot.slane %v502_v61, 5  ;;  %v5395_v26 = vcombine.low %v2289_v53, %v2299_v11  ;;  %v490_v3 = vrot.slane %v489_v63, 4  ;;  %v499_v27 = vor.u32 %v498_v1, %v494_v49 }
  0x5f   : > { %v2857_v29 = vsel %vm6957_vm6, %v5437_v4, %v2856_v56  ;;  %v2860_v33 = vsel %vm6957_vm6, %v2858_v6, %v2859_v57  ;;  %v509_v34 = vrot.slane %v507_v18, 4  ;;  %v512_v35 = vrot.slane %v510_v24, 5  ;;  %v7017_v24 = vld [vmem:[%s6716_s27 + $0x88] sm:$0xf] }
  0x60   : > { %v516_v36 = vshll.u32 %v6964_v7, 16  ;;  %6077 = vmatmul.mubr.msk.bf16.gmra.mrb[12].mxu0 %vm731_vm3, %v5395_v26  ;;  %v495_v13 = vsel %vm6735_vm2, %v490_v3, %v494_v49  ;;  %v500_v56 = vrot.slane %v499_v27, 4  ;;  %v5455_v39 = vcombine.low %v2857_v29, %v2860_v33 }
  0x61   : > { %v520_v40 = vshrl.u32 %v6964_v7, 16  ;;  %v513_v57 = vor.u32 %v512_v35, %v509_v34  ;;  %v526_v43 = vshll.u32 %v280_v31, 16  ;;  %v5438_v44 = vrot.slane %v5422_v32, 9  ;;  %v282_v35 = vld [vmem:[%s6716_s27 + $0x8c] sm:$0x1] }
  0x62   : > { %v518_v42 = vrot.slane %v516_v36, 5  ;;  %v505_v50 = vsel %vm6735_vm2, %v500_v56, %v504_v12  ;;  %6098 = vmatprep.mubr.msk.bf16.mxu0 %vm731_vm3, %v5455_v39  ;;  %v2867_v49 = vsel %vm6957_vm6, %v6771_v23, %v2866_v21  ;;  %v531_v53 = vshrl.u32 %v6983_v38, 16  ;;  %v7009_v12 = vld [vmem:[%s6716_s27 + $0x84] sm:$0xf] }
  0x63   : > { %v522_v52 = vrot.slane %v520_v40, 4  ;;  %v5162_v58 = vcombine.low %v495_v13, %v505_v50  ;;  %v514_v61 = vrot.slane %v513_v57, 4  ;;  %v528_v63 = vrot.slane %v526_v43, 5  ;;  %v5424_v40 = vld [vmem:[%s6716_s27 + $0x30] sm:$0xe] }
  0x64   : > { %v2864_v1 = vsel %vm6957_vm6, %v5438_v44, %v2863_v16  ;;  %v533_v11 = vrot.slane %v531_v53, 4  ;;  %v534_v59 = vshll.u32 %v6983_v38, 16  ;;  %v540_v23 = vshll.u32 %v6990_v14, 16  ;;  %v7022_v16 = vld [vmem:[%s8504_s1 + $0x38] sm:$0xff]   ;;  %v7041_v50 = vld [vmem:[%s6716_s27 + $0x90] sm:$0xf] }
  0x65   : > { %v523_v4 = vor.u32 %v522_v52, %v518_v42  ;;  %v5456_v6 = vcombine.low %v2864_v1, %v2867_v49  ;;  %5944 = vmatprep.mubr.msk.bf16.mxu1 %vm731_vm3, %v5162_v58  ;;  %v519_v21 = vsel %vm6735_vm2, %v514_v61, %v518_v42  ;;  %v544_v54 = vshrl.u32 %v6990_v14, 16  ;;  %v7046_v58 = vld [vmem:[%s6716_s27 + $0x94] sm:$0xf] }
  0x66   : > { %v550_v18 = vshll.u32 %v281_v41, 16  ;;  %v536_v3 = vrot.slane %v534_v59, 5  ;;  %v5439_v27 = vrot.slane %v5423_v47, 9  ;;  %v2870_v29 = vrot.slane %v6778_v37, 5 }
  0x67   : > { %v524_v26 = vrot.slane %v523_v4, 4  ;;  %v542_v31 = vrot.slane %v540_v23, 5  ;;  %v546_v32 = vrot.slane %v544_v54, 4  ;;  %v2873_v34 = vrot.slane %v6787_v45, 5  ;;  %v283_v23 = vld [vmem:[%s6716_s27 + $0x98] sm:$0x1] }
  0x68   : > { %v552_v33 = vrot.slane %v550_v18, 5  ;;  %6099 = vmatmul.mubr.msk.bf16.vlgmr.msra.gmra.mrb[0].mxu0 %vm731_vm3, %v5456_v6  ;;  %v537_v13 = vor.u32 %v536_v3, %v533_v11  ;;  %v2871_v56 = vsel %vm6957_vm6, %v5439_v27, %v2870_v29  ;;  %v2872_v39 = vrot.slane %v2870_v29, 4  ;;  %v5425_v27 = vld [vmem:[%s6716_s27 + $0x3c] sm:$0xe] }
  0x69   : > { %v529_v36 = vsel %vm6735_vm2, %v524_v26, %v528_v63  ;;  %6131 = vmatpush3.bf16.msra.mxu0 %v6798_v62  ;;  %v547_v37 = vor.u32 %v546_v32, %v542_v31  ;;  %v555_v45 = vshrl.u32 %v7009_v12, 16  ;;  %v558_v57 = vshll.u32 %v7009_v12, 16 }
  0x6a   : > { %v5163_v41 = vcombine.low %v519_v21, %v529_v36  ;;  %v538_v42 = vrot.slane %v537_v13, 4  ;;  %v2874_v43 = vsel %vm6957_vm6, %v2872_v39, %v2873_v34  ;;  %v564_v44 = vshll.u32 %v7017_v24, 16  ;;  %6164 = vmatprep.subr.bf16.mxu0 %v7022_v16 }
  0x6b   : > { %v568_v47 = vshrl.u32 %v7017_v24, 16  ;;  %v548_v62 = vrot.slane %v547_v37, 4  ;;  %v5457_v52 = vcombine.low %v2871_v56, %v2874_v43  ;;  %v557_v49 = vrot.slane %v555_v45, 4 }
  0x6c   : > { %5945 = vmatmul.mubr.msk.bf16.gmra.mrb[16].mxu1 %vm731_vm3, %v5163_v41  ;;  %v560_v53 = vrot.slane %v558_v57, 5  ;;  %v543_v61 = vsel %vm6735_vm2, %v538_v42, %v542_v31  ;;  %v566_v63 = vrot.slane %v564_v44, 5  ;;  %v574_v4 = vshll.u32 %v282_v35, 16  ;;  %v7074_v42 = vld [vmem:[%s6716_s27 + $0xa0] sm:$0xf] }
  0x6d   : > { %v570_v1 = vrot.slane %v568_v47, 4  ;;  %v553_v6 = vsel %vm6735_vm2, %v548_v62, %v552_v33  ;;  %6102 = vmatprep.mubr.msk.bf16.mxu0 %vm731_vm3, %v5457_v52  ;;  %v5440_v59 = vrot.slane %v5424_v40, 9  ;;  %v2877_v21 = vrot.slane %v6811_v22, 5  ;;  %v7069_v40 = vld [vmem:[%s6716_s27 + $0x9c] sm:$0xf] }
  0x6e   : > { %v561_v11 = vor.u32 %v560_v53, %v557_v49  ;;  %v5164_v54 = vcombine.low %v543_v61, %v553_v6  ;;  %v576_v26 = vrot.slane %v574_v4, 5  ;;  %v2880_v3 = vrot.slane %v6818_v30, 5  ;;  %v284_v52 = vld [vmem:[%s6716_s27 + $0xa4] sm:$0x1] }
  0x6f   : > { %v571_v18 = vor.u32 %v570_v1, %v566_v63  ;;  %v2878_v31 = vsel %vm6957_vm6, %v5440_v59, %v2877_v21  ;;  %v2879_v32 = vrot.slane %v2877_v21, 4  ;;  %v579_v33 = vshrl.u32 %v7041_v50, 16  ;;  %v5426_v59 = vld [vmem:[%s6716_s27 + $0x48] sm:$0xe] }
  0x70   : > { %v562_v29 = vrot.slane %v561_v11, 4  ;;  %5948 = vmatprep.mubr.msk.bf16.mxu1 %vm731_vm3, %v5164_v54  ;;  %v582_v22 = vshll.u32 %v7041_v50, 16  ;;  %v588_v35 = vshll.u32 %v7046_v58, 16  ;;  %v592_v36 = vshrl.u32 %v7046_v58, 16 }
  0x71   : > { %v572_v34 = vrot.slane %v571_v18, 4  ;;  %v2881_v13 = vsel %vm6957_vm6, %v2879_v32, %v2880_v3  ;;  %v581_v56 = vrot.slane %v579_v33, 4  ;;  %v598_v39 = vshll.u32 %v283_v23, 16  ;;  %v7093_v33 = vld [vmem:[%s6716_s27 + $0xa8] sm:$0xf] }
  0x72   : > { %v567_v30 = vsel %vm6735_vm2, %v562_v29, %v566_v63  ;;  %v5458_v37 = vcombine.low %v2878_v31, %v2881_v13  ;;  %v584_v45 = vrot.slane %v582_v22, 5  ;;  %v590_v57 = vrot.slane %v588_v35, 5 }
  0x73   : > { %v577_v41 = vsel %vm6735_vm2, %v572_v34, %v576_v26  ;;  %v594_v44 = vrot.slane %v592_v36, 4  ;;  %v600_v47 = vrot.slane %v598_v39, 5  ;;  %v5441_v62 = vrot.slane %v5425_v27, 9 }
  0x74   : > { %v5165_v43 = vcombine.low %v567_v30, %v577_v41  ;;  %6103 = vmatmul.mubr.msk.bf16.gmra.mrb[4].mxu0 %vm731_vm3, %v5458_v37  ;;  %v585_v49 = vor.u32 %v584_v45, %v581_v56  ;;  %v2884_v53 = vrot.slane %v6835_v9, 5  ;;  %v2887_v61 = vrot.slane %v6840_v20, 5  ;;  %v7098_v30 = vld [vmem:[%s6716_s27 + $0xac] sm:$0xf]  ;;  %v285_v37 = vld [vmem:[%s6716_s27 + $0xb0] sm:$0x1] }
  0x75   : > { %v603_v63 = vshrl.u32 %v7069_v40, 16  ;;  %v595_v1 = vor.u32 %v594_v44, %v590_v57  ;;  %v606_v4 = vshll.u32 %v7069_v40, 16  ;;  %v612_v6 = vshll.u32 %v7074_v42, 16  ;;  %v5427_v45 = vld [vmem:[%s6716_s27 + $0x54] sm:$0xe] }
  0x76   : > { %5949 = vmatmul.mubr.msk.bf16.gmra.mrb[20].mxu1 %vm731_vm3, %v5165_v43  ;;  %v616_v11 = vshrl.u32 %v7074_v42, 16  ;;  %v586_v21 = vrot.slane %v585_v49, 4  ;;  %v2885_v23 = vsel %vm6957_vm6, %v5441_v62, %v2884_v53  ;;  %v2886_v9 = vrot.slane %v2884_v53, 4  ;;  %v7108_v62 = vld [vmem:[%s6716_s27 + $0xb4] sm:$0xf] }
  0x77   : > { %v605_v20 = vrot.slane %v603_v63, 4  ;;  %v596_v54 = vrot.slane %v595_v1, 4  ;;  %v608_v18 = vrot.slane %v606_v4, 5  ;;  %v614_v26 = vrot.slane %v612_v6, 5  ;;  %v7120_v4 = vld [vmem:[%s6716_s27 + $0xb8] sm:$0xf] }
  0x78   : > { %v618_v3 = vrot.slane %v616_v11, 4  ;;  %v591_v27 = vsel %vm6735_vm2, %v586_v21, %v590_v57  ;;  %v2888_v29 = vsel %vm6957_vm6, %v2886_v9, %v2887_v61  ;;  %v622_v31 = vshll.u32 %v284_v52, 16 }
  0x79   : > { %v5442_v32 = vrot.slane %v5426_v59, 9  ;;  %v601_v34 = vsel %vm6735_vm2, %v596_v54, %v600_v47  ;;  %v5459_v22 = vcombine.low %v2885_v23, %v2888_v29  ;;  %v609_v35 = vor.u32 %v608_v18, %v605_v20  ;;  %v286_v18 = vld [vmem:[%s6716_s27 + $0xbc] sm:$0x1] }
  0x7a   : > { %v619_v36 = vor.u32 %v618_v3, %v614_v26  ;;  %v5166_v13 = vcombine.low %v591_v27, %v601_v34  ;;  %v624_v56 = vrot.slane %v622_v31, 5  ;;  %v2891_v39 = vrot.slane %v6858_v60, 5  ;;  %v5428_v31 = vld [vmem:[%s6716_s27 + $0x60] sm:$0xe] }
  0x7b   : > { %v2894_v41 = vrot.slane %v6866_v10, 5  ;;  %6106 = vmatprep.mubr.msk.bf16.mxu0 %vm731_vm3, %v5459_v22  ;;  %v610_v57 = vrot.slane %v609_v35, 4  ;;  %v627_v44 = vshrl.u32 %v7093_v33, 16  ;;  %v630_v47 = vshll.u32 %v7093_v33, 16 }
  0x7c   : > { %v620_v43 = vrot.slane %v619_v36, 4  ;;  %5952 = vmatprep.mubr.msk.bf16.mxu1 %vm731_vm3, %v5166_v13  ;;  %v2892_v60 = vsel %vm6957_vm6, %v5442_v32, %v2891_v39  ;;  %v2893_v52 = vrot.slane %v2891_v39, 4  ;;  %v636_v10 = vshll.u32 %v7098_v30, 16  ;;  %v5429_v36 = vld [vmem:[%s6716_s27 + $0x6c] sm:$0xe] }
  0x7d   : > { %v640_v49 = vshrl.u32 %v7098_v30, 16  ;;  %v615_v53 = vsel %vm6735_vm2, %v610_v57, %v614_v26  ;;  %v629_v63 = vrot.slane %v627_v44, 4  ;;  %v632_v1 = vrot.slane %v630_v47, 5 }
  0x7e   : > { %v625_v61 = vsel %vm6735_vm2, %v620_v43, %v624_v56  ;;  %v2895_v11 = vsel %vm6957_vm6, %v2893_v52, %v2894_v41  ;;  %v638_v59 = vrot.slane %v636_v10, 5  ;;  %v646_v20 = vshll.u32 %v285_v37, 16  ;;  %v5364_v52 = vld [vmem:[%s6716_s27 + $0x74] sm:$0x1] }
  0x7f   : > { %v5167_v6 = vcombine.low %v615_v53, %v625_v61  ;;  %v642_v21 = vrot.slane %v640_v49, 4  ;;  %v5460_v23 = vcombine.low %v2892_v60, %v2895_v11  ;;  %v633_v9 = vor.u32 %v632_v1, %v629_v63  ;;  %v5363_v60 = vld [vmem:[%s6716_s27 + $0x70] sm:$0xf] }
  0x80   : > { %v5443_v54 = vrot.slane %v5427_v45, 9  ;;  %v2898_v3 = vrot.slane %v6889_v51, 5  ;;  %v2901_v27 = vrot.slane %v6895_v0, 5  ;;  %v651_v29 = vshrl.u32 %v7108_v62, 16 }
  0x81   : > { %5953 = vmatmul.mubr.msk.bf16.gmra.mrb[24].mxu1 %vm731_vm3, %v5167_v6  ;;  %v643_v26 = vor.u32 %v642_v21, %v638_v59  ;;  %6107 = vmatmul.mubr.msk.bf16.gmra.mrb[8].mxu0 %vm731_vm3, %v5460_v23  ;;  %v634_v32 = vrot.slane %v633_v9, 4  ;;  %v648_v34 = vrot.slane %v646_v20, 5  ;;  %v654_v22 = vshll.u32 %v7108_v62, 16 }
  0x82   : > { %v660_v35 = vshll.u32 %v7120_v4, 16  ;;  %v2899_v51 = vsel %vm6957_vm6, %v5443_v54, %v2898_v3  ;;  %v2900_v56 = vrot.slane %v2898_v3, 4  ;;  %v653_v0 = vrot.slane %v651_v29, 4  ;;  %v5430_v54 = vld [vmem:[%s6716_s27 + $0x78] sm:$0xe] }
  0x83   : > { %v644_v13 = vrot.slane %v643_v26, 4  ;;  %v639_v39 = vsel %vm6735_vm2, %v634_v32, %v638_v59  ;;  %v656_v41 = vrot.slane %v654_v22, 5  ;;  %v664_v45 = vshrl.u32 %v7120_v4, 16  ;;  %v6572_v29 = vld [vmem:[%s6716_s27] sm:$0xf] }
  0x84   : > { %v662_v37 = vrot.slane %v660_v35, 5  ;;  %v2902_v43 = vsel %vm6957_vm6, %v2900_v56, %v2901_v27  ;;  %v670_v44 = vshll.u32 %v286_v18, 16  ;;  %v5444_v47 = vrot.slane %v5428_v31, 9  ;;  %v7160_v31 = vld [vmem:[%s6716_s27 + $0x4] sm:$0xf] }
  0x85   : > { %v649_v57 = vsel %vm6735_vm2, %v644_v13, %v648_v34  ;;  %v5461_v49 = vcombine.low %v2899_v51, %v2902_v43  ;;  %v657_v53 = vor.u32 %v656_v41, %v653_v0  ;;  %v666_v61 = vrot.slane %v664_v45, 4  ;;  %v7164_v34 = vld [vmem:[%s6716_s27 + $0x7c] sm:$0xf]  ;;  %v7167_v22 = vld [vmem:[%s6716_s27 + $0x80] sm:$0x1] }
  0x86   : > { %v5168_v10 = vcombine.low %v639_v39, %v649_v57  ;;  %v672_v63 = vrot.slane %v670_v44, 5  ;;  %v2905_v1 = vrot.slane %v6919_v46, 5  ;;  %v2908_v6 = vrot.slane %v6926_v55, 5  ;;  %v5431_v35 = vld [vmem:[%s6716_s27 + $0x84] sm:$0xe] }
  0x87   : > { %v5445_v11 = vrot.slane %v5429_v36, 9  ;;  %6110 = vmatprep.mubr.msk.bf16.mxu0 %vm731_vm3, %v5461_v49  ;;  %v658_v59 = vrot.slane %v657_v53, 4  ;;  %v667_v21 = vor.u32 %v666_v61, %v662_v37  ;;  %v2912_v23 = vrot.slane %v5363_v60, 5  ;;  %v5369_v0 = vld [vmem:[%s6716_s27 + $0x88] sm:$0xf] }
  0x88   : > { %5956 = vmatprep.mubr.msk.bf16.mxu1 %vm731_vm3, %v5168_v10  ;;  %v2915_v9 = vrot.slane %v5364_v52, 5  ;;  %v2906_v20 = vsel %vm6957_vm6, %v5444_v47, %v2905_v1  ;;  %v2907_v46 = vrot.slane %v2905_v1, 4  ;;  %v5187_v32 = vcombine.low %v6572_v29, %v7160_v31  ;;  %v5370_v39 = vld [vmem:[%s6716_s27 + $0x8c] sm:$0x1]  ;;  %v5372_v45 = vld [vmem:[%s6716_s27 + $0x94] sm:$0xf] }
  0x89   : > { %v663_v55 = vsel %vm6735_vm2, %v658_v59, %v662_v37  ;;  %v668_v18 = vrot.slane %v667_v21, 4  ;;  %v2913_v26 = vsel %vm6957_vm6, %v5445_v11, %v2912_v23  ;;  %v2914_v3 = vrot.slane %v2912_v23, 4  ;;  %v5373_v52 = vld [vmem:[%s6716_s27 + $0x98] sm:$0x1]  ;;  %v5432_v10 = vld [vmem:[%s6716_s27 + $0x90] sm:$0xe] }
  0x8a   : > { %v2909_v27 = vsel %vm6957_vm6, %v2907_v46, %v2908_v6  ;;  %v5446_v56 = vrot.slane %v5430_v54, 9  ;;  %v2919_v57 = vrot.slane %v7164_v34, 5  ;;  %v2922_v43 = vrot.slane %v7167_v22, 5  ;;  %v5376_v11 = vld [vmem:[%s6716_s27 + $0xa4] sm:$0x1] }
  0x8b   : > { %v673_v36 = vsel %vm6735_vm2, %v668_v18, %v672_v63  ;;  %v5462_v13 = vcombine.low %v2906_v20, %v2909_v27  ;;  %v2916_v51 = vsel %vm6957_vm6, %v2914_v3, %v2915_v9  ;;  %v5447_v44 = vrot.slane %v5431_v35, 9  ;;  %v5375_v63 = vld [vmem:[%s6716_s27 + $0xa0] sm:$0xf]  ;;  %v5433_v59 = vld [vmem:[%s6716_s27 + $0x9c] sm:$0xe] }
  0x8c   : > { %v5169_v41 = vcombine.low %v663_v55, %v673_v36  ;;  %v5463_v37 = vcombine.low %v2913_v26, %v2916_v51  ;;  %v2926_v47 = vrot.slane %v5369_v0, 5  ;;  %v2929_v60 = vrot.slane %v5370_v39, 5  ;;  %v6574_v21 = vld [vmem:[%s6716_s27 + $0xc] sm:$0xf]  ;;  %v7194_v23 = vld [vmem:[%s6716_s27 + $0x10] sm:$0xf] }
  0x8d   : > { %6111 = vmatmul.mubr.msk.bf16.gmra.mrb[12].mxu0 %vm731_vm3, %v5462_v13  ;;  %v2920_v49 = vsel %vm6957_vm6, %v5446_v56, %v2919_v57  ;;  %v2921_v53 = vrot.slane %v2919_v57, 4  ;;  %v2933_v61 = vrot.slane %v5372_v45, 5  ;;  %v5188_v9 = vcombine.low %v6574_v21, %v7194_v23  ;;  %v6576_v27 = vld [vmem:[%s6716_s27 + $0x18] sm:$0xf]  ;;  %v7203_v29 = vld [vmem:[%s6716_s27 + $0x1c] sm:$0xf] }
  0x8e   : > { %5957 = vmatmul.mubr.msk.bf16.gmra.mrb[28].mxu1 %vm731_vm3, %v5169_v41  ;;  %6114 = vmatprep.mubr.msk.bf16.mxu0 %vm731_vm3, %v5463_v37  ;;  %v2927_v1 = vsel %vm6957_vm6, %v5447_v44, %v2926_v47  ;;  %v2928_v6 = vrot.slane %v2926_v47, 4  ;;  %v5448_v46 = vrot.slane %v5432_v10, 9  ;;  %v2936_v54 = vrot.slane %v5373_v52, 5  ;;  %v5378_v51 = vld [vmem:[%s6716_s27 + $0xac] sm:$0xf]  ;;  %v7211_v39 = vld [vmem:[%s8504_s1 + $0x18] sm:$0xff]  }
  0x8f   : > { %5962 = vmatprep.mubr.msk.bf16.mxu1 %vm731_vm3, %v5187_v32  ;;  %v2923_v20 = vsel %vm6957_vm6, %v2921_v53, %v2922_v43  ;;  %v2935_v26 = vrot.slane %v2933_v61, 4  ;;  %v2940_v3 = vrot.slane %v5375_v63, 5  ;;  %v5189_v32 = vcombine.low %v6576_v27, %v7203_v29  ;;  %v5381_v0 = vld [vmem:[%s6716_s27 + $0xb8] sm:$0xf]  ;;  %v6578_v57 = vld [vmem:[%s8504_s1 + $0x10] sm:$0xff]  }
  0x90   : > { %v5464_v55 = vcombine.low %v2920_v49, %v2923_v20  ;;  %v2930_v18 = vsel %vm6957_vm6, %v2928_v6, %v2929_v60  ;;  %v5449_v36 = vrot.slane %v5433_v59, 9  ;;  %v2943_v13 = vrot.slane %v5376_v11, 5  ;;  %v5379_v47 = vld [vmem:[%s6716_s27 + $0xb0] sm:$0x1]  ;;  %v5434_v60 = vld [vmem:[%s6716_s27 + $0xa8] sm:$0xe] }
  0x91   : > { %v5465_v35 = vcombine.low %v2927_v1, %v2930_v18  ;;  %v2942_v56 = vrot.slane %v2940_v3, 4  ;;  %v2934_v41 = vsel %vm6957_vm6, %v5448_v46, %v2933_v61  ;;  %v2937_v37 = vsel %vm6957_vm6, %v2935_v26, %v2936_v54  ;;  %v5382_v10 = vld [vmem:[%s6716_s27 + $0xbc] sm:$0x1]  ;;  %v5435_v49 = vld [vmem:[%s6716_s27 + $0xb4] sm:$0xe] }
  0x92   : > { %v2947_v45 = vrot.slane %v5378_v51, 5  ;;  %v2941_v43 = vsel %vm6957_vm6, %v5449_v36, %v2940_v3  ;;  %v2954_v52 = vrot.slane %v5381_v0, 5  ;;  %v6579_v53 = vld [vmem:[%s6716_s27 + $0x24] sm:$0xf]  ;;  %v7235_v61 = vld [vmem:[%s6716_s27 + $0x28] sm:$0xf]  ;;  %v5466_v1 = vcombine.low %v2934_v41, %v2937_v37 }
  0x93   : > { %v2944_v44 = vsel %vm6957_vm6, %v2942_v56, %v2943_v13  ;;  %v5190_v63 = vcombine.low %v6579_v53, %v7235_v61  ;;  %v5384_v6 = vld [vmem:[%s6716_s27 + $0xc4] sm:$0xf]  ;;  %v5450_v59 = vrot.slane %v5434_v60, 9  ;;  %v6581_v20 = vld [vmem:[%s6716_s27 + $0x30] sm:$0xf]  ;;  %v2957_v26 = vrot.slane %v5382_v10, 5 }
  0x94   : > { %v5467_v11 = vcombine.low %v2941_v43, %v2944_v44  ;;  %v2949_v21 = vrot.slane %v2947_v45, 4  ;;  %v7241_v46 = vld [vmem:[%s6716_s27 + $0x34] sm:$0xf]  ;;  %v2956_v18 = vrot.slane %v2954_v52, 4  ;;  %v5385_v13 = vld [vmem:[%s6716_s27 + $0xc8] sm:$0x1] }
  0x95   : > { %6115 = vmatmul.mubr.msk.bf16.gmra.mrb[16].mxu0 %vm731_vm3, %v5464_v55  ;;  %v5191_v54 = vcombine.low %v6581_v20, %v7241_v46  ;;  %v5451_v55 = vrot.slane %v5435_v49, 9  ;;  %v2948_v3 = vsel %vm6957_vm6, %v5450_v59, %v2947_v45  ;;  %v5436_v51 = vld [vmem:[%s6716_s27 + $0xc0] sm:$0xe]  ;;  %v6583_v56 = vld [vmem:[%s6716_s27 + $0x3c] sm:$0xf]  ;;  %v2964_v44 = vrot.slane %v5385_v13, 5 }
  0x96   : > { %5963 = vmatmul.mubr.msk.bf16.vlgmr.msra.gmra.mrb[0].mxu1 %vm731_vm3, %v5188_v9  ;;  %6118 = vmatprep.mubr.msk.bf16.mxu0 %vm731_vm3, %v5465_v35  ;;  %v2950_v9 = vrot.slane %v5379_v47, 5  ;;  %v2958_v36 = vsel %vm6957_vm6, %v2956_v18, %v2957_v26  ;;  %v7260_v0 = vld [vmem:[%s6716_s27 + $0x40] sm:$0xf]  ;;  %v5193_v47 = vcombine.low %v6870_v15, %v6873_v25  ;;  %v2334_v10 = vshll.u32 %v7164_v34, 16  ;;  %v6530_v53 = vld [vmem:[%s6716_s27 + $0x18] sm:$0xff]  }
  0x97   : > { %5995 = vmatpush3.bf16.msra.mxu1 %v6578_v57  ;;  %5966 = vmatprep.mubr.msk.bf16.mxu1 %vm731_vm3, %v5189_v32  ;;  %v2961_v32 = vrot.slane %v5384_v6, 5  ;;  %v2955_v35 = vsel %vm6957_vm6, %v5451_v55, %v2954_v52  ;;  %v5192_v41 = vcombine.low %v6583_v56, %v7260_v0  ;;  %v5452_v57 = vrot.slane %v5436_v51, 9 }
  0x98   : > { %6028 = vmatprep.subr.bf16.mxu1 %v7211_v39  ;;  %v2951_v27 = vsel %vm6957_vm6, %v2949_v21, %v2950_v9  ;;  %v5469_v45 = vcombine.low %v2955_v35, %v2958_v36  ;;  %v2338_v15 = vshrl.u32 %v7164_v34, 16  ;;  %v5194_v49 = vcombine.low %v6899_v8, %v6905_v19  ;;  %v1236_v8 = vld [vmem:[%s6716_s27] sm:$0xe]  ;;  %v1237_v19 = vld [vmem:[%s6716_s27 + $0xc] sm:$0xe] }
  0x99   : > { %v5468_v37 = vcombine.low %v2948_v3, %v2951_v27  ;;  %v2963_v43 = vrot.slane %v2961_v32, 4  ;;  %v2962_v60 = vsel %vm6957_vm6, %v5452_v57, %v2961_v32  ;;  %v1296_v21 = vrot.slane %v7194_v23, 5  ;;  %v1238_v34 = vld [vmem:[%s6716_s27 + $0x18] sm:$0xe]  ;;  %v6533_v27 = vld [vmem:[%s6716_s27 + $0x24] sm:$0xff]   ;;  %v6535_v32 = vld [vmem:[%s6716_s27 + $0x30] sm:$0xff]  }
  0x9a   : > { %v2340_v6 = vrot.slane %v2338_v15, 4  ;;  %v2344_v9 = vshll.u32 %v7167_v22, 16  ;;  %v1289_v23 = vrot.slane %v7160_v31, 5  ;;  %v1303_v20 = vrot.slane %v7203_v29, 5  ;;  %v1240_v36 = vld [vmem:[%s6716_s27 + $0x30] sm:$0xe] }
  0x9b   : > { %v2965_v52 = vsel %vm6957_vm6, %v2963_v43, %v2964_v44  ;;  %v5196_v18 = vcombine.low %v6951_v48, %v6964_v7  ;;  %v1310_v26 = vrot.slane %v7235_v61, 5  ;;  %v1317_v3 = vrot.slane %v7241_v46, 5  ;;  %v6587_v48 = vld [vmem:[%s6716_s27 + $0x20] sm:$0x1]  ;;  %v6588_v57 = vld [vmem:[%s6716_s27 + $0x2c] sm:$0x1] }
  0x9c   : > { %v5470_v25 = vcombine.low %v2962_v60, %v2965_v52  ;;  %v5197_v22 = vcombine.low %v6983_v38, %v6990_v14  ;;  %v5198_v31 = vcombine.low %v7009_v12, %v7017_v24  ;;  %v5220_v29 = vrot.slane %v1236_v8, 9  ;;  %v7312_v46 = vld [vmem:[%s8504_s1 + $0x40] sm:$0xff]  }
  0x9d   : > { %6119 = vmatmul.mubr.msk.bf16.gmra.mrb[20].mxu0 %vm731_vm3, %v5466_v1  ;;  %v7280_v1 = vrot.slane %v2334_v10, 5  ;;  %v5221_v35 = vrot.slane %v1237_v19, 9  ;;  %v1298_v13 = vrot.slane %v1296_v21, 4  ;;  %v5222_v51 = vrot.slane %v1238_v34, 9  ;;  %v6589_v10 = vld [vmem:[%s6716_s27 + $0x38] sm:$0x1] }
  0x9e   : > { %5967 = vmatmul.mubr.msk.bf16.gmra.mrb[4].mxu1 %vm731_vm3, %v5190_v63  ;;  %6122 = vmatprep.mubr.msk.bf16.mxu0 %vm731_vm3, %v5467_v11  ;;  %v5195_v63 = vcombine.low %v6930_v5, %v6936_v17  ;;  %v6585_v11 = vld [vmem:[%s6716_s27 + $0x8] sm:$0x1]  ;;  %v6586_v5 = vld [vmem:[%s6716_s27 + $0x14] sm:$0x1]  ;;  %v1306_v7 = vrot.slane %v6587_v48, 5  ;;  %v5199_v38 = vcombine.low %v7041_v50, %v7046_v58  ;;  %v5200_v14 = vcombine.low %v7069_v40, %v7074_v42 }
  0x9f   : > { %5970 = vmatprep.mubr.msk.bf16.mxu1 %vm731_vm3, %v5191_v54  ;;  %8523 = vst [vmem:[#allocation2_spill] sm:$0xff] %v7280_v1  ;;  %v1292_v59 = vrot.slane %v6585_v11, 5  ;;  %v1299_v17 = vrot.slane %v6586_v5, 5  ;;  %v1239_v54 = vld [vmem:[%s6716_s27 + $0x24] sm:$0xe]  ;;  %v2341_v55 = vor.u32 %v2340_v6, %v7280_v1  ;;  %v1291_v56 = vrot.slane %v1289_v23, 4 }
  0xa0   : > { %v5223_v61 = vrot.slane %v1239_v54, 9  ;;  %v1313_v43 = vrot.slane %v6588_v57, 5  ;;  %v5224_v44 = vrot.slane %v1240_v36, 9  ;;  %v5201_v60 = vcombine.low %v7093_v33, %v7098_v30  ;;  %v1242_v6 = vld [vmem:[%s6716_s27 + $0x48] sm:$0xe]  ;;  %v6541_v58 = vld [vmem:[%s6716_s27 + $0x54] sm:$0xff]  }
  0xa1   : > { %v7325_v52 = vsel %vm6957_vm6, %v5220_v29, %v1289_v23  ;;  %v1320_v15 = vrot.slane %v6589_v10, 5  ;;  %v7346_v11 = vrot.slane %v2341_v55, 4  ;;  %v5555_v34 = vld [vmem:[%s6716_s27 + $0x18] sm:$0xf]  ;;  %v6539_v5 = vld [vmem:[%s6716_s27 + $0x48] sm:$0xff]  }
  0xa2   : > { %v7361_v19 = vsel %vm6957_vm6, %v5223_v61, %v1310_v26  ;;  %v6590_v23 = vld [vmem:[%s6716_s27 + $0x44] sm:$0x1]  ;;  %v1243_v55 = vld [vmem:[%s6716_s27 + $0x54] sm:$0xe]  ;;  %v3679_v48 = vshll.u32 %v5555_v34, 16 }
  0xa3   : > { %8525 = vst [vmem:[#allocation4_spill] sm:$0xff] %v7346_v11  ;;  %v5227_v10 = vrot.slane %v1243_v55, 9  ;;  %v5561_v55 = vld [vmem:[%s6716_s27 + $0x30] sm:$0xf]  ;;  %v5562_v50 = vld [vmem:[%s6716_s27 + $0x34] sm:$0xf] }
  0xa4   : > { %v3681_v24 = vrot.slane %v3679_v48, 5 }
  0xa5   : > { %6123 = vmatmul.mubr.msk.bf16.gmra.mrb[24].mxu0 %vm731_vm3, %v5468_v37  ;;  %v1241_v37 = vld [vmem:[%s6716_s27 + $0x3c] sm:$0xe] }
  0xa6   : > { %5971 = vmatmul.mubr.msk.bf16.gmra.mrb[8].mxu1 %vm731_vm3, %v5192_v41  ;;  %6126 = vmatprep.mubr.msk.bf16.mxu0 %vm731_vm3, %v5469_v45  ;;  %v1305_v41 = vrot.slane %v1303_v20, 4  ;;  %v1312_v45 = vrot.slane %v1310_v26, 4 }
  0xa7   : > { %5974 = vmatprep.mubr.msk.bf16.mxu1 %vm731_vm3, %v5193_v47  ;;  %v1319_v47 = vrot.slane %v1317_v3, 4 }
  0xa8   : > { %v7357_v8 = vsel %vm6957_vm6, %v1305_v41, %v1306_v7  ;;  %v7376_v26 = vsel %vm6957_vm6, %v1312_v45, %v1313_v43  ;;  %v6592_v45 = vld [vmem:[%s6716_s27 + $0x50] sm:$0x1]  ;;  %v3733_v41 = vshll.u32 %v5562_v50, 16 }
  0xa9   : > { %v1334_v57 = vrot.slane %v6592_v45, 5  ;;  %v8533_v11 = vcombine.low %v7361_v19, %v7376_v26 }
  0xad   : > { %6127 = vmatmul.mubr.msk.bf16.gmra.mrb[28].mxu0 %vm731_vm3, %v5470_v25  ;;  %v1324_v25 = vrot.slane %v7260_v0, 5  ;;  %v7343_v0 = vsel %vm6957_vm6, %v5222_v51, %v1303_v20  ;;  %v1327_v20 = vrot.slane %v6590_v23, 5  ;;  %v3676_v51 = vshrl.u32 %v5555_v34, 16  ;;  %v7420_v34 = vld [vmem:[%s6716_s27 + $0x5c] sm:$0x1] }
  0xae   : > { %5975 = vmatmul.mubr.msk.bf16.gmra.mrb[12].mxu1 %vm731_vm3, %v5194_v49  ;;  %6132 = vmatprep.mubr.msk.bf16.mxu0 %vm731_vm3, %v6530_v53  ;;  %v7329_v49 = vrot.slane %v2344_v9, 5  ;;  %v7335_v53 = vsel %vm6957_vm6, %v5221_v35, %v1296_v21  ;;  %v7353_v21 = vsel %vm6957_vm6, %v1291_v56, %v1292_v59  ;;  %v5225_v9 = vrot.slane %v1241_v37, 9  ;;  %v6591_v59 = vld [vmem:[%s6716_s27 + $0x4c] sm:$0xf] }
  0xaf   : > { %5978 = vmatprep.mubr.msk.bf16.mxu1 %vm731_vm3, %v5195_v63  ;;  %v7339_v63 = vsel %vm6957_vm6, %v1298_v13, %v1299_v17  ;;  %v7367_v17 = vsel %vm6957_vm6, %v5224_v44, %v1317_v3  ;;  %v1331_v54 = vrot.slane %v6591_v59, 5  ;;  %v1326_v3 = vrot.slane %v1324_v25, 4  ;;  %v7391_v13 = vld [vmem:[%s6716_s27 + $0x60] sm:$0xe] }
  0xb0   : > { %8524 = vst [vmem:[#allocation3_spill] sm:$0xff] %v7329_v49  ;;  %v7401_v43 = vsel %vm6957_vm6, %v5225_v9, %v1324_v25  ;;  %v6593_v25 = vld [vmem:[%s6716_s27 + $0x58] sm:$0xf]  ;;  %v1341_v9 = vrot.slane %v7420_v34, 5  ;;  %v5228_v23 = vrot.slane %v7391_v13, 9  ;;  %v3678_v12 = vrot.slane %v3676_v51, 4 }
  0xb1   : > { %v1333_v37 = vrot.slane %v1331_v54, 4  ;;  %v7405_v44 = vsel %vm6957_vm6, %v1326_v3, %v1327_v20  ;;  %v6595_v20 = vld [vmem:[%s6716_s27 + $0x64] sm:$0xf]  ;;  %v6596_v34 = vld [vmem:[%s6716_s27 + $0x70] sm:$0xf]  ;;  %v3737_v56 = vshrl.u32 %v5562_v50, 16 }
  0xb2   : > { %v1345_v59 = vrot.slane %v6595_v20, 5  ;;  %v1352_v20 = vrot.slane %v6596_v34, 5  ;;  %v5560_v34 = vld [vmem:[%s6716_s27 + $0x2c] sm:$0x1] }
  0xb3   : > { %v7437_v3 = vsel %vm6957_vm6, %v1333_v37, %v1334_v57  ;;  %v3724_v37 = vshrl.u32 %v5561_v55, 16  ;;  %v3727_v57 = vshll.u32 %v5561_v55, 16 }
  0xb4   : > { %v1347_v36 = vrot.slane %v1345_v59, 4 }
  0xb5   : > { %6133 = vmatmul.mubr.msk.bf16.vlgmr.msra.gmra.mrb[0].mxu0 %vm731_vm3, %v6533_v27  ;;  %v7380_v27 = vsel %vm6957_vm6, %v1319_v47, %v1320_v15  ;;  %v5557_v15 = vld [vmem:[%s6716_s27 + $0x20] sm:$0x1]  ;;  %v3729_v50 = vrot.slane %v3727_v57, 5  ;;  %v6547_v57 = vld [vmem:[%s6716_s27 + $0x78] sm:$0xff]  }
  0xb6   : > { %5979 = vmatmul.mubr.msk.bf16.gmra.mrb[16].mxu1 %vm731_vm3, %v5196_v18  ;;  %6165 = vmatpush3.bf16.msra.mxu0 %v7022_v16  ;;  %v6537_v16 = vld [vmem:[%s6716_s27 + $0x3c] sm:$0xff]   ;;  %v3695_v48 = vshll.u32 %v5557_v15, 16 }
  0xb7   : > { %5982 = vmatprep.mubr.msk.bf16.mxu1 %vm731_vm3, %v5197_v22  ;;  %6136 = vmatprep.mubr.msk.bf16.mxu0 %vm731_vm3, %v6535_v32  ;;  %v5556_v18 = vld [vmem:[%s6716_s27 + $0x1c] sm:$0xf]  ;;  %v5226_v22 = vrot.slane %v1242_v6, 9  ;;  %v5558_v6 = vld [vmem:[%s6716_s27 + $0x24] sm:$0xf] }
  0xb8   : > { %6198 = vmatprep.subr.bf16.mxu0 %v7312_v46  ;;  %v3685_v7 = vshll.u32 %v5556_v18, 16  ;;  %v3689_v61 = vshrl.u32 %v5556_v18, 16  ;;  %v3703_v13 = vshll.u32 %v5558_v6, 16  ;;  %v3682_v18 = vor.u32 %v3681_v24, %v3678_v12 }
  0xb9   : > { %v7409_v47 = vsel %vm6957_vm6, %v5226_v22, %v1331_v54  ;;  %v5559_v54 = vld [vmem:[%s6716_s27 + $0x28] sm:$0xf]  ;;  %v3700_v22 = vshrl.u32 %v5558_v6, 16  ;;  %v1354_v24 = vrot.slane %v1352_v20, 4 }
  0xba   : > { %v3705_v29 = vrot.slane %v3703_v13, 5  ;;  %v3726_v13 = vrot.slane %v3724_v37, 4  ;;  %v3683_v40 = vrot.slane %v3682_v18, 4 }
  0xbb   : > { %v3702_v15 = vrot.slane %v3700_v22, 4  ;;  %v5563_v22 = vld [vmem:[%s6716_s27 + $0x38] sm:$0x1] }
  0xbc   : > { %v3743_v37 = vshll.u32 %v5563_v22, 16 }
  0xbd   : > { %6137 = vmatmul.mubr.msk.bf16.gmra.mrb[4].mxu0 %vm731_vm3, %v6537_v16  ;;  %v1338_v16 = vrot.slane %v6593_v25, 5  ;;  %v1245_v25 = vld [vmem:[%s6716_s27 + $0x6c] sm:$0xe] }
  0xbe   : > { %5983 = vmatmul.mubr.msk.bf16.gmra.mrb[20].mxu1 %vm731_vm3, %v5198_v31  ;;  %6140 = vmatprep.mubr.msk.bf16.mxu0 %vm731_vm3, %v6539_v5  ;;  %v7430_v31 = vrot.slane %v3685_v7, 5  ;;  %v3691_v5 = vrot.slane %v3689_v61, 4  ;;  %v3709_v7 = vshll.u32 %v5559_v54, 16  ;;  %v3713_v61 = vshrl.u32 %v5559_v54, 16 }
  0xbf   : > { %5986 = vmatprep.mubr.msk.bf16.mxu1 %vm731_vm3, %v5199_v38  ;;  %v6543_v38 = vld [vmem:[%s6716_s27 + $0x60] sm:$0xff]   ;;  %v7444_v51 = vsel %vm6957_vm6, %v5227_v10, %v1338_v16  ;;  %v1340_v45 = vrot.slane %v1338_v16, 4  ;;  %v6597_v10 = vld [vmem:[%s6716_s27 + $0x68] sm:$0x1]  ;;  %v7451_v16 = vrot.slane %v3695_v48, 5  ;;  %v5229_v54 = vrot.slane %v1245_v25, 9 }
  0xc0   : > { %v3692_v6 = vor.u32 %v3691_v5, %v7430_v31  ;;  %v1348_v35 = vrot.slane %v6597_v10, 5  ;;  %v7454_v32 = vrot.slane %v3709_v7, 5  ;;  %v3715_v12 = vrot.slane %v3713_v61, 4  ;;  %v6598_v5 = vld [vmem:[%s6716_s27 + $0x74] sm:$0x1]  ;;  %v6545_v25 = vld [vmem:[%s6716_s27 + $0x6c] sm:$0xff]  }
  0xc1   : > { %v1355_v55 = vrot.slane %v6598_v5, 5  ;;  %v7473_v48 = vsel %vm6957_vm6, %v5228_v23, %v1345_v59  ;;  %v3706_v7 = vor.u32 %v3705_v29, %v3702_v15  ;;  %v3719_v61 = vshll.u32 %v5560_v34, 16  ;;  %v6600_v10 = vld [vmem:[%s6716_s27 + $0x88] sm:$0xf] }
  0xc2   : > { %v3693_v42 = vrot.slane %v3692_v6, 4  ;;  %v7478_v33 = vsel %vm6957_vm6, %v1340_v45, %v1341_v9  ;;  %v7486_v23 = vsel %vm6957_vm6, %v1347_v36, %v1348_v35  ;;  %v7490_v29 = vsel %vm6957_vm6, %v5229_v54, %v1352_v20  ;;  %v1247_v45 = vld [vmem:[%s6716_s27 + $0x84] sm:$0xe]  ;;  %v5564_v20 = vld [vmem:[%s6716_s27 + $0x3c] sm:$0xf] }
  0xc3   : > { %v7494_v9 = vsel %vm6957_vm6, %v1354_v24, %v1355_v55  ;;  %v3730_v59 = vor.u32 %v3729_v50, %v3726_v13  ;;  %v3688_v6 = vsel %vm6735_vm2, %v3683_v40, %v7430_v31  ;;  %v1366_v15 = vrot.slane %v6600_v10, 5  ;;  %v6601_v24 = vld [vmem:[%s6716_s27 + $0x80] sm:$0x1] }
  0xc4   : > { %v3698_v35 = vsel %vm6735_vm2, %v3693_v42, %v7451_v16  ;;  %v3707_v54 = vrot.slane %v3706_v7, 4  ;;  %v3721_v34 = vrot.slane %v3719_v61, 5  ;;  %v1362_v5 = vrot.slane %v6601_v24, 5  ;;  %v7508_v55 = vld [vmem:[%s6716_s27 + $0x40] sm:$0xf] }
  0xc5   : > { %6141 = vmatmul.mubr.msk.bf16.gmra.mrb[8].mxu0 %vm731_vm3, %v6541_v58  ;;  %v3739_v58 = vrot.slane %v3737_v56, 4  ;;  %v1246_v56 = vld [vmem:[%s6716_s27 + $0x78] sm:$0xe]  ;;  %8526 = vst [vmem:[#allocation5_spill] sm:$0xff] %v7508_v55  ;;  %v3745_v13 = vrot.slane %v3743_v37, 5  ;;  %v5231_v16 = vrot.slane %v1247_v45, 9  ;;  %v8527_v50 = vcombine.low %v7108_v62, %v7120_v4 }
  0xc6   : > { %5987 = vmatmul.mubr.msk.bf16.gmra.mrb[24].mxu1 %vm731_vm3, %v5200_v14  ;;  %6144 = vmatprep.mubr.msk.bf16.mxu0 %vm731_vm3, %v6543_v38  ;;  %v7467_v14 = vrot.slane %v3733_v41, 5  ;;  %v6599_v41 = vld [vmem:[%s6716_s27 + $0x7c] sm:$0xf]  ;;  %v3731_v40 = vrot.slane %v3730_v59, 4  ;;  %v6602_v42 = vld [vmem:[%s6716_s27 + $0x8c] sm:$0x1]  ;;  %v3712_v45 = vsel %vm6735_vm2, %v3707_v54, %v7454_v32 }
  0xc7   : > { %5990 = vmatprep.mubr.msk.bf16.mxu1 %vm731_vm3, %v5201_v60  ;;  %v3716_v60 = vor.u32 %v3715_v12, %v7454_v32  ;;  %v1359_v18 = vrot.slane %v6599_v41, 5  ;;  %v5230_v12 = vrot.slane %v1246_v56, 9  ;;  %v3748_v7 = vshrl.u32 %v5564_v20, 16  ;;  %v6548_v41 = vld [vmem:[%s6716_s27 + $0x84] sm:$0xff]   ;;  %v6549_v59 = vld [vmem:[%s6716_s27 + $0x90] sm:$0xff]  }
  0xc8   : > { %v3740_v36 = vor.u32 %v3739_v58, %v7467_v14  ;;  %v1369_v58 = vrot.slane %v6602_v42, 5  ;;  %v3751_v61 = vshll.u32 %v5564_v20, 16  ;;  %v1368_v56 = vrot.slane %v1366_v15, 4  ;;  %v7548_v20 = vld [vmem:[%s6716_s27 + $0x4c] sm:$0xf] }
  0xc9   : > { %v3717_v31 = vrot.slane %v3716_v60, 4  ;;  %v1361_v22 = vrot.slane %v1359_v18, 4  ;;  %v3757_v62 = vshll.u32 %v7508_v55, 16  ;;  %v3761_v4 = vshrl.u32 %v7508_v55, 16  ;;  %v7626_v37 = vld [vmem:[%s6716_s27 + $0x5c] sm:$0x1] }
  0xca   : > { %v3741_v60 = vrot.slane %v3740_v36, 4  ;;  %v7540_v10 = vsel %vm6957_vm6, %v5230_v12, %v1359_v18  ;;  %v3736_v24 = vsel %vm6735_vm2, %v3731_v40, %v7467_v14  ;;  %v7555_v32 = vsel %vm6957_vm6, %v5231_v16, %v1366_v15  ;;  %v7559_v18 = vld [vmem:[%s6716_s27 + $0x58] sm:$0xf]  ;;  %v7573_v40 = vld [vmem:[%s6716_s27 + $0x90] sm:$0xe] }
  0xcb   : > { %v3722_v36 = vsel %vm6735_vm2, %v3717_v31, %v3721_v34  ;;  %v3750_v54 = vrot.slane %v3748_v7, 4  ;;  %v3753_v34 = vrot.slane %v3751_v61, 5  ;;  %v5570_v31 = vld [vmem:[%s6716_s27 + $0x54] sm:$0xf]  ;;  %v3763_v14 = vrot.slane %v3761_v4, 4 }
  0xcc   : > { %v3746_v12 = vsel %vm6735_vm2, %v3741_v60, %v3745_v13  ;;  %v3781_v42 = vshll.u32 %v7548_v20, 16  ;;  %v3785_v7 = vshrl.u32 %v7548_v20, 16  ;;  %v3796_v13 = vshrl.u32 %v5570_v31, 16  ;;  %v1249_v38 = vld [vmem:[%s6716_s27 + $0x9c] sm:$0xe] }
  0xcd   : > { %6145 = vmatmul.mubr.msk.bf16.gmra.mrb[12].mxu0 %vm731_vm3, %v6545_v25  ;;  %v8528_v25 = vcombine.low %v7325_v52, %v7353_v21  ;;  %v7528_v52 = vcombine.low %v3688_v6, %v3698_v35  ;;  %v7544_v6 = vsel %vm6957_vm6, %v1361_v22, %v1362_v5  ;;  %v5567_v35 = vld [vmem:[%s6716_s27 + $0x48] sm:$0xf]  ;;  %v7565_v5 = vsel %vm6957_vm6, %v1368_v56, %v1369_v58  ;;  %v7568_v22 = vld [vmem:[%s6716_s27 + $0x44] sm:$0x1] }
  0xce   : > { %5991 = vmatmul.mubr.msk.bf16.gmra.mrb[28].mxu1 %vm731_vm3, %v8527_v50  ;;  %6148 = vmatprep.mubr.msk.bf16.mxu0 %vm731_vm3, %v6547_v57  ;;  %8529 = vst [vmem:[#allocation6_spill] sm:$0xff] %v7568_v22  ;;  %v7570_v50 = vrot.slane %v3757_v62, 5  ;;  %v3772_v15 = vshrl.u32 %v5567_v35, 16  ;;  %v3775_v16 = vshll.u32 %v5567_v35, 16  ;;  %v3799_v61 = vshll.u32 %v5570_v31, 16 }
  0xcf   : > { %5996 = vmatprep.mubr.msk.bf16.mxu1 %vm731_vm3, %v8528_v25  ;;  %v3805_v58 = vshll.u32 %v7559_v18, 16  ;;  %v3809_v25 = vshrl.u32 %v7559_v18, 16  ;;  %v8530_v60 = vcombine.low %v7335_v53, %v7339_v63  ;;  %v7585_v56 = vcombine.low %v3712_v45, %v3722_v36  ;;  %v7602_v35 = vld [vmem:[%s6716_s27 + $0x50] sm:$0x1]  ;;  %v6605_v62 = vld [vmem:[%s6716_s27 + $0x98] sm:$0x1] }
  0xd0   : > { %v7589_v4 = vcombine.low %v3736_v24, %v3746_v12  ;;  %v8531_v53 = vcombine.low %v7343_v0, %v7357_v8  ;;  %v3764_v45 = vor.u32 %v3763_v14, %v7570_v50  ;;  %v5573_v24 = vld [vmem:[%s6716_s27 + $0x60] sm:$0xf]  ;;  %v3774_v31 = vrot.slane %v3772_v15, 4  ;;  %v7608_v8 = vld [vmem:[%s6716_s27 + $0x64] sm:$0xf]  ;;  %v6551_v14 = vld [vmem:[%s6716_s27 + $0xa8] sm:$0xff]  }
  0xd1   : > { %v7605_v12 = vrot.slane %v3781_v42, 5  ;;  %v3787_v0 = vrot.slane %v3785_v7, 4  ;;  %v3801_v15 = vrot.slane %v3799_v61, 5  ;;  %v6604_v7 = vld [vmem:[%s6716_s27 + $0x94] sm:$0xf]  ;;  %v1376_v21 = vrot.slane %v6605_v62, 5 }
  0xd2   : > { %v1373_v63 = vrot.slane %v6604_v7, 5  ;;  %v3791_v57 = vshll.u32 %v7602_v35, 16  ;;  %v3820_v36 = vshrl.u32 %v5573_v24, 16  ;;  %v3833_v61 = vshrl.u32 %v7608_v8, 16  ;;  %v6606_v7 = vld [vmem:[%s6716_s27 + $0xa0] sm:$0xf] }
  0xd3   : > { %v1380_v55 = vrot.slane %v6606_v7, 5  ;;  %v3765_v62 = vrot.slane %v3764_v45, 4  ;;  %v1387_v45 = vrot.slane %v7098_v30, 5  ;;  %v7653_v7 = vld [vmem:[%s6716_s27 + $0x68] sm:$0x1]  ;;  %v6552_v30 = vld [vmem:[%s6716_s27 + $0xb4] sm:$0xff]  }
  0xd4   : > { %v3822_v19 = vrot.slane %v3820_v36, 4  ;;  %8535 = vst [vmem:[#allocation8_spill] sm:$0xff] %v7653_v7  ;;  %v6553_v36 = vld [vmem:[%s6716_s27 + $0xc0] sm:$0xff]  }
  0xd5   : > { %6149 = vmatmul.mubr.msk.bf16.gmra.mrb[16].mxu0 %vm731_vm3, %v6548_v41  ;;  %v3767_v41 = vshll.u32 %v7568_v22, 16  ;;  %v3823_v22 = vshll.u32 %v5573_v24, 16  ;;  %v3815_v24 = vshll.u32 %v7626_v37, 16 }
  0xd6   : > { %5997 = vmatmul.mubr.msk.bf16.vlgmr.msra.gmra.mrb[0].mxu1 %vm731_vm3, %v8530_v60  ;;  %6152 = vmatprep.mubr.msk.bf16.mxu0 %vm731_vm3, %v6549_v59  ;;  %v3754_v59 = vor.u32 %v3753_v34, %v3750_v54  ;;  %v7613_v54 = vld [vmem:[%s8504_s1 + $0x20] sm:$0xff]   ;;  %v3798_v60 = vrot.slane %v3796_v13, 4  ;;  %v3829_v13 = vshll.u32 %v7608_v8, 16 }
  0xd7   : > { %6029 = vmatpush3.bf16.msra.mxu1 %v7211_v39  ;;  %6000 = vmatprep.mubr.msk.bf16.mxu1 %vm731_vm3, %v8531_v53  ;;  %v3777_v39 = vrot.slane %v3775_v16, 5  ;;  %8532 = vst [vmem:[#allocation7_spill] sm:$0xff] %v7613_v54  ;;  %v6550_v34 = vld [vmem:[%s6716_s27 + $0x9c] sm:$0xff]   ;;  %v7618_v53 = vrot.slane %v3805_v58, 5  ;;  %v3811_v16 = vrot.slane %v3809_v25, 4  ;;  %v7620_v42 = vrot.slane %v3767_v41, 5 }
  0xd8   : > { %6232 = vmatprep.subr.bf16.mxu1 %v7613_v54  ;;  %v7631_v58 = vrot.slane %v3754_v59, 4  ;;  %v3788_v41 = vor.u32 %v3787_v0, %v7605_v12  ;;  %v3802_v54 = vor.u32 %v3801_v15, %v3798_v60  ;;  %v1375_v59 = vrot.slane %v1373_v63, 4  ;;  %v1250_v0 = vld [vmem:[%s6716_s27 + $0xa8] sm:$0xe] }
  0xd9   : > { %v3778_v25 = vor.u32 %v3777_v39, %v3774_v31  ;;  %v3812_v1 = vor.u32 %v3811_v16, %v7618_v53  ;;  %v3793_v31 = vrot.slane %v3791_v57, 5  ;;  %v5233_v39 = vrot.slane %v1249_v38, 9  ;;  %v6607_v57 = vld [vmem:[%s6716_s27 + $0xa4] sm:$0x1] }
  0xda   : > { %v3825_v26 = vrot.slane %v3823_v22, 5  ;;  %v7649_v60 = vrot.slane %v3829_v13, 5  ;;  %v3789_v15 = vrot.slane %v3788_v41, 4  ;;  %v1382_v16 = vrot.slane %v1380_v55, 4  ;;  %v6608_v41 = vld [vmem:[%s6716_s27 + $0xb0] sm:$0x1] }
  0xdb   : > { %v1383_v38 = vrot.slane %v6607_v57, 5  ;;  %v5234_v49 = vrot.slane %v1250_v0, 9  ;;  %v3760_v22 = vsel %vm6735_vm2, %v7631_v58, %v7570_v50  ;;  %v8536_v13 = vrot.slane %v7573_v40, 9  ;;  %v1251_v50 = vld [vmem:[%s6716_s27 + $0xb4] sm:$0xe] }
  0xdc   : > { %v1390_v57 = vrot.slane %v6608_v41, 5  ;;  %v3839_v0 = vshll.u32 %v7653_v7, 16  ;;  %v5576_v58 = vld [vmem:[%s6716_s27 + $0x6c] sm:$0xf]  ;;  %v7677_v40 = vsel %vm6957_vm6, %v1375_v59, %v1376_v21  ;;  %v8538_v59 = vcombine.low %v7401_v43, %v7405_v44 }
  0xdd   : > { %6153 = vmatmul.mubr.msk.bf16.gmra.mrb[20].mxu0 %vm731_vm3, %v6550_v34  ;;  %v8534_v34 = vcombine.low %v7367_v17, %v7380_v27  ;;  %v3803_v17 = vrot.slane %v3802_v54, 4  ;;  %v3813_v27 = vrot.slane %v3812_v1, 4  ;;  %v3770_v1 = vsel %vm6735_vm2, %v3765_v62, %v7620_v42 }
  0xde   : > { %6001 = vmatmul.mubr.msk.bf16.gmra.mrb[4].mxu1 %vm731_vm3, %v8533_v11  ;;  %6156 = vmatprep.mubr.msk.bf16.mxu0 %vm731_vm3, %v6551_v14  ;;  %v3835_v11 = vrot.slane %v3833_v61, 4  ;;  %v3779_v14 = vrot.slane %v3778_v25, 4  ;;  %v7665_v61 = vsel %vm6957_vm6, %v8536_v13, %v1373_v63  ;;  %v1389_v25 = vrot.slane %v1387_v45, 4 }
  0xdf   : > { %6004 = vmatprep.mubr.msk.bf16.mxu1 %vm731_vm3, %v8534_v34  ;;  %v3817_v34 = vrot.slane %v3815_v24, 5  ;;  %v3826_v54 = vor.u32 %v3825_v26, %v3822_v19  ;;  %v7684_v42 = vsel %vm6957_vm6, %v5233_v39, %v1380_v55  ;;  %v7688_v62 = vsel %vm6957_vm6, %v1382_v16, %v1383_v38  ;;  %v6609_v39 = vld [vmem:[%s6716_s27 + $0xb8] sm:$0xf] }
  0xe0   : > { %v3836_v24 = vor.u32 %v3835_v11, %v7649_v60  ;;  %v3784_v63 = vsel %vm6735_vm2, %v3779_v14, %v7605_v12  ;;  %v3794_v19 = vsel %vm6735_vm2, %v3789_v15, %v3793_v31  ;;  %v3808_v21 = vsel %vm6735_vm2, %v3803_v17, %v7618_v53  ;;  %v7737_v17 = vld [vmem:[%s6716_s27 + $0x7c] sm:$0xf] }
  0xe1   : > { %v3818_v12 = vsel %vm6735_vm2, %v3813_v27, %v3817_v34  ;;  %v7700_v55 = vsel %vm6957_vm6, %v5234_v49, %v1387_v45  ;;  %v7709_v31 = vsel %vm6957_vm6, %v1389_v25, %v1390_v57  ;;  %v5235_v53 = vrot.slane %v1251_v50, 9  ;;  %v7713_v49 = vld [vmem:[%s6716_s27 + $0x70] sm:$0xf]  ;;  %8542 = vst [vmem:[#allocation12_spill] sm:$0xff] %v7737_v17  ;;  %v5582_v27 = vld [vmem:[%s6716_s27 + $0x84] sm:$0xf] }
  0xe2   : > { %8537 = vst [vmem:[#allocation9_spill] sm:$0xff] %v7700_v55  ;;  %8539 = vst [vmem:[#allocation10_spill] sm:$0xff] %v7709_v31  ;;  %v1394_v26 = vrot.slane %v6609_v39, 5  ;;  %v3844_v45 = vshrl.u32 %v5576_v58, 16  ;;  %v8541_v43 = vcombine.low %v7409_v47, %v7437_v3  ;;  %v7719_v44 = vcombine.low %v3760_v22, %v3770_v1  ;;  %v5579_v3 = vld [vmem:[%s6716_s27 + $0x78] sm:$0xf] }
  0xe3   : > { %8540 = vst [vmem:[#allocation11_spill] sm:$0xff] %v7713_v49  ;;  %v7721_v11 = vrot.slane %v3826_v54, 4  ;;  %v7723_v14 = vrot.slane %v3836_v24, 4  ;;  %v7725_v15 = vrot.slane %v3839_v0, 5  ;;  %v7729_v38 = vcombine.low %v3784_v63, %v3794_v19  ;;  %v6554_v34 = vld [vmem:[%s6716_s27 + $0xcc] sm:$0xff]  }
  0xe4   : > { %v7733_v47 = vcombine.low %v3808_v21, %v3818_v12  ;;  %v7744_v22 = vld [vmem:[%s6716_s27 + $0xbc] sm:$0x1]  ;;  %v3847_v25 = vshll.u32 %v5576_v58, 16  ;;  %v3853_v41 = vshll.u32 %v7713_v49, 16  ;;  %v7749_v57 = vld [vmem:[%s6716_s27 + $0x88] sm:$0xf]  ;;  %v7753_v1 = vsel %vm6957_vm6, %v5235_v53, %v1394_v26 }
  0xe5   : > { %6157 = vmatmul.mubr.msk.bf16.gmra.mrb[24].mxu0 %vm731_vm3, %v6552_v30  ;;  %8543 = vst [vmem:[#allocation13_spill] sm:$0xff] %v7749_v57  ;;  %v7755_v54 = vrot.slane %v1394_v26, 4  ;;  %v7757_v24 = vrot.slane %v3844_v45, 4  ;;  %v3857_v0 = vshrl.u32 %v7713_v49, 16  ;;  %v5585_v50 = vld [vmem:[%s6716_s27 + $0x90] sm:$0xf]  ;;  %v8546_v58 = vcombine.low %v7444_v51, %v7478_v33 }
  0xe6   : > { %6005 = vmatmul.mubr.msk.bf16.gmra.mrb[8].mxu1 %vm731_vm3, %v8538_v59  ;;  %6160 = vmatprep.mubr.msk.bf16.mxu0 %vm731_vm3, %v6553_v36  ;;  %v3868_v19 = vshrl.u32 %v5579_v3, 16  ;;  %v3871_v21 = vshll.u32 %v5579_v3, 16  ;;  %v7770_v12 = vld [vmem:[%s6716_s27 + $0x94] sm:$0xf]  ;;  %v3877_v53 = vshll.u32 %v7737_v17, 16  ;;  %v3881_v39 = vshrl.u32 %v7737_v17, 16 }
  0xe7   : > { %6008 = vmatprep.mubr.msk.bf16.mxu1 %vm731_vm3, %v8541_v43  ;;  %8544 = vst [vmem:[#allocation14_spill] sm:$0xff] %v7770_v12  ;;  %v7773_v59 = vld [vmem:[%s6716_s27 + $0x74] sm:$0x1]  ;;  %v3892_v26 = vshrl.u32 %v5582_v27, 16  ;;  %v3895_v45 = vshll.u32 %v5582_v27, 16  ;;  %v3901_v43 = vshll.u32 %v7749_v57, 16 }
  0xe8   : > { %8545 = vst [vmem:[#allocation15_spill] sm:$0xff] %v7773_v59  ;;  %v3905_v36 = vshrl.u32 %v7749_v57, 16  ;;  %v3916_v30 = vshrl.u32 %v5585_v50, 16  ;;  %v3919_v3 = vshll.u32 %v5585_v50, 16  ;;  %v3849_v63 = vrot.slane %v3847_v25, 5 }
  0xe9   : > { %v7786_v27 = vrot.slane %v3853_v41, 5  ;;  %v3925_v16 = vshll.u32 %v7770_v12, 16  ;;  %v3929_v13 = vshrl.u32 %v7770_v12, 16  ;;  %v8547_v50 = vcombine.low %v7473_v48, %v7486_v23  ;;  %v5588_v41 = vld [vmem:[%s6716_s27 + $0x9c] sm:$0xf] }
  0xea   : > { %v3859_v51 = vrot.slane %v3857_v0, 4  ;;  %v3863_v33 = vshll.u32 %v7773_v59, 16  ;;  %v3873_v25 = vrot.slane %v3871_v21, 5  ;;  %v3883_v57 = vrot.slane %v3881_v39, 4  ;;  %v7802_v17 = vld [vmem:[%s6716_s27 + $0x8c] sm:$0x1] }
  0xeb   : > { %v3894_v49 = vrot.slane %v3892_v26, 4  ;;  %v3897_v12 = vrot.slane %v3895_v45, 5  ;;  %v7804_v31 = vrot.slane %v3901_v43, 5  ;;  %v3907_v48 = vrot.slane %v3905_v36, 4  ;;  %v7810_v0 = vld [vmem:[%s6716_s27 + $0x98] sm:$0x1] }
  0xec   : > { %v3918_v23 = vrot.slane %v3916_v30, 4  ;;  %v3921_v55 = vrot.slane %v3919_v3, 5  ;;  %v7812_v59 = vrot.slane %v3925_v16, 5  ;;  %v3940_v21 = vshrl.u32 %v5588_v41, 16 }
  0xed   : > { %6161 = vmatmul.mubr.msk.bf16.gmra.mrb[28].mxu0 %vm731_vm3, %v6554_v34  ;;  %v7789_v34 = vld [vmem:[%s6716_s27 + $0x80] sm:$0x1]  ;;  %v3850_v39 = vor.u32 %v3849_v63, %v7757_v24  ;;  %v3860_v7 = vor.u32 %v3859_v51, %v7786_v27  ;;  %v3898_v30 = vor.u32 %v3897_v12, %v3894_v49  ;;  %v3908_v16 = vor.u32 %v3907_v48, %v7804_v31 }
  0xee   : > { %6009 = vmatmul.mubr.msk.bf16.gmra.mrb[12].mxu1 %vm731_vm3, %v8546_v58  ;;  %6166 = vmatprep.mubr.msk.bf16.mxu0 %vm731_vm3, %v7528_v52  ;;  %v3870_v52 = vrot.slane %v3868_v19, 4  ;;  %v7799_v58 = vrot.slane %v3877_v53, 5  ;;  %v3931_v19 = vrot.slane %v3929_v13, 4  ;;  %v3943_v53 = vshll.u32 %v5588_v41, 16 }
  0xef   : > { %6012 = vmatprep.mubr.msk.bf16.mxu1 %vm731_vm3, %v8547_v50  ;;  %v7807_v50 = vld [vmem:[%s6716_s27 + $0xa0] sm:$0xf]  ;;  %v3887_v45 = vshll.u32 %v7789_v34, 16  ;;  %v3911_v13 = vshll.u32 %v7802_v17, 16  ;;  %v3922_v24 = vor.u32 %v3921_v55, %v3918_v23  ;;  %v3935_v63 = vshll.u32 %v7810_v0, 16 }
  0xf0   : > { %v3874_v26 = vor.u32 %v3873_v25, %v3870_v52  ;;  %v3884_v36 = vor.u32 %v3883_v57, %v7799_v58  ;;  %v3949_v43 = vshll.u32 %v7807_v50, 16  ;;  %v3953_v3 = vshrl.u32 %v7807_v50, 16 }
  0xf1   : > { %v8548_v51 = vcombine.low %v7490_v29, %v7494_v9  ;;  %v3865_v49 = vrot.slane %v3863_v33, 5  ;;  %v3932_v57 = vor.u32 %v3931_v19, %v7812_v59  ;;  %v3942_v12 = vrot.slane %v3940_v21, 4 }
  0xf2   : > { %v8549_v52 = vcombine.low %v7540_v10, %v7544_v6  ;;  %v3851_v55 = vrot.slane %v3850_v39, 4  ;;  %v3861_v29 = vrot.slane %v3860_v7, 4  ;;  %v3875_v9 = vrot.slane %v3874_v26, 4 }
  0xf3   : > { %v3889_v25 = vrot.slane %v3887_v45, 5  ;;  %v3885_v33 = vrot.slane %v3884_v36, 4  ;;  %v3899_v41 = vrot.slane %v3898_v30, 4  ;;  %v7838_v48 = vrot.slane %v3949_v43, 5 }
  0xf4   : > { %v3955_v23 = vrot.slane %v3953_v3, 4  ;;  %v3909_v19 = vrot.slane %v3908_v16, 4  ;;  %v3913_v21 = vrot.slane %v3911_v13, 5  ;;  %v3923_v10 = vrot.slane %v3922_v24, 4 }
  0xf5   : > { %6167 = vmatmul.mubr.msk.bf16.vlgmr.msra.gmra.mrb[0].mxu0 %vm731_vm3, %v7585_v56  ;;  %v3945_v56 = vrot.slane %v3943_v53, 5  ;;  %v3937_v6 = vrot.slane %v3935_v63, 5  ;;  %v7841_v53 = vld [vmem:[%s6716_s27 + $0xa4] sm:$0x1]  ;;  %v8550_v26 = vrot.slane %v7744_v22, 5  ;;  %v3856_v36 = vsel %vm6735_vm2, %v3851_v55, %v7786_v27 }
  0xf6   : > { %6013 = vmatmul.mubr.msk.bf16.gmra.mrb[16].mxu1 %vm731_vm3, %v8548_v51  ;;  %6199 = vmatpush3.bf16.msra.mxu0 %v7312_v46  ;;  %v5591_v46 = vld [vmem:[%s6716_s27 + $0xa8] sm:$0xf]  ;;  %v3933_v51 = vrot.slane %v3932_v57, 4  ;;  %v3866_v30 = vsel %vm6735_vm2, %v3861_v29, %v3865_v49  ;;  %v3880_v43 = vsel %vm6735_vm2, %v3875_v9, %v7799_v58  ;;  %v3890_v22 = vsel %vm6735_vm2, %v3885_v33, %v3889_v25 }
  0xf7   : > { %6016 = vmatprep.mubr.msk.bf16.mxu1 %vm731_vm3, %v8549_v52  ;;  %6170 = vmatprep.mubr.msk.bf16.mxu0 %vm731_vm3, %v7589_v4  ;;  %v3946_v52 = vor.u32 %v3945_v56, %v3942_v12  ;;  %v7844_v4 = vld [vmem:[%s6716_s27 + $0xac] sm:$0xf]  ;;  %v3964_v7 = vshrl.u32 %v5591_v46, 16  ;;  %v3967_v39 = vshll.u32 %v5591_v46, 16  ;;  %v7851_v45 = vsel %vm6957_vm6, %v7755_v54, %v8550_v26 }
  0xf8   : > { %v3904_v54 = vsel %vm6735_vm2, %v3899_v41, %v7804_v31  ;;  %v3956_v3 = vor.u32 %v3955_v23, %v7838_v48  ;;  %v3959_v16 = vshll.u32 %v7841_v53, 16  ;;  %v3914_v27 = vsel %vm6735_vm2, %v3909_v19, %v3913_v21  ;;  %v5642_v31 = vld [vmem:[%s6716_s27 + $0x48] sm:$0xe]  ;;  %v5645_v26 = vld [vmem:[%s6716_s27 + $0x6c] sm:$0xe] }
  0xf9   : > { %v3928_v58 = vsel %vm6735_vm2, %v3923_v10, %v7812_v59  ;;  %v3973_v13 = vshll.u32 %v7844_v4, 16  ;;  %v3977_v24 = vshrl.u32 %v7844_v4, 16  ;;  %v8551_v63 = vcombine.low %v7555_v32, %v7565_v5  ;;  %v7887_v59 = vld [vmem:[%s6716_s27 + $0xb0] sm:$0x1] }
  0xfa   : > { %v3947_v49 = vrot.slane %v3946_v52, 4  ;;  %v3966_v57 = vrot.slane %v3964_v7, 4  ;;  %v3969_v12 = vrot.slane %v3967_v39, 5  ;;  %v8552_v56 = vcombine.low %v7665_v61, %v7677_v40  ;;  %v5594_v40 = vld [vmem:[%s6716_s27 + $0xb4] sm:$0xf] }
  0xfb   : > { %v8553_v32 = vsel %vm6735_vm2, %v7723_v14, %v7725_v15  ;;  %v8554_v5 = vsel %vm6735_vm2, %v7721_v11, %v7649_v60  ;;  %v5253_v55 = vcombine.low %v7753_v1, %v7851_v45  ;;  %v7905_v29 = vcombine.low %v3856_v36, %v3866_v30  ;;  %v5643_v15 = vld [vmem:[%s6716_s27 + $0x54] sm:$0xe] }
  0xfc   : > { %v7907_v61 = vcombine.low %v3880_v43, %v3890_v22  ;;  %v7910_v9 = vcombine.low %v3904_v54, %v3914_v27  ;;  %v3957_v25 = vrot.slane %v3956_v3, 4  ;;  %v3961_v46 = vrot.slane %v3959_v16, 5  ;;  %v8556_v16 = vld [vmem:[#allocation8_spill] sm:$0xff] }
  0xfd   : > { %6171 = vmatmul.mubr.msk.bf16.gmra.mrb[4].mxu0 %vm731_vm3, %v7719_v44  ;;  %v3938_v44 = vsel %vm6735_vm2, %v3933_v51, %v3937_v6  ;;  %v5658_v14 = vrot.slane %v5642_v31, 9  ;;  %v7915_v60 = vrot.slane %v3973_v13, 5  ;;  %v3979_v11 = vrot.slane %v3977_v24, 4  ;;  %v5644_v6 = vld [vmem:[%s6716_s27 + $0x60] sm:$0xe]  ;;  %v8557_v13 = vld [vmem:[#allocation9_spill] sm:$0xff] }
  0xfe   : > { %6017 = vmatmul.mubr.msk.bf16.gmra.mrb[20].mxu1 %vm731_vm3, %v8551_v63  ;;  %6174 = vmatprep.mubr.msk.bf16.mxu0 %vm731_vm3, %v7729_v38  ;;  %v5611_v38 = vcombine.low %v8554_v5, %v8553_v32  ;;  %v7913_v33 = vcombine.low %v3928_v58, %v3938_v44  ;;  %v3983_v41 = vshll.u32 %v7887_v59, 16  ;;  %v3952_v23 = vsel %vm6735_vm2, %v3947_v49, %v7838_v48  ;;  %v8558_v24 = vld [vmem:[#allocation10_spill] sm:$0xff]  ;;  %v8560_v63 = vld [vmem:[#allocation11_spill] sm:$0xff] }
  0xff   : > { %6020 = vmatprep.mubr.msk.bf16.mxu1 %vm731_vm3, %v8552_v56  ;;  %v3970_v19 = vor.u32 %v3969_v12, %v3966_v57  ;;  %v4451_v21 = vrot.slane %v7548_v20, 5  ;;  %v4454_v10 = vrot.slane %v7602_v35, 5  ;;  %v3988_v51 = vshrl.u32 %v5594_v40, 16  ;;  %v7937_v35 = vld [vmem:[%s6716_s27 + $0xb8] sm:$0xf]  ;;  %v8561_v49 = vld [vmem:[#allocation15_spill] sm:$0xff] }
 0x100   : > { %v5659_v52 = vrot.slane %v5643_v15, 9  ;;  %v4458_v7 = vrot.slane %v7559_v18, 5  ;;  %v4461_v39 = vrot.slane %v7626_v37, 5  ;;  %v3962_v36 = vsel %vm6735_vm2, %v3957_v25, %v3961_v46  ;;  %v5597_v12 = vld [vmem:[%s6716_s27 + $0xc0] sm:$0xf] }
 0x101   : > { %v3991_v30 = vshll.u32 %v5594_v40, 16  ;;  %v7931_v48 = vsel %vm6957_vm6, %v5658_v14, %v4451_v21  ;;  %v4453_v43 = vrot.slane %v4451_v21, 4  ;;  %v3980_v20 = vor.u32 %v3979_v11, %v7915_v60  ;;  %v5646_v14 = vld [vmem:[%s6716_s27 + $0x78] sm:$0xe] }
 0x102   : > { %v7941_v37 = vsel %vm6957_vm6, %v5659_v52, %v4458_v7  ;;  %v4460_v18 = vrot.slane %v4458_v7, 4  ;;  %v5660_v22 = vrot.slane %v5644_v6, 9  ;;  %v8555_v54 = vcombine.low %v7684_v42, %v7688_v62  ;;  %v6556_v6 = vld [vmem:[%s6716_s27 + $0xc] sm:$0xff]  }
 0x103   : > { %v4465_v3 = vrot.slane %v7608_v8, 5  ;;  %v4468_v27 = vrot.slane %v8556_v16, 5  ;;  %v5661_v58 = vrot.slane %v5645_v26, 9  ;;  %v8559_v31 = vcombine.low %v8557_v13, %v8558_v24  ;;  %v8563_v13 = vld [vmem:[#allocation3_spill] sm:$0xff]  ;;  %v8564_v24 = vld [vmem:[#allocation4_spill] sm:$0xff] }
 0x104   : > { %v7962_v62 = vsel %vm6957_vm6, %v4460_v18, %v4461_v39  ;;  %v4472_v44 = vrot.slane %v8560_v63, 5  ;;  %v4475_v8 = vrot.slane %v8561_v49, 5  ;;  %v3997_v57 = vshll.u32 %v7937_v35, 16  ;;  %v7999_v39 = vld [vmem:[%s6716_s27 + $0xc4] sm:$0xf]  ;;  %v8565_v49 = vld [vmem:[#allocation13_spill] sm:$0xff] }
 0x105   : > { %6175 = vmatmul.mubr.msk.bf16.gmra.mrb[8].mxu0 %vm731_vm3, %v7733_v47  ;;  %v7950_v47 = vsel %vm6957_vm6, %v4453_v43, %v4454_v10  ;;  %v5677_v56 = vcombine.low %v7941_v37, %v7962_v62  ;;  %v7972_v32 = vsel %vm6957_vm6, %v5660_v22, %v4465_v3  ;;  %v4467_v5 = vrot.slane %v4465_v3, 4  ;;  %v5365_v10 = vld [vmem:[%s6716_s27 + $0x78] sm:$0xf]  ;;  %v8562_v22 = vld [vmem:[#allocation12_spill] sm:$0xff]  ;;  %v6621_v62 = vld [vmem:[%s6716_s27 + $0xa0] sm:$0xf] }
 0x106   : > { %6021 = vmatmul.mubr.msk.bf16.gmra.mrb[24].mxu1 %vm731_vm3, %v8555_v54  ;;  %6178 = vmatprep.mubr.msk.bf16.mxu0 %vm731_vm3, %v5611_v38  ;;  %v5676_v42 = vcombine.low %v7931_v48, %v7950_v47  ;;  %v7974_v38 = vrot.slane %v3983_v41, 5  ;;  %v4001_v40 = vshrl.u32 %v7937_v35, 16  ;;  %v7979_v25 = vsel %vm6957_vm6, %v5661_v58, %v4472_v44 }
 0x107   : > { %6024 = vmatprep.mubr.msk.bf16.mxu1 %vm731_vm3, %v8559_v31  ;;  %v4474_v46 = vrot.slane %v4472_v44, 4  ;;  %v7982_v15 = vcombine.low %v3952_v23, %v3962_v36  ;;  %v7984_v11 = vrot.slane %v3970_v19, 4  ;;  %v7986_v21 = vrot.slane %v3988_v51, 4 }
 0x108   : > { %v7990_v41 = vsel %vm6957_vm6, %v4467_v5, %v4468_v27  ;;  %v7994_v52 = vrot.slane %v3980_v20, 4  ;;  %v7996_v7 = vrot.slane %v3991_v30, 5  ;;  %v8007_v51 = vrot.slane %v3997_v57, 5  ;;  %v5647_v20 = vld [vmem:[%s6716_s27 + $0x84] sm:$0xe] }
 0x109   : > { %v5678_v23 = vcombine.low %v7972_v32, %v7990_v41  ;;  %v8005_v19 = vsel %vm6957_vm6, %v4474_v46, %v4475_v8  ;;  %v4012_v26 = vshrl.u32 %v5597_v12, 16  ;;  %v5662_v43 = vrot.slane %v5646_v14, 9  ;;  %v8015_v30 = vld [vmem:[%s6716_s27 + $0xbc] sm:$0x1]  ;;  %v5600_v5 = vld [vmem:[%s6716_s27 + $0xcc] sm:$0xf] }
 0x10a   : > { %v5679_v36 = vcombine.low %v7979_v25, %v8005_v19  ;;  %v4015_v18 = vshll.u32 %v5597_v12, 16  ;;  %v4479_v54 = vrot.slane %v8562_v22, 5  ;;  %v4482_v3 = vrot.slane %v7789_v34, 5  ;;  %v6557_v14 = vld [vmem:[%s6716_s27 + $0x18] sm:$0xff]   ;;  %v5648_v22 = vld [vmem:[%s6716_s27 + $0x90] sm:$0xe] }
 0x10b   : > { %v2325_v16 = vshrl.u32 %v5365_v10, 16  ;;  %v4021_v27 = vshll.u32 %v7999_v39, 16  ;;  %v2328_v58 = vshll.u32 %v5365_v10, 16  ;;  %v2347_v34 = vsel %vm6735_vm2, %v8564_v24, %v8563_v13  ;;  %v8566_v24 = vld [vmem:[#allocation14_spill] sm:$0xff]  ;;  %v6625_v19 = vld [vmem:[%s6716_s27 + $0xac] sm:$0xf] }
 0x10c   : > { %v8034_v1 = vsel %vm6957_vm6, %v5662_v43, %v4479_v54  ;;  %v4481_v45 = vrot.slane %v4479_v54, 4  ;;  %v4003_v31 = vrot.slane %v4001_v40, 4  ;;  %v4007_v63 = vshll.u32 %v8015_v30, 16 }
 0x10d   : > { %6179 = vmatmul.mubr.msk.bf16.gmra.mrb[12].mxu0 %vm731_vm3, %v7905_v29  ;;  %v4025_v29 = vshrl.u32 %v7999_v39, 16  ;;  %v2330_v44 = vrot.slane %v2328_v58, 5  ;;  %v4486_v8 = vrot.slane %v8565_v49, 5  ;;  %v3976_v57 = vsel %vm6735_vm2, %v7984_v11, %v7915_v60  ;;  %v6558_v60 = vld [vmem:[%s6716_s27 + $0x24] sm:$0xff]  }
 0x10e   : > { %6025 = vmatmul.mubr.msk.bf16.gmra.mrb[28].mxu1 %vm731_vm3, %v5253_v55  ;;  %6182 = vmatprep.mubr.msk.bf16.mxu0 %vm731_vm3, %v7907_v61  ;;  %v2327_v55 = vrot.slane %v2325_v16, 4  ;;  %v5663_v61 = vrot.slane %v5647_v20, 9  ;;  %v3994_v12 = vor.u32 %v7996_v7, %v7986_v21  ;;  %v8047_v46 = vsel %vm6957_vm6, %v4481_v45, %v4482_v3  ;;  %v8058_v7 = vld [vmem:[%s6716_s27 + $0xd0] sm:$0xf] }
 0x10f   : > { %6030 = vmatprep.mubr.msk.bf16.mxu1 %vm731_vm3, %v6556_v6  ;;  %v4489_v40 = vrot.slane %v7802_v17, 5  ;;  %v4014_v10 = vrot.slane %v4012_v26, 4  ;;  %v4017_v6 = vrot.slane %v4015_v18, 5  ;;  %v5680_v43 = vcombine.low %v8034_v1, %v8047_v46  ;;  %v8070_v18 = vld [vmem:[%s6716_s27 + $0xc8] sm:$0x1] }
 0x110   : > { %v2331_v20 = vor.u32 %v2330_v44, %v2327_v55  ;;  %v8055_v11 = vrot.slane %v4021_v27, 5  ;;  %v4027_v21 = vrot.slane %v4025_v29, 4  ;;  %v8062_v54 = vsel %vm6957_vm6, %v5663_v61, %v4486_v8  ;;  %v8567_v55 = vld [vmem:[#allocation2_spill] sm:$0xff] }
 0x111   : > { %v4488_v3 = vrot.slane %v4486_v8, 4  ;;  %v3986_v17 = vsel %vm6735_vm2, %v7994_v52, %v7974_v38  ;;  %v4004_v26 = vor.u32 %v4003_v31, %v8007_v51  ;;  %v4036_v16 = vshrl.u32 %v5600_v5, 16  ;;  %v8568_v31 = vld [vmem:[#allocation7_spill] sm:$0xff] }
 0x112   : > { %v2332_v27 = vrot.slane %v2331_v20, 4  ;;  %v4039_v29 = vshll.u32 %v5600_v5, 16  ;;  %v5664_v13 = vrot.slane %v5648_v22, 9  ;;  %v4493_v45 = vrot.slane %v8566_v24, 5 }
 0x113   : > { %v8076_v58 = vsel %vm6957_vm6, %v4488_v3, %v4489_v40  ;;  %v4045_v38 = vshll.u32 %v8058_v7, 16  ;;  %v4049_v52 = vshrl.u32 %v8058_v7, 16  ;;  %v4018_v44 = vor.u32 %v4017_v6, %v4014_v10  ;;  %v5649_v10 = vld [vmem:[%s6716_s27 + $0x9c] sm:$0xe]  ;;  %v6559_v6 = vld [vmem:[%s6716_s27 + $0x30] sm:$0xff]  }
 0x114   : > { %v5681_v61 = vcombine.low %v8062_v54, %v8076_v58  ;;  %v4031_v49 = vshll.u32 %v8070_v18, 16  ;;  %v4009_v5 = vrot.slane %v4007_v63, 5  ;;  %v8097_v40 = vsel %vm6957_vm6, %v5664_v13, %v4493_v45  ;;  %v6560_v13 = vld [vmem:[%s6716_s27 + $0x3c] sm:$0xff]  }
 0x115   : > { %6183 = vmatmul.mubr.msk.bf16.gmra.mrb[16].mxu0 %vm731_vm3, %v7910_v9  ;;  %v2337_v9 = vsel %vm6735_vm2, %v2332_v27, %v8567_v55  ;;  %v4496_v20 = vrot.slane %v7810_v0, 5  ;;  %v5617_v22 = vcombine.low %v3976_v57, %v3986_v17  ;;  %v3995_v3 = vrot.slane %v3994_v12, 4 }
 0x116   : > { %6031 = vmatmul.mubr.msk.bf16.vlgmr.msra.gmra.mrb[0].mxu1 %vm731_vm3, %v6557_v14  ;;  %6186 = vmatprep.mubr.msk.bf16.mxu0 %vm731_vm3, %v7913_v33  ;;  %v4028_v33 = vor.u32 %v4027_v21, %v8055_v11  ;;  %v8093_v8 = vcombine.low %v2337_v9, %v2347_v34  ;;  %v4495_v14 = vrot.slane %v4493_v45, 4  ;;  %v4005_v27 = vrot.slane %v4004_v26, 4  ;;  %v8103_v21 = vld [vmem:[%s6716_s27 + $0xd4] sm:$0x1]  ;;  %v5638_v9 = vld [vmem:[%s6716_s27 + $0x18] sm:$0xe] }
 0x117   : > { %6233 = vmatpush3.bf16.msra.mxu1 %v8568_v31  ;;  %6034 = vmatprep.mubr.msk.bf16.mxu1 %vm731_vm3, %v6558_v60  ;;  %v4038_v60 = vrot.slane %v4036_v16, 4  ;;  %v4041_v24 = vrot.slane %v4039_v29, 5  ;;  %v8105_v34 = vrot.slane %v4045_v38, 5  ;;  %v4051_v55 = vrot.slane %v4049_v52, 4 }
 0x118   : > { %v8109_v63 = vsel %vm6957_vm6, %v4495_v14, %v4496_v20  ;;  %v4019_v45 = vrot.slane %v4018_v44, 4  ;;  %v4029_v0 = vrot.slane %v4028_v33, 4  ;;  %v4033_v57 = vrot.slane %v4031_v49, 5  ;;  %v6611_v33 = vld [vmem:[%s6716_s27 + $0x1c] sm:$0xf] }
 0x119   : > { %v5682_v12 = vcombine.low %v8097_v40, %v8109_v63  ;;  %v5665_v17 = vrot.slane %v5649_v10, 9  ;;  %v4500_v26 = vrot.slane %v7807_v50, 5  ;;  %v4000_v16 = vsel %vm6735_vm2, %v3995_v3, %v8007_v51  ;;  %v5650_v14 = vld [vmem:[%s6716_s27 + $0xa8] sm:$0xe] }
 0x11a   : > { %v4010_v29 = vsel %vm6735_vm2, %v4005_v27, %v4009_v5  ;;  %v4055_v38 = vshll.u32 %v8103_v21, 16  ;;  %v4503_v52 = vrot.slane %v7841_v53, 5  ;;  %v4042_v50 = vor.u32 %v4041_v24, %v4038_v60  ;;  %v6561_v60 = vld [vmem:[%s6716_s27 + $0x48] sm:$0xff]   ;;  %v6612_v24 = vld [vmem:[%s6716_s27 + $0x20] sm:$0x1] }
 0x11b   : > { %v8130_v51 = vsel %vm6957_vm6, %v5665_v17, %v4500_v26  ;;  %v4502_v31 = vrot.slane %v4500_v26, 4  ;;  %v4024_v53 = vsel %vm6735_vm2, %v4019_v45, %v8055_v11  ;;  %v4034_v44 = vsel %vm6735_vm2, %v4029_v0, %v4033_v57  ;;  %v5651_v26 = vld [vmem:[%s6716_s27 + $0xb4] sm:$0xe] }
 0x11c   : > { %v4423_v49 = vrot.slane %v6611_v33, 5  ;;  %v5618_v20 = vcombine.low %v4000_v16, %v4010_v29  ;;  %v5654_v3 = vrot.slane %v5638_v9, 9  ;;  %v5619_v11 = vcombine.low %v4024_v53, %v4034_v44  ;;  %v5640_v33 = vld [vmem:[%s6716_s27 + $0x30] sm:$0xe] }
 0x11d   : > { %6187 = vmatmul.mubr.msk.bf16.gmra.mrb[20].mxu0 %vm731_vm3, %v7982_v15  ;;  %v4052_v15 = vor.u32 %v4051_v55, %v8105_v34  ;;  %v8141_v5 = vsel %vm6957_vm6, %v4502_v31, %v4503_v52  ;;  %v4043_v10 = vrot.slane %v4042_v50, 4  ;;  %v4426_v55 = vrot.slane %v6612_v24, 5  ;;  %v5639_v52 = vld [vmem:[%s6716_s27 + $0x24] sm:$0xe]  ;;  %v6613_v50 = vld [vmem:[%s6716_s27 + $0x28] sm:$0xf] }
 0x11e   : > { %6035 = vmatmul.mubr.msk.bf16.gmra.mrb[4].mxu1 %vm731_vm3, %v6559_v6  ;;  %6190 = vmatprep.mubr.msk.bf16.mxu0 %vm731_vm3, %v5617_v22  ;;  %v4057_v22 = vrot.slane %v4055_v38, 5  ;;  %v5683_v27 = vcombine.low %v8130_v51, %v8141_v5  ;;  %v4425_v45 = vrot.slane %v4423_v49, 4  ;;  %v5666_v0 = vrot.slane %v5650_v14, 9  ;;  %v6614_v31 = vld [vmem:[%s6716_s27 + $0x34] sm:$0xf] }
 0x11f   : > { %6038 = vmatprep.mubr.msk.bf16.mxu1 %vm731_vm3, %v6560_v13  ;;  %v4053_v6 = vrot.slane %v4052_v15, 4  ;;  %v6562_v13 = vld [vmem:[%s6716_s27 + $0x54] sm:$0xff]   ;;  %v4507_v57 = vrot.slane %v7844_v4, 5  ;;  %v4510_v17 = vrot.slane %v7887_v59, 5  ;;  %v4048_v4 = vsel %vm6735_vm2, %v4043_v10, %v8105_v34  ;;  %v6563_v10 = vld [vmem:[%s6716_s27 + $0x60] sm:$0xff]  }
 0x120   : > { %v4424_v38 = vsel %vm6957_vm6, %v5654_v3, %v4423_v49  ;;  %v4430_v15 = vrot.slane %v6613_v50, 5  ;;  %v4427_v9 = vsel %vm6957_vm6, %v4425_v45, %v4426_v55  ;;  %v4437_v53 = vrot.slane %v6614_v31, 5  ;;  %v6615_v3 = vld [vmem:[%s6716_s27 + $0x2c] sm:$0x1]  ;;  %v6630_v51 = vld [vmem:[%s6716_s27 + $0xc8] sm:$0x1] }
 0x121   : > { %v8155_v16 = vsel %vm6957_vm6, %v5666_v0, %v4507_v57  ;;  %v4509_v29 = vrot.slane %v4507_v57, 4  ;;  %v4058_v59 = vsel %vm6735_vm2, %v4053_v6, %v4057_v22  ;;  %v5667_v44 = vrot.slane %v5651_v26, 9  ;;  %v6564_v45 = vld [vmem:[%s6716_s27 + $0x6c] sm:$0xff]   ;;  %v5652_v26 = vld [vmem:[%s6716_s27 + $0xc0] sm:$0xe] }
 0x122   : > { %v4514_v14 = vrot.slane %v7937_v35, 5  ;;  %v5655_v22 = vrot.slane %v5639_v52, 9  ;;  %v5672_v6 = vcombine.low %v4424_v38, %v4427_v9  ;;  %v4432_v24 = vrot.slane %v4430_v15, 4  ;;  %v6616_v35 = vld [vmem:[%s6716_s27 + $0x38] sm:$0x1] }
 0x123   : > { %v8174_v34 = vsel %vm6957_vm6, %v4509_v29, %v4510_v17  ;;  %v5656_v0 = vrot.slane %v5640_v33, 9  ;;  %v4439_v57 = vrot.slane %v4437_v53, 4  ;;  %v4440_v17 = vrot.slane %v6616_v35, 5  ;;  %v8569_v38 = vld [vmem:[#allocation5_spill] sm:$0xff] }
 0x124   : > { %v5684_v49 = vcombine.low %v8155_v16, %v8174_v34  ;;  %v8185_v55 = vsel %vm6957_vm6, %v5667_v44, %v4514_v14  ;;  %v4444_v52 = vrot.slane %v8569_v38, 5  ;;  %v5668_v50 = vrot.slane %v5652_v26, 9  ;;  %v5641_v44 = vld [vmem:[%s6716_s27 + $0x3c] sm:$0xe]  ;;  %v6617_v38 = vld [vmem:[%s6716_s27 + $0x70] sm:$0xf] }
 0x125   : > { %6191 = vmatmul.mubr.msk.bf16.gmra.mrb[24].mxu0 %vm731_vm3, %v5618_v20  ;;  %v5620_v20 = vcombine.low %v4048_v4, %v4058_v59  ;;  %v4431_v4 = vsel %vm6957_vm6, %v5655_v22, %v4430_v15  ;;  %v4438_v9 = vsel %vm6957_vm6, %v5656_v0, %v4437_v53  ;;  %v4441_v31 = vsel %vm6957_vm6, %v4439_v57, %v4440_v17  ;;  %v5362_v22 = vld [vmem:[%s6716_s27 + $0x6c] sm:$0xf] }
 0x126   : > { %6039 = vmatmul.mubr.msk.bf16.gmra.mrb[8].mxu1 %vm731_vm3, %v6561_v60  ;;  %6194 = vmatprep.mubr.msk.bf16.mxu0 %vm731_vm3, %v5619_v11  ;;  %v4433_v60 = vrot.slane %v6615_v3, 5  ;;  %v4517_v11 = vrot.slane %v8015_v30, 5  ;;  %v4521_v33 = vrot.slane %v7999_v39, 5  ;;  %v4524_v15 = vrot.slane %v8070_v18, 5 }
 0x127   : > { %6042 = vmatprep.mubr.msk.bf16.mxu1 %vm731_vm3, %v6562_v13  ;;  %v4516_v13 = vrot.slane %v4514_v14, 4  ;;  %v5653_v14 = vld [vmem:[%s6716_s27 + $0xcc] sm:$0xe]  ;;  %v4446_v53 = vrot.slane %v4444_v52, 4  ;;  %v2301_v0 = vshrl.u32 %v5362_v22, 16  ;;  %v2304_v57 = vshll.u32 %v5362_v22, 16 }
 0x128   : > { %v4434_v59 = vsel %vm6957_vm6, %v4432_v24, %v4433_v60  ;;  %v8216_v3 = vsel %vm6957_vm6, %v5668_v50, %v4521_v33  ;;  %v4523_v60 = vrot.slane %v4521_v33, 4  ;;  %v8570_v24 = vld [vmem:[#allocation6_spill] sm:$0xff]  ;;  %v5669_v18 = vrot.slane %v5653_v14, 9 }
 0x129   : > { %v8192_v29 = vsel %vm6957_vm6, %v4516_v13, %v4517_v11  ;;  %v6565_v11 = vld [vmem:[%s6716_s27 + $0x78] sm:$0xff]   ;;  %v4447_v13 = vrot.slane %v8570_v24, 5  ;;  %v4528_v17 = vrot.slane %v8058_v7, 5  ;;  %v4531_v26 = vrot.slane %v8103_v21, 5 }
 0x12a   : > { %v5685_v30 = vcombine.low %v8185_v55, %v8192_v29  ;;  %v8223_v39 = vsel %vm6957_vm6, %v4523_v60, %v4524_v15  ;;  %v2310_v50 = vshll.u32 %v6617_v38, 16  ;;  %v6567_v15 = vld [vmem:[%s6716_s27 + $0x90] sm:$0xff]   ;;  %v6568_v60 = vld [vmem:[%s6716_s27 + $0x9c] sm:$0xff]   ;;  %v2488_v5 = vshll.u32 %v6630_v51, 16 }
 0x12b   : > { %v5686_v35 = vcombine.low %v8216_v3, %v8223_v39  ;;  %v8240_v7 = vsel %vm6957_vm6, %v5669_v18, %v4528_v17  ;;  %v4530_v21 = vrot.slane %v4528_v17, 4  ;;  %v5371_v17 = vld [vmem:[%s6716_s27 + $0x90] sm:$0xf] }
 0x12c   : > { %v2312_v14 = vrot.slane %v2310_v50, 5 }
 0x12d   : > { %6195 = vmatmul.mubr.msk.bf16.gmra.mrb[28].mxu0 %vm731_vm3, %v5620_v20  ;;  %v5673_v20 = vcombine.low %v4431_v4, %v4434_v59  ;;  %v4448_v59 = vsel %vm6957_vm6, %v4446_v53, %v4447_v13 }
 0x12e   : > { %6043 = vmatmul.mubr.msk.bf16.gmra.mrb[12].mxu1 %vm731_vm3, %v6563_v10  ;;  %6200 = vmatprep.mubr.msk.bf16.mxu0 %vm731_vm3, %v5672_v6  ;;  %v5674_v10 = vcombine.low %v4438_v9, %v4441_v31  ;;  %v5657_v6 = vrot.slane %v5641_v44, 9  ;;  %v2314_v9 = vshrl.u32 %v6617_v38, 16  ;;  %v2303_v31 = vrot.slane %v2301_v0, 4  ;;  %v6570_v38 = vld [vmem:[%s6716_s27 + $0xb4] sm:$0xff]  }
 0x12f   : > { %6046 = vmatprep.mubr.msk.bf16.mxu1 %vm731_vm3, %v6564_v45  ;;  %v6566_v45 = vld [vmem:[%s6716_s27 + $0x84] sm:$0xff]   ;;  %v2306_v44 = vrot.slane %v2304_v57, 5 }
 0x130   : > { %v4445_v4 = vsel %vm6957_vm6, %v5657_v6, %v4444_v52  ;;  %v8244_v52 = vsel %vm6957_vm6, %v4530_v21, %v4531_v26  ;;  %v6618_v6 = vld [vmem:[%s6716_s27 + $0x74] sm:$0x1]  ;;  %v6569_v26 = vld [vmem:[%s6716_s27 + $0xa8] sm:$0xff]   ;;  %v2373_v21 = vshrl.u32 %v5371_v17, 16 }
 0x131   : > { %v5675_v33 = vcombine.low %v4445_v4, %v4448_v59  ;;  %v5687_v22 = vcombine.low %v8240_v7, %v8244_v52  ;;  %v2320_v53 = vshll.u32 %v6618_v6, 16  ;;  %v5374_v59 = vld [vmem:[%s6716_s27 + $0x9c] sm:$0xf]  ;;  %v6622_v6 = vld [vmem:[%s6716_s27 + $0x8c] sm:$0x1] }
 0x133   : > { %v2322_v48 = vrot.slane %v2320_v53, 5  ;;  %v2368_v53 = vshll.u32 %v6622_v6, 16 }
 0x135   : > { %6201 = vmatmul.mubr.msk.bf16.vlgmr.msra.gmra.mrb[0].mxu0 %vm731_vm3, %v5673_v20  ;;  %v2316_v20 = vrot.slane %v2314_v9, 4 }
 0x136   : > { %6047 = vmatmul.mubr.msk.bf16.gmra.mrb[16].mxu1 %vm731_vm3, %v6565_v11  ;;  %6204 = vmatprep.mubr.msk.bf16.mxu0 %vm731_vm3, %v5674_v10  ;;  %v5368_v11 = vld [vmem:[%s6716_s27 + $0x84] sm:$0xf]  ;;  %v2307_v10 = vor.u32 %v2306_v44, %v2303_v31  ;;  %v2376_v31 = vshll.u32 %v5371_v17, 16 }
 0x137   : > { %6050 = vmatprep.mubr.msk.bf16.mxu1 %vm731_vm3, %v6566_v45  ;;  %v2317_v2 = vor.u32 %v2316_v20, %v2312_v14  ;;  %v2349_v24 = vshrl.u32 %v5368_v11, 16  ;;  %v2352_v13 = vshll.u32 %v5368_v11, 16  ;;  %v6619_v45 = vld [vmem:[%s6716_s27 + $0x88] sm:$0xf]  ;;  %v2400_v11 = vshll.u32 %v5374_v59, 16 }
 0x138   : > { %v2358_v18 = vshll.u32 %v6619_v45, 16  ;;  %v2362_v0 = vshrl.u32 %v6619_v45, 16  ;;  %v2308_v57 = vrot.slane %v2307_v10, 4  ;;  %v2406_v10 = vshll.u32 %v6621_v62, 16 }
 0x139   : > { %v2318_v4 = vrot.slane %v2317_v2, 4  ;;  %v2351_v47 = vrot.slane %v2349_v24, 4  ;;  %v2375_v24 = vrot.slane %v2373_v21, 4  ;;  %v2378_v32 = vrot.slane %v2376_v31, 5  ;;  %v6624_v31 = vld [vmem:[%s6716_s27 + $0xa4] sm:$0x1] }
 0x13a   : > { %v8264_v50 = vrot.slane %v2358_v18, 5  ;;  %v2364_v9 = vrot.slane %v2362_v0, 4  ;;  %v2313_v44 = vsel %vm6735_vm2, %v2308_v57, %v2312_v14  ;;  %v2402_v45 = vrot.slane %v2400_v11, 5  ;;  %v6571_v18 = vld [vmem:[%s6716_s27 + $0xc0] sm:$0xff]  }
 0x13b   : > { %v2323_v14 = vsel %vm6735_vm2, %v2318_v4, %v2322_v48  ;;  %v8287_v17 = vrot.slane %v2406_v10, 5  ;;  %v5377_v4 = vld [vmem:[%s6716_s27 + $0xa8] sm:$0xf] }
 0x13c   : > { %v2365_v2 = vor.u32 %v2364_v9, %v8264_v50  ;;  %v5396_v0 = vcombine.low %v2313_v44, %v2323_v14  ;;  %v2416_v44 = vshll.u32 %v6624_v31, 16  ;;  %v2424_v25 = vshll.u32 %v5377_v4, 16 }
 0x13d   : > { %6205 = vmatmul.mubr.msk.bf16.gmra.mrb[4].mxu0 %vm731_vm3, %v5675_v33  ;;  %v6620_v33 = vld [vmem:[%s6716_s27 + $0x94] sm:$0xf] }
 0x13e   : > { %6051 = vmatmul.mubr.msk.bf16.gmra.mrb[20].mxu1 %vm731_vm3, %v6567_v15  ;;  %6208 = vmatprep.mubr.msk.bf16.mxu0 %vm731_vm3, %v5676_v42  ;;  %v2354_v42 = vrot.slane %v2352_v13, 5  ;;  %v2382_v15 = vshll.u32 %v6620_v33, 16  ;;  %v2386_v20 = vshrl.u32 %v6620_v33, 16  ;;  %v2366_v48 = vrot.slane %v2365_v2, 4 }
 0x13f   : > { %6054 = vmatprep.mubr.msk.bf16.mxu1 %vm731_vm3, %v6568_v60  ;;  %v2397_v60 = vshrl.u32 %v5374_v59, 16  ;;  %v6623_v59 = vld [vmem:[%s6716_s27 + $0x98] sm:$0x1]  ;;  %v2421_v33 = vshrl.u32 %v5377_v4, 16  ;;  %v5383_v4 = vld [vmem:[%s6716_s27 + $0xc0] sm:$0xf] }
 0x140   : > { %v2355_v37 = vor.u32 %v2354_v42, %v2351_v47  ;;  %v8284_v41 = vrot.slane %v2382_v15, 5  ;;  %v2370_v47 = vrot.slane %v2368_v53, 5  ;;  %v2379_v42 = vor.u32 %v2378_v32, %v2375_v24  ;;  %v5380_v15 = vld [vmem:[%s6716_s27 + $0xb4] sm:$0xf] }
 0x141   : > { %v2399_v13 = vrot.slane %v2397_v60, 4  ;;  %v2434_v60 = vshrl.u32 %v6625_v19, 16  ;;  %v2445_v1 = vshrl.u32 %v5380_v15, 16  ;;  %v2448_v46 = vshll.u32 %v5380_v15, 16 }
 0x142   : > { %v2356_v57 = vrot.slane %v2355_v37, 4  ;;  %v2371_v14 = vsel %vm6735_vm2, %v2366_v48, %v2370_v47  ;;  %v2380_v37 = vrot.slane %v2379_v42, 4  ;;  %v2418_v53 = vrot.slane %v2416_v44, 5 }
 0x143   : > { %v2403_v21 = vor.u32 %v2402_v45, %v2399_v13  ;;  %v2423_v24 = vrot.slane %v2421_v33, 4  ;;  %v2436_v45 = vrot.slane %v2434_v60, 4  ;;  %v6629_v33 = vld [vmem:[%s6716_s27 + $0xbc] sm:$0x1] }
 0x144   : > { %v2361_v11 = vsel %vm6735_vm2, %v2356_v57, %v8264_v50  ;;  %v2385_v48 = vsel %vm6735_vm2, %v2380_v37, %v8284_v41  ;;  %v2464_v40 = vshll.u32 %v6629_v33, 16 }
 0x145   : > { %6209 = vmatmul.mubr.msk.bf16.gmra.mrb[8].mxu0 %vm731_vm3, %v5677_v56  ;;  %v2410_v56 = vshrl.u32 %v6621_v62, 16  ;;  %v2404_v6 = vrot.slane %v2403_v21, 4  ;;  %v5398_v50 = vcombine.low %v2361_v11, %v2371_v14 }
 0x146   : > { %6055 = vmatmul.mubr.msk.bf16.gmra.mrb[24].mxu1 %vm731_vm3, %v6569_v26  ;;  %6212 = vmatprep.mubr.msk.bf16.mxu0 %vm731_vm3, %v5678_v23  ;;  %v2388_v23 = vrot.slane %v2386_v20, 4 }
 0x147   : > { %6058 = vmatprep.mubr.msk.bf16.mxu1 %vm731_vm3, %v6570_v38  ;;  %v2412_v26 = vrot.slane %v2410_v56, 4  ;;  %v2392_v38 = vshll.u32 %v6623_v59, 16  ;;  %v2409_v42 = vsel %vm6735_vm2, %v2404_v6, %v8287_v17  ;;  %v2490_v6 = vrot.slane %v2488_v5, 5 }
 0x148   : > { %v2389_v9 = vor.u32 %v2388_v23, %v8284_v41  ;;  %v2426_v23 = vrot.slane %v2424_v25, 5  ;;  %v6627_v41 = vld [vmem:[%s6716_s27 + $0xb0] sm:$0x1] }
 0x149   : > { %v2413_v20 = vor.u32 %v2412_v26, %v8287_v17  ;;  %v2394_v62 = vrot.slane %v2392_v38, 5  ;;  %v2440_v59 = vshll.u32 %v6627_v41, 16  ;;  %v2469_v38 = vshrl.u32 %v5383_v4, 16 }
 0x14a   : > { %v2390_v2 = vrot.slane %v2389_v9, 4  ;;  %v2427_v58 = vor.u32 %v2426_v23, %v2423_v24  ;;  %v2472_v17 = vshll.u32 %v5383_v4, 16  ;;  %v6628_v9 = vld [vmem:[%s6716_s27 + $0xc4] sm:$0xf] }
 0x14b   : > { %v2414_v32 = vrot.slane %v2413_v20, 4  ;;  %v2478_v21 = vshll.u32 %v6628_v9, 16  ;;  %v2482_v31 = vshrl.u32 %v6628_v9, 16  ;;  %v2442_v25 = vrot.slane %v2440_v59, 5 }
 0x14c   : > { %v2395_v47 = vsel %vm6735_vm2, %v2390_v2, %v2394_v62  ;;  %v2428_v15 = vrot.slane %v2427_v58, 4  ;;  %v2466_v62 = vrot.slane %v2464_v40, 5 }
 0x14d   : > { %6213 = vmatmul.mubr.msk.bf16.gmra.mrb[12].mxu0 %vm731_vm3, %v5679_v36  ;;  %v2430_v36 = vshll.u32 %v6625_v19, 16  ;;  %v2419_v54 = vsel %vm6735_vm2, %v2414_v32, %v2418_v53  ;;  %v5399_v63 = vcombine.low %v2385_v48, %v2395_v47  ;;  %v2471_v19 = vrot.slane %v2469_v38, 4 }
 0x14e   : > { %6059 = vmatmul.mubr.msk.bf16.gmra.mrb[28].mxu1 %vm731_vm3, %v6571_v18  ;;  %6216 = vmatprep.mubr.msk.bf16.mxu0 %vm731_vm3, %v5680_v43  ;;  %v6626_v43 = vld [vmem:[%s6716_s27 + $0xb8] sm:$0xf]  ;;  %v2447_v18 = vrot.slane %v2445_v1, 4  ;;  %v2480_v60 = vrot.slane %v2478_v21, 5  ;;  %v2484_v11 = vrot.slane %v2482_v31, 4 }
 0x14f   : > { %6080 = vmatprep.mubr.msk.bf16.mxu1 %vm731_vm3, %v5396_v0  ;;  %v2454_v10 = vshll.u32 %v6626_v43, 16  ;;  %v2458_v56 = vshrl.u32 %v6626_v43, 16  ;;  %v2432_v13 = vrot.slane %v2430_v36, 5  ;;  %v2450_v0 = vrot.slane %v2448_v46, 5 }
 0x150   : > { %v2474_v36 = vrot.slane %v2472_v17, 5 }
 0x151   : > { %v2456_v57 = vrot.slane %v2454_v10, 5  ;;  %v2460_v26 = vrot.slane %v2458_v56, 4  ;;  %v2433_v1 = vsel %vm6735_vm2, %v2428_v15, %v2432_v13  ;;  %v2485_v10 = vor.u32 %v2484_v11, %v2480_v60 }
 0x152   : > { %v2475_v43 = vor.u32 %v2474_v36, %v2471_v19 }
 0x153   : > { %v2461_v44 = vor.u32 %v2460_v26, %v2456_v57  ;;  %v2486_v2 = vrot.slane %v2485_v10, 4  ;;  %v8386_v26 = vld [vmem:[%s8505_s2] ss:$0 sm:$0xff] }
 0x154   : > { %v2476_v56 = vrot.slane %v2475_v43, 4 }
 0x155   : > { %6217 = vmatmul.mubr.msk.bf16.gmra.mrb[16].mxu0 %vm731_vm3, %v5681_v61  ;;  %v2437_v61 = vor.u32 %v2436_v45, %v2432_v13  ;;  %v2462_v37 = vrot.slane %v2461_v44, 4  ;;  %v2491_v24 = vsel %vm6735_vm2, %v2486_v2, %v2490_v6 }
 0x156   : > { %6081 = vmatmul.mubr.msk.bf16.vlgmr.msra.gmra.mrb[16].mxu1 %vm731_vm3, %v8093_v8  ;;  %6220 = vmatprep.mubr.msk.bf16.mxu0 %vm731_vm3, %v5682_v12  ;;  %v2451_v8 = vor.u32 %v2450_v0, %v2447_v18  ;;  %v5400_v12 = vcombine.low %v2409_v42, %v2419_v54  ;;  %v2481_v53 = vsel %vm6735_vm2, %v2476_v56, %v2480_v60 }
 0x157   : > { %6084 = vmatprep.mubr.msk.bf16.mxu1 %vm731_vm3, %v5398_v50  ;;  %v2438_v20 = vrot.slane %v2437_v61, 4  ;;  %v2467_v16 = vsel %vm6735_vm2, %v2462_v37, %v2466_v62  ;;  %v5403_v32 = vcombine.low %v2481_v53, %v2491_v24 }
 0x158   : > { %v2452_v14 = vrot.slane %v2451_v8, 4 }
 0x159   : > { %v2443_v46 = vsel %vm6735_vm2, %v2438_v20, %v2442_v25 }
 0x15a   : > { %v5401_v34 = vcombine.low %v2433_v1, %v2443_v46 }
 0x15d   : > { %6221 = vmatmul.mubr.msk.bf16.gmra.mrb[20].mxu0 %vm731_vm3, %v5683_v27  ;;  %v2457_v27 = vsel %vm6735_vm2, %v2452_v14, %v2456_v57 }
 0x15e   : > { %6085 = vmatmul.mubr.msk.bf16.gmra.mrb[20].mxu1 %vm731_vm3, %v5399_v63  ;;  %6224 = vmatprep.mubr.msk.bf16.mxu0 %vm731_vm3, %v5684_v49  ;;  %v5402_v49 = vcombine.low %v2457_v27, %v2467_v16 }
 0x15f   : > { %6088 = vmatprep.mubr.msk.bf16.mxu1 %vm731_vm3, %v5400_v12 }
 0x165   : > { %6225 = vmatmul.mubr.msk.bf16.gmra.mrb[24].mxu0 %vm731_vm3, %v5685_v30 }
 0x166   : > { %6089 = vmatmul.mubr.msk.bf16.gmra.mrb[24].mxu1 %vm731_vm3, %v5401_v34  ;;  %6228 = vmatprep.mubr.msk.bf16.mxu0 %vm731_vm3, %v5686_v35 }
 0x167   : > { %6092 = vmatprep.mubr.msk.bf16.mxu1 %vm731_vm3, %v5402_v49 }
 0x16d   : > { %6229 = vmatmul.mubr.msk.bf16.gmra.mrb[28].mxu0 %vm731_vm3, %v5687_v22 }
 0x16e   : > { %6093 = vmatmul.mubr.msk.bf16.gmra.mrb[28].mxu1 %vm731_vm3, %v5403_v32 }
 0x1e9   : > { %v6032_v55 = vpop.f32.mrb[0].mxu1 }
 0x1ea   : > { %v1901_v29 = vpop.f32.mrb[1].mxu1 }
 0x1eb   : > { %v6033_v30 = vpop.f32.mrb[2].mxu1 }
 0x1ec   : > { %v1904_v3 = vpop.f32.mrb[3].mxu1 }
 0x1f1   : > { %v6036_v39 = vpop.f32.mrb[4].mxu1 }
 0x1f2   : > { %v1917_v35 = vpop.f32.mrb[5].mxu1 }
 0x1f3   : > { %v6037_v23 = vpop.f32.mrb[6].mxu1 }
 0x1f4   : > { %v1920_v13 = vpop.f32.mrb[7].mxu1 }
 0x1f9   : > { %v6040_v45 = vpop.f32.mrb[8].mxu1 }
 0x1fa   : > { %v1933_v28 = vpop.f32.mrb[9].mxu1 }
 0x1fb   : > { %v6041_v50 = vpop.f32.mrb[10].mxu1 }
 0x1fc   : > { %v1936_v18 = vpop.f32.mrb[11].mxu1 }
 0x201   : > { %v8375_v0 = vpop.f32.mrb[12].mxu1 }
 0x202   : > { %v8377_v7 = vpop.f32.mrb[13].mxu1 }
 0x203   : > { %v8379_v52 = vpop.f32.mrb[14].mxu1 }
 0x204   : > { %v8381_v22 = vpop.f32.mrb[15].mxu1 }
 0x208   : > { %v6202_v57 = vpop.f32.mrb[0].mxu0 }
 0x209   : > { %v6234_v4 = vadd.f32 %v6202_v57, %v6032_v55  ;;  %v4672_v48 = vpop.f32.mrb[1].mxu0 }
 0x20a   : > { %v6235_v47 = vadd.f32 %v4672_v48, %v1901_v29  ;;  %v6203_v42 = vpop.f32.mrb[2].mxu0 }
 0x20b   : > { %v4840_v54 = vadd.f32 %v6234_v4, %v8386_v26  ;;  %v6236_v58 = vadd.f32 %v6203_v42, %v6033_v30  ;;  %v4675_v61 = vpop.f32.mrb[3].mxu0 }
 0x20c   : > { %v4838_v41 = vadd.f32 %v6235_v47, %v8386_v26  ;;  %v6237_v59 = vadd.f32 %v4675_v61, %v1904_v3 }
 0x20d   : > { %v5743_v38 = vpack.c.bf16 %v4840_v54, %v4840_v54  ;;  %v4841_v17 = vadd.f32 %v6236_v58, %v8386_v26 }
 0x20e   : > { %v5741_v9 = vpack.c.bf16 %v4838_v41, %v4838_v41  ;;  %v4839_v21 = vadd.f32 %v6237_v59, %v8386_v26 }
 0x20f   : > { %5001 = vst.msk [vmem:[%s8393_s24 + $0x8] sm:$0xf] %vm4998_vm7, %v5743_v38  ;;  %v5744_v31 = vpack.c.bf16 %v4841_v17, %v4841_v17 }
 0x210   : > { %4999 = vst.msk [vmem:[%s8393_s24] sm:$0xf] %vm4998_vm7, %v5741_v9  ;;  %v5742_v8 = vpack.c.bf16 %v4839_v21, %v4839_v21  ;;  %v6206_v44 = vpop.f32.mrb[4].mxu0 }
 0x211   : > { %5002 = vst.msk [vmem:[%s8393_s24 + $0xc] sm:$0xf] %vm4998_vm7, %v5744_v31  ;;  %v6238_v33 = vadd.f32 %v6206_v44, %v6036_v39  ;;  %v4688_v40 = vpop.f32.mrb[5].mxu0 }
 0x212   : > { %5000 = vst.msk [vmem:[%s8393_s24 + $0x4] sm:$0xf] %vm4998_vm7, %v5742_v8  ;;  %v6239_v63 = vadd.f32 %v4688_v40, %v1917_v35  ;;  %v6207_v12 = vpop.f32.mrb[6].mxu0 }
 0x213   : > { %v4844_v15 = vadd.f32 %v6238_v33, %v8386_v26  ;;  %v6240_v20 = vadd.f32 %v6207_v12, %v6037_v23  ;;  %v4691_v25 = vpop.f32.mrb[7].mxu0 }
 0x214   : > { %v4842_v19 = vadd.f32 %v6239_v63, %v8386_v26  ;;  %v6241_v36 = vadd.f32 %v4691_v25, %v1920_v13 }
 0x215   : > { %v5747_v60 = vpack.c.bf16 %v4844_v15, %v4844_v15  ;;  %v4845_v11 = vadd.f32 %v6240_v20, %v8386_v26 }
 0x216   : > { %v5745_v14 = vpack.c.bf16 %v4842_v19, %v4842_v19  ;;  %v4843_v37 = vadd.f32 %v6241_v36, %v8386_v26 }
 0x217   : > { %5005 = vst.msk [vmem:[%s8393_s24 + $0x18] sm:$0xf] %vm4998_vm7, %v5747_v60  ;;  %v5748_v62 = vpack.c.bf16 %v4845_v11, %v4845_v11 }
 0x218   : > { %5003 = vst.msk [vmem:[%s8393_s24 + $0x10] sm:$0xf] %vm4998_vm7, %v5745_v14  ;;  %v5746_v1 = vpack.c.bf16 %v4843_v37, %v4843_v37  ;;  %v6210_v46 = vpop.f32.mrb[8].mxu0 }
 0x219   : > { %5006 = vst.msk [vmem:[%s8393_s24 + $0x1c] sm:$0xf] %vm4998_vm7, %v5748_v62  ;;  %v6242_v43 = vadd.f32 %v6210_v46, %v6040_v45  ;;  %v4704_v10 = vpop.f32.mrb[9].mxu0 }
 0x21a   : > { %5004 = vst.msk [vmem:[%s8393_s24 + $0x14] sm:$0xf] %vm4998_vm7, %v5746_v1  ;;  %v6243_v51 = vadd.f32 %v4704_v10, %v1933_v28  ;;  %v6211_v5 = vpop.f32.mrb[10].mxu0 }
 0x21b   : > { %v4848_v27 = vadd.f32 %v6242_v43, %v8386_v26  ;;  %v6244_v16 = vadd.f32 %v6211_v5, %v6041_v50  ;;  %v4707_v34 = vpop.f32.mrb[11].mxu0 }
 0x21c   : > { %v4846_v49 = vadd.f32 %v6243_v51, %v8386_v26  ;;  %v6245_v56 = vadd.f32 %v4707_v34, %v1936_v18 }
 0x21d   : > { %v5751_v2 = vpack.c.bf16 %v4848_v27, %v4848_v27  ;;  %v4849_v6 = vadd.f32 %v6244_v16, %v8386_v26 }
 0x21e   : > { %v5749_v53 = vpack.c.bf16 %v4846_v49, %v4846_v49  ;;  %v4847_v24 = vadd.f32 %v6245_v56, %v8386_v26 }
 0x21f   : > { %5009 = vst.msk [vmem:[%s8393_s24 + $0x28] sm:$0xf] %vm4998_vm7, %v5751_v2  ;;  %v5752_v32 = vpack.c.bf16 %v4849_v6, %v4849_v6 }
 0x220   : > { %5007 = vst.msk [vmem:[%s8393_s24 + $0x20] sm:$0xf] %vm4998_vm7, %v5749_v53  ;;  %v5750_v55 = vpack.c.bf16 %v4847_v24, %v4847_v24  ;;  %v6214_v29 = vpop.f32.mrb[12].mxu0 }
 0x221   : > { %5010 = vst.msk [vmem:[%s8393_s24 + $0x2c] sm:$0xf] %vm4998_vm7, %v5752_v32  ;;  %v6246_v30 = vadd.f32 %v6214_v29, %v8375_v0  ;;  %v4720_v3 = vpop.f32.mrb[13].mxu0 }
 0x222   : > { %5008 = vst.msk [vmem:[%s8393_s24 + $0x24] sm:$0xf] %vm4998_vm7, %v5750_v55  ;;  %v6247_v39 = vadd.f32 %v4720_v3, %v8377_v7  ;;  %v6215_v35 = vpop.f32.mrb[14].mxu0 }
 0x223   : > { %v4852_v23 = vadd.f32 %v6246_v30, %v8386_v26  ;;  %v6248_v13 = vadd.f32 %v6215_v35, %v8379_v52  ;;  %v4723_v45 = vpop.f32.mrb[15].mxu0 }
 0x224   : > { %v4850_v28 = vadd.f32 %v6247_v39, %v8386_v26  ;;  %v6249_v50 = vadd.f32 %v4723_v45, %v8381_v22 }
 0x225   : > { %v5755_v18 = vpack.c.bf16 %v4852_v23, %v4852_v23  ;;  %v4853_v0 = vadd.f32 %v6248_v13, %v8386_v26 }
 0x226   : > { %v5753_v57 = vpack.c.bf16 %v4850_v28, %v4850_v28  ;;  %v4851_v4 = vadd.f32 %v6249_v50, %v8386_v26 }
 0x227   : > { %5013 = vst.msk [vmem:[%s8393_s24 + $0x38] sm:$0xf] %vm4998_vm7, %v5755_v18  ;;  %v5756_v7 = vpack.c.bf16 %v4853_v0, %v4853_v0 }
 0x228   : > { %5011 = vst.msk [vmem:[%s8393_s24 + $0x30] sm:$0xf] %vm4998_vm7, %v5753_v57  ;;  %v5754_v48 = vpack.c.bf16 %v4851_v4, %v4851_v4  ;;  %v6218_v47 = vpop.f32.mrb[16].mxu0 }
 0x229   : > { %5014 = vst.msk [vmem:[%s8393_s24 + $0x3c] sm:$0xf] %vm4998_vm7, %v5756_v7  ;;  %v6082_v52 = vpop.f32.mrb[16].mxu1  ;;  %v4736_v42 = vpop.f32.mrb[17].mxu0 }
 0x22a   : > { %5012 = vst.msk [vmem:[%s8393_s24 + $0x34] sm:$0xf] %vm4998_vm7, %v5754_v48  ;;  %v6250_v22 = vadd.f32 %v6218_v47, %v6082_v52  ;;  %v2695_v54 = vpop.f32.mrb[17].mxu1  ;;  %v6219_v58 = vpop.f32.mrb[18].mxu0 }
 0x22b   : > { %v6251_v61 = vadd.f32 %v4736_v42, %v2695_v54  ;;  %v6083_v41 = vpop.f32.mrb[18].mxu1  ;;  %v4739_v59 = vpop.f32.mrb[19].mxu0 }
 0x22c   : > { %v4856_v38 = vadd.f32 %v6250_v22, %v8386_v26  ;;  %v6252_v17 = vadd.f32 %v6219_v58, %v6083_v41  ;;  %v2698_v9 = vpop.f32.mrb[19].mxu1 }
 0x22d   : > { %v4854_v21 = vadd.f32 %v6251_v61, %v8386_v26  ;;  %v6253_v31 = vadd.f32 %v4739_v59, %v2698_v9 }
 0x22e   : > { %v5759_v8 = vpack.c.bf16 %v4856_v38, %v4856_v38  ;;  %v4857_v44 = vadd.f32 %v6252_v17, %v8386_v26 }
 0x22f   : > { %v5757_v33 = vpack.c.bf16 %v4854_v21, %v4854_v21  ;;  %v4855_v40 = vadd.f32 %v6253_v31, %v8386_v26 }
 0x230   : > { %5017 = vst.msk [vmem:[%s8393_s24 + $0x48] sm:$0xf] %vm4998_vm7, %v5759_v8  ;;  %v5760_v63 = vpack.c.bf16 %v4857_v44, %v4857_v44  ;;  %v6222_v12 = vpop.f32.mrb[20].mxu0 }
 0x231   : > { %5015 = vst.msk [vmem:[%s8393_s24 + $0x40] sm:$0xf] %vm4998_vm7, %v5757_v33  ;;  %v5758_v15 = vpack.c.bf16 %v4855_v40, %v4855_v40  ;;  %v6086_v20 = vpop.f32.mrb[20].mxu1  ;;  %v4752_v25 = vpop.f32.mrb[21].mxu0 }
 0x232   : > { %5018 = vst.msk [vmem:[%s8393_s24 + $0x4c] sm:$0xf] %vm4998_vm7, %v5760_v63  ;;  %v6254_v19 = vadd.f32 %v6222_v12, %v6086_v20  ;;  %v2711_v36 = vpop.f32.mrb[21].mxu1  ;;  %v6223_v60 = vpop.f32.mrb[22].mxu0 }
 0x233   : > { %5016 = vst.msk [vmem:[%s8393_s24 + $0x44] sm:$0xf] %vm4998_vm7, %v5758_v15  ;;  %v6255_v11 = vadd.f32 %v4752_v25, %v2711_v36  ;;  %v6087_v14 = vpop.f32.mrb[22].mxu1  ;;  %v4755_v37 = vpop.f32.mrb[23].mxu0 }
 0x234   : > { %v4860_v62 = vadd.f32 %v6254_v19, %v8386_v26  ;;  %v6256_v1 = vadd.f32 %v6223_v60, %v6087_v14  ;;  %v2714_v46 = vpop.f32.mrb[23].mxu1 }
 0x235   : > { %v4858_v43 = vadd.f32 %v6255_v11, %v8386_v26  ;;  %v6257_v10 = vadd.f32 %v4755_v37, %v2714_v46 }
 0x236   : > { %v5763_v51 = vpack.c.bf16 %v4860_v62, %v4860_v62  ;;  %v4861_v5 = vadd.f32 %v6256_v1, %v8386_v26 }
 0x237   : > { %v5761_v27 = vpack.c.bf16 %v4858_v43, %v4858_v43  ;;  %v4859_v16 = vadd.f32 %v6257_v10, %v8386_v26 }
 0x238   : > { %5021 = vst.msk [vmem:[%s8393_s24 + $0x58] sm:$0xf] %vm4998_vm7, %v5763_v51  ;;  %v5764_v34 = vpack.c.bf16 %v4861_v5, %v4861_v5  ;;  %v6226_v49 = vpop.f32.mrb[24].mxu0 }
 0x239   : > { %5019 = vst.msk [vmem:[%s8393_s24 + $0x50] sm:$0xf] %vm4998_vm7, %v5761_v27  ;;  %v5762_v56 = vpack.c.bf16 %v4859_v16, %v4859_v16  ;;  %v6090_v2 = vpop.f32.mrb[24].mxu1  ;;  %v4768_v6 = vpop.f32.mrb[25].mxu0 }
 0x23a   : > { %5022 = vst.msk [vmem:[%s8393_s24 + $0x5c] sm:$0xf] %vm4998_vm7, %v5764_v34  ;;  %v6258_v53 = vadd.f32 %v6226_v49, %v6090_v2  ;;  %v2727_v24 = vpop.f32.mrb[25].mxu1  ;;  %v6227_v32 = vpop.f32.mrb[26].mxu0 }
 0x23b   : > { %5020 = vst.msk [vmem:[%s8393_s24 + $0x54] sm:$0xf] %vm4998_vm7, %v5762_v56  ;;  %v6259_v55 = vadd.f32 %v4768_v6, %v2727_v24  ;;  %v6091_v29 = vpop.f32.mrb[26].mxu1  ;;  %v4771_v30 = vpop.f32.mrb[27].mxu0 }
 0x23c   : > { %v4864_v3 = vadd.f32 %v6258_v53, %v8386_v26  ;;  %v6260_v39 = vadd.f32 %v6227_v32, %v6091_v29  ;;  %v2730_v35 = vpop.f32.mrb[27].mxu1 }
 0x23d   : > { %v4862_v23 = vadd.f32 %v6259_v55, %v8386_v26  ;;  %v6261_v13 = vadd.f32 %v4771_v30, %v2730_v35 }
 0x23e   : > { %v5767_v45 = vpack.c.bf16 %v4864_v3, %v4864_v3  ;;  %v4865_v28 = vadd.f32 %v6260_v39, %v8386_v26 }
 0x23f   : > { %v5765_v50 = vpack.c.bf16 %v4862_v23, %v4862_v23  ;;  %v4863_v18 = vadd.f32 %v6261_v13, %v8386_v26 }
 0x240   : > { %5025 = vst.msk [vmem:[%s8393_s24 + $0x68] sm:$0xf] %vm4998_vm7, %v5767_v45  ;;  %v5768_v0 = vpack.c.bf16 %v4865_v28, %v4865_v28  ;;  %v6230_v57 = vpop.f32.mrb[28].mxu0 }
 0x241   : > { %5023 = vst.msk [vmem:[%s8393_s24 + $0x60] sm:$0xf] %vm4998_vm7, %v5765_v50  ;;  %v5766_v4 = vpack.c.bf16 %v4863_v18, %v4863_v18  ;;  %v6094_v7 = vpop.f32.mrb[28].mxu1  ;;  %v4784_v48 = vpop.f32.mrb[29].mxu0 }
 0x242   : > { %5026 = vst.msk [vmem:[%s8393_s24 + $0x6c] sm:$0xf] %vm4998_vm7, %v5768_v0  ;;  %v6262_v47 = vadd.f32 %v6230_v57, %v6094_v7  ;;  %v2743_v52 = vpop.f32.mrb[29].mxu1  ;;  %v6231_v42 = vpop.f32.mrb[30].mxu0 }
 0x243   : > { %5024 = vst.msk [vmem:[%s8393_s24 + $0x64] sm:$0xf] %vm4998_vm7, %v5766_v4  ;;  %v6263_v22 = vadd.f32 %v4784_v48, %v2743_v52  ;;  %v6095_v54 = vpop.f32.mrb[30].mxu1  ;;  %v4787_v58 = vpop.f32.mrb[31].mxu0 }
 0x244   : > { %v4868_v61 = vadd.f32 %v6262_v47, %v8386_v26  ;;  %v6264_v41 = vadd.f32 %v6231_v42, %v6095_v54  ;;  %v2746_v59 = vpop.f32.mrb[31].mxu1 }
 0x245   : > { %v4866_v38 = vadd.f32 %v6263_v22, %v8386_v26  ;;  %v6265_v17 = vadd.f32 %v4787_v58, %v2746_v59 }
 0x246   : > { %v5771_v9 = vpack.c.bf16 %v4868_v61, %v4868_v61  ;;  %v4869_v21 = vadd.f32 %v6264_v41, %v8386_v26 }
 0x247   : > { %v5769_v31 = vpack.c.bf16 %v4866_v38, %v4866_v38  ;;  %v4867_v8 = vadd.f32 %v6265_v17, %v8386_v26 }
 0x248   : > { %5029 = vst.msk [vmem:[%s8393_s24 + $0x78] sm:$0xf] %vm4998_vm7, %v5771_v9  ;;  %v5772_v44 = vpack.c.bf16 %v4869_v21, %v4869_v21 }
 0x249   : > { %5027 = vst.msk [vmem:[%s8393_s24 + $0x70] sm:$0xf] %vm4998_vm7, %v5769_v31  ;;  %v5770_v33 = vpack.c.bf16 %v4867_v8, %v4867_v8 }
 0x24a   : > { %5030 = vst.msk [vmem:[%s8393_s24 + $0x7c] sm:$0xf] %vm4998_vm7, %v5772_v44 }
 0x24b   : > { %5028 = vst.msk [vmem:[%s8393_s24 + $0x74] sm:$0xf] %vm4998_vm7, %v5770_v33 }
 0x24c PF: > { %s13_s14 = sadd.s32 1, %s6653_s14   ;;  %s8571_s12 = smov %s6649_s13 }
 0x24d   : > { %p10_p5 = scmp.ge.s32.totalorder %s13_s14, 4   ;;  %s8572_s13 = smov %s8574_s15 }
 0x24f   :  { %12 = sbr.rel (!%p10_p5) target bundleno = 2 (0x2), region = 78 }

</bundles_post_ra>
